<compile_context>
chip_gen: v7x
topology: tpu7x:2x2x1
jax: 0.10.0
libtpu: 0.0.40
codegen_flags: <defaults>
</compile_context>

<pallas_src>
import functools

import jax
import jax.numpy as jnp
from jax import lax
from jax.experimental import pallas as pl
from jax.experimental.pallas import tpu as pltpu

EPS = 1e-5
LANE = 128


def _vmem_limit_bytes():
    """~3/4 of physical VMEM per core: headroom on v7x, bigger tiles on v5e/v6e."""
    cap = None
    try:
        cap = getattr(pltpu.get_tpu_info(), "vmem_capacity_bytes", None)
    except Exception:
        cap = None
    if not cap:
        cap = 64 * 1024 * 1024
    return int(cap) * 3 // 4


def _pick_batch_block(B, per_image_bytes, target_bytes=4 << 20):
    """Largest divisor of B whose tile fits the DMA target, preferring >=2 grid steps."""
    divisors = [d for d in range(1, B + 1) if B % d == 0]
    good = [d for d in divisors
            if d * per_image_bytes <= target_bytes and B // d >= 2]
    if good:
        return max(good)
    fit = [d for d in divisors if d * per_image_bytes <= target_bytes]
    return max(fit) if fit else 1


def _resblock_kernel(x_ref, s1_ref, b1_ref, w1_ref, s2_ref, b2_ref, w2_ref,
                     out_ref, *, matmul_dtype, fuse_im2col):
    """Per-step tile. x_ref/out_ref: (Bb, H, W, Cp); s*/b*: (1, Cp) f32;
    w*: (9*Cp, Cp) already in matmul_dtype (pre-cast in the wrapper)."""
    Bb, H, W, Cp = x_ref.shape

    def bn_relu(a, s_ref, b_ref):
        return jnp.maximum(a * s_ref[0] + b_ref[0], 0.0)

    def pad_hw(a):
        # Zero border on H and W: one pad (2 concatenates) feeds all 9 taps.
        zr = jnp.zeros((Bb, 1, W, Cp), a.dtype)
        a = jnp.concatenate([zr, a, zr], axis=1)                  # (Bb, H+2, W,   Cp)
        zc = jnp.zeros((Bb, H + 2, 1, Cp), a.dtype)
        return jnp.concatenate([zc, a, zc], axis=2)               # (Bb, H+2, W+2, Cp)

    def conv3x3(a, w_ref):
        a = a.astype(matmul_dtype)                                # cast BEFORE taps
        ap = pad_hw(a)
        M = Bb * H * W
        if fuse_im2col:
            # One fused MXU contraction: (M, 9*Cp) @ (9*Cp, Cp).
            taps = [ap[:, kh:kh + H, kw:kw + W, :]
                    for kh in range(3) for kw in range(3)]
            patch = jnp.concatenate(taps, axis=-1).reshape(M, 9 * Cp)
            y = jnp.dot(patch, w_ref[...], preferred_element_type=jnp.float32)
        else:
            # VMEM-lean path (large tiles / v7x): 9 per-tap dots into one f32 acc.
            y = jnp.zeros((M, Cp), jnp.float32)
            for k in range(9):
                kh, kw = divmod(k, 3)
                tap = ap[:, kh:kh + H, kw:kw + W, :].reshape(M, Cp)
                y = y + jnp.dot(tap, w_ref[pl.ds(k * Cp, Cp), :],
                                preferred_element_type=jnp.float32)
        return y.reshape(Bb, H, W, Cp)

    a1 = bn_relu(x_ref[...], s1_ref, b1_ref)                      # BN1 + ReLU (f32)
    y1 = conv3x3(a1, w1_ref)                                      # Conv1 (3x3, same)
    a2 = bn_relu(y1, s2_ref, b2_ref)                              # BN2 + ReLU (f32)
    y2 = conv3x3(a2, w2_ref)                                      # Conv2 (3x3, same)
    out_ref[...] = y2 + x_ref[...]                                # re-read x here


def _fold_bn(gamma, beta, mean, var, Cp):
    C = gamma.shape[0]
    scale = (gamma / jnp.sqrt(var + EPS)).astype(jnp.float32)
    shift = (beta - mean * scale).astype(jnp.float32)
    scale = jnp.pad(scale, (0, Cp - C))        # padded channels: scale=0, shift=0
    shift = jnp.pad(shift, (0, Cp - C))        # -> ReLU(0) = 0, stays inert
    return scale.reshape(1, Cp), shift.reshape(1, Cp)


def _conv_mat(w, Cp, matmul_dtype):
    """(Cout, Cin, 3, 3) -> (9*Cp, Cp) in matmul_dtype (tap index k = kh*3 + kw)."""
    C = w.shape[0]
    w = jnp.transpose(w, (2, 3, 1, 0)).astype(jnp.float32).reshape(9, C, C)
    wp = jnp.zeros((9, Cp, Cp), jnp.float32).at[:, :C, :C].set(w)
    return wp.reshape(9 * Cp, Cp).astype(matmul_dtype)            # pre-cast once


def residual_block_pallas_nhwc(x_pad, s1, b1, w1, s2, b2, w2,
                               *, matmul_dtype=jnp.bfloat16):
    """Padded-NHWC core: x_pad (B, H, W, Cp) f32 -> (B, H, W, Cp) f32."""
    B, H, W, Cp = x_pad.shape
    per_image_bytes = H * W * Cp * jnp.dtype(x_pad.dtype).itemsize
    Bb = _pick_batch_block(B, per_image_bytes)
    grid = (B // Bb,)

    patch_bytes = Bb * H * W * 9 * Cp * jnp.dtype(matmul_dtype).itemsize
    fuse_im2col = patch_bytes <= (8 << 20)

    kernel = functools.partial(_resblock_kernel, matmul_dtype=matmul_dtype,
                               fuse_im2col=fuse_im2col)

    img_spec = pl.BlockSpec((Bb, H, W, Cp), lambda b: (b, 0, 0, 0))
    vec_spec = pl.BlockSpec((1, Cp), lambda b: (0, 0))            # resident params
    mat_spec = pl.BlockSpec((9 * Cp, Cp), lambda b: (0, 0))       # resident weights

    return pl.pallas_call(
        kernel,
        out_shape=jax.ShapeDtypeStruct((B, H, W, Cp), jnp.float32),
        grid=grid,
        in_specs=[img_spec, vec_spec, vec_spec, mat_spec,
                  vec_spec, vec_spec, mat_spec],
        out_specs=img_spec,
        compiler_params=pltpu.CompilerParams(
            dimension_semantics=("parallel",),
            vmem_limit_bytes=_vmem_limit_bytes()),
    )(x_pad, s1, b1, w1, s2, b2, w2)


def residual_block_pallas(x_nchw, p, *, matmul_dtype=jnp.bfloat16):
    # NOTE: in a model stack, do this NCHW<->padded-NHWC conversion ONCE at the
    # model boundary and chain residual_block_pallas_nhwc() calls directly.
    B, C, H, W = x_nchw.shape
    Cp = ((C + LANE - 1) // LANE) * LANE

    x_nhwc = jnp.transpose(x_nchw, (0, 2, 3, 1)).astype(jnp.float32)
    x_pad = jnp.pad(x_nhwc, ((0, 0), (0, 0), (0, 0), (0, Cp - C)))

    s1, b1 = _fold_bn(p["bn1_gamma"], p["bn1_beta"], p["bn1_mean"], p["bn1_var"], Cp)
    s2, b2 = _fold_bn(p["bn2_gamma"], p["bn2_beta"], p["bn2_mean"], p["bn2_var"], Cp)
    w1 = _conv_mat(p["conv1_w"], Cp, matmul_dtype)
    w2 = _conv_mat(p["conv2_w"], Cp, matmul_dtype)

    out_pad = residual_block_pallas_nhwc(x_pad, s1, b1, w1, s2, b2, w2,
                                         matmul_dtype=matmul_dtype)
    return jnp.transpose(out_pad[..., :C], (0, 3, 1, 2))


def ref_forward(x, p):
    """Pure-JAX reference of ResidualBlock (eval-mode BN)."""
    def bnreluconv(x, gamma, beta, mean, var, w):
        scale = (gamma / jnp.sqrt(var + EPS))[None, :, None, None]
        shift = (beta - mean * gamma / jnp.sqrt(var + EPS))[None, :, None, None]
        a = jnp.maximum(x * scale + shift, 0.0)
        return lax.conv_general_dilated(
            a, w, window_strides=(1, 1), padding=((1, 1), (1, 1)),
            dimension_numbers=("NCHW", "OIHW", "NCHW"))

    out = bnreluconv(x, p["bn1_gamma"], p["bn1_beta"], p["bn1_mean"],
                     p["bn1_var"], p["conv1_w"])
    out = bnreluconv(out, p["bn2_gamma"], p["bn2_beta"], p["bn2_mean"],
                     p["bn2_var"], p["conv2_w"])
    return out + x


if __name__ == "__main__":
    B, C, H, W = 2, 4, 16, 16
    key = jax.random.PRNGKey(0)
    ks = jax.random.split(key, 11)

    params = {
        "bn1_gamma": 1.0 + 0.1 * jax.random.normal(ks[0], (C,), jnp.float32),
        "bn1_beta": 0.1 * jax.random.normal(ks[1], (C,), jnp.float32),
        "bn1_mean": 0.1 * jax.random.normal(ks[2], (C,), jnp.float32),
        "bn1_var": jnp.abs(jax.random.normal(ks[3], (C,), jnp.float32)) + 0.5,
        "conv1_w": 0.1 * jax.random.normal(ks[4], (C, C, 3, 3), jnp.float32),
        "bn2_gamma": 1.0 + 0.1 * jax.random.normal(ks[5], (C,), jnp.float32),
        "bn2_beta": 0.1 * jax.random.normal(ks[6], (C,), jnp.float32),
        "bn2_mean": 0.1 * jax.random.normal(ks[7], (C,), jnp.float32),
        "bn2_var": jnp.abs(jax.random.normal(ks[8], (C,), jnp.float32)) + 0.5,
        "conv2_w": 0.1 * jax.random.normal(ks[9], (C, C, 3, 3), jnp.float32),
    }
    x = jax.random.normal(ks[10], (B, C, H, W), jnp.float32)

    ref = ref_forward(x, params)

    # Exact-structure check on the f32 MXU path (tight tolerance).
    out_f32 = jax.block_until_ready(
        residual_block_pallas(x, params, matmul_dtype=jnp.float32))
    assert out_f32.shape == x.shape and out_f32.dtype == jnp.float32
    err_f32 = float(jnp.max(jnp.abs(out_f32 - ref)))
    assert jnp.allclose(out_f32, ref, atol=1e-3, rtol=1e-3), f"f32 max_err={err_f32}"

    # Default fast path: bf16 MXU (two stacked convs -> loosened tolerance vs f32 ref).
    out_bf16 = jax.block_until_ready(residual_block_pallas(x, params))
    assert out_bf16.shape == x.shape and out_bf16.dtype == jnp.float32
    err_bf16 = float(jnp.max(jnp.abs(out_bf16 - ref)))
    assert jnp.allclose(out_bf16, ref, atol=5e-2, rtol=5e-2), f"bf16 max_err={err_bf16}"

    print("KERNEL_OK")
</pallas_src>

<mosaic_0001>
module attributes {stable_mosaic.version = 11 : i64} {
  func.func @_resblock_kernel(%arg0: i32, %arg1: memref<1x16x16x128xf32, #tpu.memory_space<vmem>>, %arg2: memref<1x128xf32, #tpu.memory_space<vmem>>, %arg3: memref<1x128xf32, #tpu.memory_space<vmem>>, %arg4: memref<1152x128xf32, #tpu.memory_space<vmem>>, %arg5: memref<1x128xf32, #tpu.memory_space<vmem>>, %arg6: memref<1x128xf32, #tpu.memory_space<vmem>>, %arg7: memref<1152x128xf32, #tpu.memory_space<vmem>>, %arg8: memref<1x16x16x128xf32, #tpu.memory_space<vmem>>) attributes {dimension_semantics = [#tpu.dimension_semantics<parallel>], iteration_bounds = array<i64: 2>, scalar_prefetch = 0 : i64, scratch_operands = 0 : i64, tpu.core_type = #tpu.core_type<tc>, window_params = [{transform_indices = @transform_0, window_bounds = array<i64: 1, 16, 16, 128>}, {pipeline_mode = #tpu.pipeline_mode<synchronous>, transform_indices = @transform_1, window_bounds = array<i64: 1, 128>}, {pipeline_mode = #tpu.pipeline_mode<synchronous>, transform_indices = @transform_2, window_bounds = array<i64: 1, 128>}, {pipeline_mode = #tpu.pipeline_mode<synchronous>, transform_indices = @transform_3, window_bounds = array<i64: 1152, 128>}, {pipeline_mode = #tpu.pipeline_mode<synchronous>, transform_indices = @transform_4, window_bounds = array<i64: 1, 128>}, {pipeline_mode = #tpu.pipeline_mode<synchronous>, transform_indices = @transform_5, window_bounds = array<i64: 1, 128>}, {pipeline_mode = #tpu.pipeline_mode<synchronous>, transform_indices = @transform_6, window_bounds = array<i64: 1152, 128>}, {transform_indices = @transform_7, window_bounds = array<i64: 1, 16, 16, 128>}]} {
    %c0 = arith.constant 0 : index
    %c0_0 = arith.constant 0 : index
    %c0_1 = arith.constant 0 : index
    %c0_2 = arith.constant 0 : index
    %0 = vector.load %arg1[%c0, %c0_0, %c0_1, %c0_2] : memref<1x16x16x128xf32, #tpu.memory_space<vmem>>, vector<1x16x16x128xf32>
    %c0_3 = arith.constant 0 : index
    %c0_4 = arith.constant 0 : index
    %1 = vector.load %arg2[%c0_3, %c0_4] : memref<1x128xf32, #tpu.memory_space<vmem>>, vector<1x128xf32>
    %2 = vector.shape_cast %1 : vector<1x128xf32> to vector<128xf32>
    %3 = vector.shape_cast %2 : vector<128xf32> to vector<1x1x1x128xf32>
    %4 = vector.broadcast %3 : vector<1x1x1x128xf32> to vector<1x16x16x128xf32>
    %5 = arith.mulf %0, %4 : vector<1x16x16x128xf32>
    %c0_5 = arith.constant 0 : index
    %c0_6 = arith.constant 0 : index
    %6 = vector.load %arg3[%c0_5, %c0_6] : memref<1x128xf32, #tpu.memory_space<vmem>>, vector<1x128xf32>
    %7 = vector.shape_cast %6 : vector<1x128xf32> to vector<128xf32>
    %8 = vector.shape_cast %7 : vector<128xf32> to vector<1x1x1x128xf32>
    %9 = vector.broadcast %8 : vector<1x1x1x128xf32> to vector<1x16x16x128xf32>
    %10 = arith.addf %5, %9 : vector<1x16x16x128xf32>
    %cst = arith.constant 0.000000e+00 : f32
    %11 = vector.broadcast %cst : f32 to vector<1x16x16x128xf32>
    %12 = arith.maximumf %10, %11 : vector<1x16x16x128xf32>
    %cst_7 = arith.constant 0.000000e+00 : f32
    %13 = vector.broadcast %cst_7 : f32 to vector<1x1x16x128xf32>
    %14 = tpu.concatenate %13, %12, %13 in 1 : vector<1x1x16x128xf32>, vector<1x16x16x128xf32>, vector<1x1x16x128xf32> -> vector<1x18x16x128xf32>
    %cst_8 = arith.constant 0.000000e+00 : f32
    %15 = vector.broadcast %cst_8 : f32 to vector<1x18x1x128xf32>
    %16 = tpu.concatenate %15, %14, %15 in 2 : vector<1x18x1x128xf32>, vector<1x18x16x128xf32>, vector<1x18x1x128xf32> -> vector<1x18x18x128xf32>
    %17 = vector.extract_strided_slice %16 {offsets = [0, 0, 0, 0], sizes = [1, 16, 16, 128], strides = [1, 1, 1, 1]} : vector<1x18x18x128xf32> to vector<1x16x16x128xf32>
    %18 = vector.extract_strided_slice %16 {offsets = [0, 0, 1, 0], sizes = [1, 16, 16, 128], strides = [1, 1, 1, 1]} : vector<1x18x18x128xf32> to vector<1x16x16x128xf32>
    %19 = vector.extract_strided_slice %16 {offsets = [0, 0, 2, 0], sizes = [1, 16, 16, 128], strides = [1, 1, 1, 1]} : vector<1x18x18x128xf32> to vector<1x16x16x128xf32>
    %20 = vector.extract_strided_slice %16 {offsets = [0, 1, 0, 0], sizes = [1, 16, 16, 128], strides = [1, 1, 1, 1]} : vector<1x18x18x128xf32> to vector<1x16x16x128xf32>
    %21 = vector.extract_strided_slice %16 {offsets = [0, 1, 1, 0], sizes = [1, 16, 16, 128], strides = [1, 1, 1, 1]} : vector<1x18x18x128xf32> to vector<1x16x16x128xf32>
    %22 = vector.extract_strided_slice %16 {offsets = [0, 1, 2, 0], sizes = [1, 16, 16, 128], strides = [1, 1, 1, 1]} : vector<1x18x18x128xf32> to vector<1x16x16x128xf32>
    %23 = vector.extract_strided_slice %16 {offsets = [0, 2, 0, 0], sizes = [1, 16, 16, 128], strides = [1, 1, 1, 1]} : vector<1x18x18x128xf32> to vector<1x16x16x128xf32>
    %24 = vector.extract_strided_slice %16 {offsets = [0, 2, 1, 0], sizes = [1, 16, 16, 128], strides = [1, 1, 1, 1]} : vector<1x18x18x128xf32> to vector<1x16x16x128xf32>
    %25 = vector.extract_strided_slice %16 {offsets = [0, 2, 2, 0], sizes = [1, 16, 16, 128], strides = [1, 1, 1, 1]} : vector<1x18x18x128xf32> to vector<1x16x16x128xf32>
    %26 = tpu.concatenate %17, %18, %19, %20, %21, %22, %23, %24, %25 in 3 : vector<1x16x16x128xf32>, vector<1x16x16x128xf32>, vector<1x16x16x128xf32>, vector<1x16x16x128xf32>, vector<1x16x16x128xf32>, vector<1x16x16x128xf32>, vector<1x16x16x128xf32>, vector<1x16x16x128xf32>, vector<1x16x16x128xf32> -> vector<1x16x16x1152xf32>
    %27 = vector.shape_cast %26 : vector<1x16x16x1152xf32> to vector<256x1152xf32>
    %c0_9 = arith.constant 0 : index
    %c0_10 = arith.constant 0 : index
    %28 = vector.load %arg4[%c0_9, %c0_10] : memref<1152x128xf32, #tpu.memory_space<vmem>>, vector<1152x128xf32>
    %cst_11 = arith.constant dense<0.000000e+00> : vector<256x128xf32>
    %29 = tpu.matmul %27, %28, %cst_11 {dimension_numbers = #tpu.dot_dimension_numbers<[1], [0], [0], [1], [0, 0, 1, 1], [], []>} : vector<256x1152xf32>, vector<1152x128xf32>, vector<256x128xf32> -> vector<256x128xf32>
    %30 = vector.shape_cast %29 : vector<256x128xf32> to vector<1x16x16x128xf32>
    %c0_12 = arith.constant 0 : index
    %c0_13 = arith.constant 0 : index
    %31 = vector.load %arg5[%c0_12, %c0_13] : memref<1x128xf32, #tpu.memory_space<vmem>>, vector<1x128xf32>
    %32 = vector.shape_cast %31 : vector<1x128xf32> to vector<128xf32>
    %33 = vector.shape_cast %32 : vector<128xf32> to vector<1x1x1x128xf32>
    %34 = vector.broadcast %33 : vector<1x1x1x128xf32> to vector<1x16x16x128xf32>
    %35 = arith.mulf %30, %34 : vector<1x16x16x128xf32>
    %c0_14 = arith.constant 0 : index
    %c0_15 = arith.constant 0 : index
    %36 = vector.load %arg6[%c0_14, %c0_15] : memref<1x128xf32, #tpu.memory_space<vmem>>, vector<1x128xf32>
    %37 = vector.shape_cast %36 : vector<1x128xf32> to vector<128xf32>
    %38 = vector.shape_cast %37 : vector<128xf32> to vector<1x1x1x128xf32>
    %39 = vector.broadcast %38 : vector<1x1x1x128xf32> to vector<1x16x16x128xf32>
    %40 = arith.addf %35, %39 : vector<1x16x16x128xf32>
    %cst_16 = arith.constant 0.000000e+00 : f32
    %41 = vector.broadcast %cst_16 : f32 to vector<1x16x16x128xf32>
    %42 = arith.maximumf %40, %41 : vector<1x16x16x128xf32>
    %cst_17 = arith.constant 0.000000e+00 : f32
    %43 = vector.broadcast %cst_17 : f32 to vector<1x1x16x128xf32>
    %44 = tpu.concatenate %43, %42, %43 in 1 : vector<1x1x16x128xf32>, vector<1x16x16x128xf32>, vector<1x1x16x128xf32> -> vector<1x18x16x128xf32>
    %cst_18 = arith.constant 0.000000e+00 : f32
    %45 = vector.broadcast %cst_18 : f32 to vector<1x18x1x128xf32>
    %46 = tpu.concatenate %45, %44, %45 in 2 : vector<1x18x1x128xf32>, vector<1x18x16x128xf32>, vector<1x18x1x128xf32> -> vector<1x18x18x128xf32>
    %47 = vector.extract_strided_slice %46 {offsets = [0, 0, 0, 0], sizes = [1, 16, 16, 128], strides = [1, 1, 1, 1]} : vector<1x18x18x128xf32> to vector<1x16x16x128xf32>
    %48 = vector.extract_strided_slice %46 {offsets = [0, 0, 1, 0], sizes = [1, 16, 16, 128], strides = [1, 1, 1, 1]} : vector<1x18x18x128xf32> to vector<1x16x16x128xf32>
    %49 = vector.extract_strided_slice %46 {offsets = [0, 0, 2, 0], sizes = [1, 16, 16, 128], strides = [1, 1, 1, 1]} : vector<1x18x18x128xf32> to vector<1x16x16x128xf32>
    %50 = vector.extract_strided_slice %46 {offsets = [0, 1, 0, 0], sizes = [1, 16, 16, 128], strides = [1, 1, 1, 1]} : vector<1x18x18x128xf32> to vector<1x16x16x128xf32>
    %51 = vector.extract_strided_slice %46 {offsets = [0, 1, 1, 0], sizes = [1, 16, 16, 128], strides = [1, 1, 1, 1]} : vector<1x18x18x128xf32> to vector<1x16x16x128xf32>
    %52 = vector.extract_strided_slice %46 {offsets = [0, 1, 2, 0], sizes = [1, 16, 16, 128], strides = [1, 1, 1, 1]} : vector<1x18x18x128xf32> to vector<1x16x16x128xf32>
    %53 = vector.extract_strided_slice %46 {offsets = [0, 2, 0, 0], sizes = [1, 16, 16, 128], strides = [1, 1, 1, 1]} : vector<1x18x18x128xf32> to vector<1x16x16x128xf32>
    %54 = vector.extract_strided_slice %46 {offsets = [0, 2, 1, 0], sizes = [1, 16, 16, 128], strides = [1, 1, 1, 1]} : vector<1x18x18x128xf32> to vector<1x16x16x128xf32>
    %55 = vector.extract_strided_slice %46 {offsets = [0, 2, 2, 0], sizes = [1, 16, 16, 128], strides = [1, 1, 1, 1]} : vector<1x18x18x128xf32> to vector<1x16x16x128xf32>
    %56 = tpu.concatenate %47, %48, %49, %50, %51, %52, %53, %54, %55 in 3 : vector<1x16x16x128xf32>, vector<1x16x16x128xf32>, vector<1x16x16x128xf32>, vector<1x16x16x128xf32>, vector<1x16x16x128xf32>, vector<1x16x16x128xf32>, vector<1x16x16x128xf32>, vector<1x16x16x128xf32>, vector<1x16x16x128xf32> -> vector<1x16x16x1152xf32>
    %57 = vector.shape_cast %56 : vector<1x16x16x1152xf32> to vector<256x1152xf32>
    %c0_19 = arith.constant 0 : index
    %c0_20 = arith.constant 0 : index
    %58 = vector.load %arg7[%c0_19, %c0_20] : memref<1152x128xf32, #tpu.memory_space<vmem>>, vector<1152x128xf32>
    %cst_21 = arith.constant dense<0.000000e+00> : vector<256x128xf32>
    %59 = tpu.matmul %57, %58, %cst_21 {dimension_numbers = #tpu.dot_dimension_numbers<[1], [0], [0], [1], [0, 0, 1, 1], [], []>} : vector<256x1152xf32>, vector<1152x128xf32>, vector<256x128xf32> -> vector<256x128xf32>
    %60 = vector.shape_cast %59 : vector<256x128xf32> to vector<1x16x16x128xf32>
    %c0_22 = arith.constant 0 : index
    %c0_23 = arith.constant 0 : index
    %c0_24 = arith.constant 0 : index
    %c0_25 = arith.constant 0 : index
    %61 = vector.load %arg1[%c0_22, %c0_23, %c0_24, %c0_25] : memref<1x16x16x128xf32, #tpu.memory_space<vmem>>, vector<1x16x16x128xf32>
    %62 = arith.addf %60, %61 : vector<1x16x16x128xf32>
    %c0_26 = arith.constant 0 : index
    %c0_27 = arith.constant 0 : index
    %c0_28 = arith.constant 0 : index
    %c0_29 = arith.constant 0 : index
    %63 = vector.load %arg8[%c0_26, %c0_27, %c0_28, %c0_29] : memref<1x16x16x128xf32, #tpu.memory_space<vmem>>, vector<1x16x16x128xf32>
    tpu.vector_store %arg8[%c0_26, %c0_27, %c0_28, %c0_29], %62 {strides = array<i32>} : memref<1x16x16x128xf32, #tpu.memory_space<vmem>>, vector<1x16x16x128xf32>,
    return
  }
  func.func @transform_0(%arg0: i32) -> (i32, i32, i32, i32) {
    %c0_i32 = arith.constant 0 : i32
    %c0_i32_0 = arith.constant 0 : i32
    %c0_i32_1 = arith.constant 0 : i32
    %c0_i32_2 = arith.constant 0 : i32
    return %arg0, %c0_i32, %c0_i32_0, %c0_i32_1 : i32, i32, i32, i32
  }
  func.func @transform_1(%arg0: i32) -> (i32, i32) {
    %c0_i32 = arith.constant 0 : i32
    %c0_i32_0 = arith.constant 0 : i32
    %c0_i32_1 = arith.constant 0 : i32
    return %c0_i32, %c0_i32_0 : i32, i32
  }
  func.func @transform_2(%arg0: i32) -> (i32, i32) {
    %c0_i32 = arith.constant 0 : i32
    %c0_i32_0 = arith.constant 0 : i32
    %c0_i32_1 = arith.constant 0 : i32
    return %c0_i32, %c0_i32_0 : i32, i32
  }
  func.func @transform_3(%arg0: i32) -> (i32, i32) {
    %c0_i32 = arith.constant 0 : i32
    %c0_i32_0 = arith.constant 0 : i32
    %c0_i32_1 = arith.constant 0 : i32
    return %c0_i32, %c0_i32_0 : i32, i32
  }
  func.func @transform_4(%arg0: i32) -> (i32, i32) {
    %c0_i32 = arith.constant 0 : i32
    %c0_i32_0 = arith.constant 0 : i32
    %c0_i32_1 = arith.constant 0 : i32
    return %c0_i32, %c0_i32_0 : i32, i32
  }
  func.func @transform_5(%arg0: i32) -> (i32, i32) {
    %c0_i32 = arith.constant 0 : i32
    %c0_i32_0 = arith.constant 0 : i32
    %c0_i32_1 = arith.constant 0 : i32
    return %c0_i32, %c0_i32_0 : i32, i32
  }
  func.func @transform_6(%arg0: i32) -> (i32, i32) {
    %c0_i32 = arith.constant 0 : i32
    %c0_i32_0 = arith.constant 0 : i32
    %c0_i32_1 = arith.constant 0 : i32
    return %c0_i32, %c0_i32_0 : i32, i32
  }
  func.func @transform_7(%arg0: i32) -> (i32, i32, i32, i32) {
    %c0_i32 = arith.constant 0 : i32
    %c0_i32_0 = arith.constant 0 : i32
    %c0_i32_1 = arith.constant 0 : i32
    %c0_i32_2 = arith.constant 0 : i32
    return %arg0, %c0_i32, %c0_i32_0, %c0_i32_1 : i32, i32, i32, i32
  }
}

</mosaic_0001>

<bundles_post_ra>
// kernel: tpu_custom_call.1
= control target key start
LH: loop header
LB: loop body
LE: loop exit
PB: predicated region body
PF: predicated region fallthrough
CT: control target
= control target key end

     0   :  { %12 = vsyncpa [#allocation3], 0  ;;  %s8316_s0 = inlined_call_operand.hbm [shape: f32[2,16,16,128], index: 0, kind: input, shape index: {}]   ;;  %s8317_s1 = inlined_call_operand.vmem [shape: f32[1,128], index: 1, kind: input, shape index: {}]   ;;  %s8318_s2 = inlined_call_operand.vmem [shape: f32[1,128], index: 2, kind: input, shape index: {}]   ;;  %s8319_s3 = inlined_call_operand.hbm [shape: f32[1152,128], index: 3, kind: input, shape index: {}]   ;;  %s8320_s4 = inlined_call_operand.vmem [shape: f32[1,128], index: 4, kind: input, shape index: {}]   ;;  %s8321_s5 = inlined_call_operand.vmem [shape: f32[1,128], index: 5, kind: input, shape index: {}]   ;;  %s8322_s6 = inlined_call_operand.hbm [shape: f32[1152,128], index: 6, kind: input, shape index: {}]   ;;  %s8323_s7 = inlined_call_operand.hbm [shape: f32[2,16,16,128], index: 7, kind: output, shape index: {}]  }
   0x1   :  { %14 = vsyncpa [#allocation3 + $0x1], 0 }
   0x2   :  { %15 = vsyncpa [#allocation6], 0 }
   0x3   :  { %16 = vsyncpa [#allocation4], 0 }
   0x4   :  { %18 = vsyncpa [#allocation4 + $0x1], 0  ;;  %s5781_s24 = smov 0   ;;  %s5783_s25 = smov 0  }
   0x5   :  { %s5785_s26 = smov 0   ;;  %s5787_s27 = smov 0  }
   0x6 LB: > { %s5802_s28 = sadd.s32 4294967295, %s5729_s27   ;;  %s4144_s29 = sadd.s32 4294967294, %s5729_s27   ;;  %s5729_s27 = sphi %s5787_s27, %s8843_s27   ;;  %s5725_s26 = sphi %s5785_s26, %s8842_s26   ;;  %s5721_s25 = sphi %s5783_s25, %s8841_s25   ;;  %s5717_s24 = sphi %s5781_s24, %s8840_s24  }
   0x7   : > { %p44_p0 = scmp.ne.s32.totalorder %s5721_s25, %s5717_s24  ;;  %p8324_p1 = scmp.eq.s32.totalorder %s5802_s28, 0 }
   0x8   : > { %p200_p3 = scmp.eq.s32.totalorder %s4144_s29, 1  ;;  %p4145_p5 = scmp.ge.s32.totalorder %s5729_s27, 1 }
   0x9   : > { %p5811_p4 = por %p8324_p1, %p44_p0  ;;  %p207_p7 = scmp.lt.s32.totalorder %s5729_s27, 3 }
   0xa   : > { %p5816_p6 = por %p200_p3, %p44_p0  ;;  %s5731_s10 = smov [#allocation5]  }
   0xb   : > { %s8535_s30 = scalar_select %p5811_p4, 1, 0 }
   0xc   : > { %s8536_s8 = scalar_select %p5816_p6, 1, 0 }
   0xd   : > { %p5821_p8 = pnand %p4145_p5, %p207_p7  ;;  %s225_s11 = sshll.u32 %s5731_s10, 4  ;;  %s5825_s11 = int_to_ptr.vmem [resolvable:$true] %s225_s11 }
   0xe   : > { %s5732_s13 = smov [#allocation7]   ;;  %s5573_s17 = scalar_lea.hbm %s8319_s3, 18432 }
   0xf   : > { %p5476_p9 = pneg %p5821_p8  ;;  %s244_s14 = sshll.u32 %s5732_s13, 4  ;;  %s5836_s14 = int_to_ptr.vmem [resolvable:$true] %s244_s14 }
  0x10   : > { %p5574_p12 = scmp.ne.s32.totalorder %s8319_s3, %s5573_s17  ;;  %p5580_p5 = scmp.lt.u32.totalorder %s5573_s17, %s8319_s3 }
  0x11   : > { %p5832_p11 = pnand %p5476_p9, %p8324_p1 }
  0x13   : > { %p5575_p13 = pneg %p5832_p11 }
  0x15   : > { %p5576_p0 = pnand %p5575_p13, %p5574_p12 }
  0x17   : > { %p5577_p3 = pneg %p5576_p0 }
  0x19   : > { %p5582_p7 = pnand %p5580_p5, %p5577_p3 }
  0x1b   : > { %5585 = shalt.err (!%p5582_p7)
}
  0x1c   : > { %s5586_s22 = scalar_lea.vmem %s5825_s11, 18432  ;;  %p5594_p2 = scmp.lt.s32.totalorder %s5825_s11, %s5825_s11 }
  0x1d   : > { %p5587_p9 = scmp.ne.s32.totalorder %s5825_s11, %s5586_s22  ;;  %p5595_p12 = scmp.lt.s32.totalorder %s5586_s22, %s5586_s22 }
  0x1f   : > { %p5589_p10 = pnand %p5587_p9, %p5575_p13  ;;  %p5596_p0 = por %p5595_p12, %p5594_p2 }
  0x21   : > { %p5590_p1 = pneg %p5589_p10 }
  0x23   : > { %p5597_p6 = pnand %p5596_p0, %p5590_p1 }
  0x25   : > { %5600 = shalt.err (!%p5597_p6)
}
  0x26   : > { %s8325_s23 = smov 128   ;;  %s5734_s29 = smov 8  }
  0x27   : > { %5479 = dma.hbm_to_vmem [thread:$0]  (!%p5832_p11), %s8319_s3, 18432, %s5825_s11, [#allocation6], %s8325_s23, %s8325_s23, %s5734_s29  }
  0x28   : > { %s5601_s17 = scalar_lea.hbm %s8322_s6, 18432 }
  0x29   : > { %p5602_p1 = scmp.ne.s32.totalorder %s8322_s6, %s5601_s17  ;;  %p5608_p10 = scmp.lt.u32.totalorder %s5601_s17, %s8322_s6 }
  0x2b   : > { %p5604_p2 = pnand %p5602_p1, %p5575_p13 }
  0x2d   : > { %p5605_p6 = pneg %p5604_p2 }
  0x2f   : > { %p5610_p3 = pnand %p5608_p10, %p5605_p6 }
  0x31   : > { %5613 = shalt.err (!%p5610_p3)
}
  0x32   : > { %s5614_s11 = scalar_lea.vmem %s5836_s14, 18432  ;;  %p5622_p12 = scmp.lt.s32.totalorder %s5836_s14, %s5836_s14 }
  0x33   : > { %p5615_p5 = scmp.ne.s32.totalorder %s5836_s14, %s5614_s11  ;;  %p5623_p0 = scmp.lt.s32.totalorder %s5614_s11, %s5614_s11 }
  0x35   : > { %p5617_p7 = pnand %p5615_p5, %p5575_p13  ;;  %p5624_p1 = por %p5623_p0, %p5622_p12 }
  0x37   : > { %p5618_p9 = pneg %p5617_p7 }
  0x39   : > { %p5625_p2 = pnand %p5624_p1, %p5618_p9 }
  0x3b   : > { %5628 = shalt.err (!%p5625_p2)
}
  0x3c   : > { %5482 = dma.hbm_to_vmem [thread:$0]  (!%p5832_p11), %s8322_s6, 18432, %s5836_s14, [#allocation6], %s8325_s23, %s8325_s23, %s5734_s29  }
  0x3d   : > { %s5897_s12 = sadd.s32 1, %s5729_s27   ;;  %s31_s13 = sadd.s32 1, %s5725_s26 }
  0x3e   : > { %s28_s15 = ssub.s32 %s5729_s27, %s5897_s12  ;;  %p38_p13 = scmp.ne.s32.totalorder %s5725_s26, %s5721_s25 }
  0x3f   : > { %p29_p6 = scmp.eq.s32.totalorder %s28_s15, 0  ;;  %p39_p10 = scmp.eq.s32.totalorder %s5729_s27, 0 }
  0x40   : > { %p8539_p3 = scmp.eq.s32.totalorder %s5802_s28, 1  ;;  %p5493_p7 = scmp.lt.s32.totalorder %s5729_s27, 2 }
  0x41   : > { %s5913_s17 = scalar_select %p29_p6, %s5725_s26, %s31_s13  }
  0x42   : > { %p5907_p5 = por %p8539_p3, %p38_p13  ;;  %p40_p9 = por %p39_p10, %p38_p13 }
  0x43   : > { %s258_s18 = sand.u32 1, %s5725_s26   ;;  %s4358_s14 = sshll.u32 %s5729_s27, 12 }
  0x44   : > { %s8540_s16 = scalar_select %p5907_p5, 1, 0 }
  0x45   : > { %s4149_s19 = sshll.u32 %s258_s18, 8  ;;  %s5920_s11 = scalar_lea.hbm %s8316_s0, %s4358_s14 }
  0x46   : > { %s262_s22 = scalar_lea.vmem [#allocation2], %s4149_s19  ;;  %p5924_p11 = pnand %p5493_p7, %p40_p9 }
  0x47   : > { %s269_s10 = sshll.u32 %s262_s22, 4  ;;  %s5928_s15 = scalar_lea.sflag [#allocation3], %s258_s18  ;;  %s5922_s10 = int_to_ptr.vmem [resolvable:$true] %s269_s10 }
  0x48   : > { %s5629_s23 = scalar_lea.hbm %s5920_s11, 4096  ;;  %p5631_p0 = pneg %p5924_p11 }
  0x49   : > { %p5630_p12 = scmp.ne.s32.totalorder %s5920_s11, %s5629_s23  ;;  %s5634_s20 = scalar_lea.hbm %s8316_s0, 8192 }
  0x4a   : > { %p5635_p13 = scmp.lt.u32.totalorder %s5920_s11, %s8316_s0  ;;  %p5636_p6 = scmp.lt.u32.totalorder %s5634_s20, %s5629_s23 }
  0x4b   : > { %p5632_p1 = pnand %p5631_p0, %p5630_p12  ;;  %p5638_p3 = scmp.lt.u32.totalorder %s5629_s23, %s5920_s11 }
  0x4c   : > { %p5637_p10 = por %p5636_p6, %p5635_p13 }
  0x4d   : > { %p5633_p2 = pneg %p5632_p1 }
  0x4e   : > { %p5639_p7 = por %p5638_p3, %p5637_p10 }
  0x50   : > { %p5640_p9 = pnand %p5639_p7, %p5633_p2 }
  0x52   : > { %5643 = shalt.err (!%p5640_p9)
}
  0x53   : > { %s5644_s18 = scalar_lea.vmem %s5922_s10, 4096  ;;  %s5735_s19 = smov [#allocation2]  }
  0x54   : > { %p5645_p12 = scmp.ne.s32.totalorder %s5922_s10, %s5644_s18  ;;  %s5649_s14 = sshll.u32 %s5735_s19, 4  ;;  %s5650_s14 = int_to_ptr.vmem [resolvable:$false] %s5649_s14 }
  0x55   : > { %s5651_s21 = scalar_lea.vmem %s5650_s14, 8192  ;;  %p5652_p4 = scmp.lt.s32.totalorder %s5922_s10, %s5650_s14 }
  0x56   : > { %p5647_p1 = pnand %p5645_p12, %p5631_p0  ;;  %p5653_p13 = scmp.lt.s32.totalorder %s5651_s21, %s5644_s18 }
  0x58   : > { %p5648_p5 = pneg %p5647_p1  ;;  %p5654_p6 = por %p5653_p13, %p5652_p4 }
  0x5a   : > { %p5655_p10 = pnand %p5654_p6, %p5648_p5 }
  0x5c   : > { %5658 = shalt.err (!%p5655_p10)
}
  0x5d   : > { %s8542_s23 = smov 128   ;;  %281 = sbr.rel (%p5821_p8) target bundleno = 1536 (0x600), region = 48 }
  0x5e   : > { %5486 = dma.hbm_to_vmem [thread:$0]  (!%p5924_p11), %s5920_s11, 4096, %s5922_s10, %s5928_s15, %s8542_s23, %s8542_s23, %s5734_s29  }
  0x64   : > { %s5962_s20 = sand.u32 1, %s5721_s25   ;;  %p8543_p4 = scmp.ne.s32.totalorder %s8535_s30, 0 }
  0x65   : > { %s4153_s22 = sshll.u32 %s5962_s20, 8  ;;  %s284_s18 = scalar_lea.sflag [#allocation3], %s5962_s20 }
  0x66   : > { %s5968_s13 = scalar_lea.vmem [#allocation2], %s4153_s22 }
  0x67   : > { %5704 = dma.done.wait (%p8543_p4), %s284_s18, 4096  }
  0x68   : > { %5706 = vsyncadd (%p8543_p4), %s284_s18, 4294963200  ;;  %p8544_p5 = scmp.eq.s32.totalorder %s5802_s28, 0 }
  0x6a   : > { %5708 = dma.done.wait (%p8544_p5), [#allocation6], 36864   ;;  %p8545_p8 = pmov %p8544_p5 }
  0x6b   : > { %vm501_vm0 = vcmask 1040384   ;;  %v8328_v0 = vmov 0.0|0.0   ;;  %v5737_v1 = vmov 0.0   ;;  %vm668_vm1 = vcmask 1046528   ;;  %v910_v7 = vld [vmem:[#allocation5] sm:$0xff]  ;;  %v911_v8 = vld [vmem:[#allocation5 + $0x8] sm:$0xff] }
  0x6c   : > { %5710 = vsyncadd (%p8545_p8), [#allocation6], 4294930432  ;;  %4616 = vmatprep.subr.bf16.mxu0 %v8328_v0  ;;  %v5979_v2 = vrot.slane %v5737_v1, 7  ;;  %v912_v9 = vld [vmem:[#allocation5 + $0x10] sm:$0xff]  ;;  %v4617_v10 = vpack.c.bf16 %v911_v8, %v910_v7  ;;  %v913_v11 = vld [vmem:[#allocation5 + $0x18] sm:$0xff]  ;;  %vm781_vm3 = vcmask 1045504  }
  0x6d   : > { %v4620_v12 = vpack.c.bf16 %v913_v11, %v912_v9  ;;  %v914_v13 = vld [vmem:[#allocation5 + $0x20] sm:$0xff]  ;;  %v915_v14 = vld [vmem:[#allocation5 + $0x28] sm:$0xff]  ;;  %v916_v16 = vld [vmem:[#allocation5 + $0x30] sm:$0xff]  ;;  %s8177_s15 = scalar_lea.vmem [#allocation8], %s4153_s22  ;;  %s4359_s22 = sshll.u32 %s5802_s28, 12 }
  0x6e   : > { %8546 = vst [vmem:[#allocation12_spill] sm:$0xff] %v5979_v2  ;;  %v5983_v3 = vsel %vm501_vm0, 0.0, %v5979_v2  ;;  %v670_v4 = vrot.slane %v5979_v2, 1  ;;  %4618 = vmatpush1.bf16.msra.mxu0 %v4617_v10  ;;  %v4623_v15 = vpack.c.bf16 %v915_v14, %v914_v13  ;;  %v917_v17 = vld [vmem:[#allocation5 + $0x38] sm:$0xff]  ;;  %v918_v19 = vld [vmem:[#allocation5 + $0x40] sm:$0xff]  ;;  %v919_v20 = vld [vmem:[#allocation5 + $0x48] sm:$0xff]  ;;  %s8267_s23 = scalar_lea.hbm %s8323_s7, %s4359_s22 }
  0x6f   : > { %v669_v5 = vrot.slane %v5983_v3, 1  ;;  %4619 = vmatprep.subr.bf16.mxu0 %v8328_v0  ;;  %v4626_v18 = vpack.c.bf16 %v917_v17, %v916_v16  ;;  %v4629_v21 = vpack.c.bf16 %v919_v20, %v918_v19  ;;  %v920_v22 = vld [vmem:[#allocation5 + $0x50] sm:$0xff]  ;;  %v921_v23 = vld [vmem:[#allocation5 + $0x58] sm:$0xff]  ;;  %v922_v25 = vld [vmem:[#allocation5 + $0x60] sm:$0xff]  ;;  %v6029_v9 = vsel %vm501_vm0, %v5979_v2, 0.0  ;;  %s4052_s19 = sshll.u32 %s8177_s15, 4  ;;  %s8269_s19 = int_to_ptr.vmem [resolvable:$true] %s4052_s19 }
  0x70   : > { %v4632_v24 = vpack.c.bf16 %v921_v23, %v920_v22  ;;  %v923_v26 = vld [vmem:[#allocation5 + $0x68] sm:$0xff]  ;;  %v924_v28 = vld [vmem:[#allocation5 + $0x70] sm:$0xff]  ;;  %v925_v29 = vld [vmem:[#allocation5 + $0x78] sm:$0xff]  ;;  %v672_v17 = vrot.slane %v6029_v9, 1  ;;  %s4039_s28 = scalar_lea.sflag [#allocation4], %s5962_s20  ;;  %s5659_s18 = scalar_lea.vmem %s8269_s19, 4096 }
  0x71   : > { %v5990_v6 = vsel %vm668_vm1, %v669_v5, %v670_v4  ;;  %v4635_v27 = vpack.c.bf16 %v923_v26, %v922_v25  ;;  %v4638_v30 = vpack.c.bf16 %v925_v29, %v924_v28  ;;  %v926_v31 = vld [vmem:[#allocation5 + $0x80] sm:$0xff]  ;;  %v927_v32 = vld [vmem:[#allocation5 + $0x88] sm:$0xff]  ;;  %v928_v34 = vld [vmem:[#allocation5 + $0x90] sm:$0xff]  ;;  %p5660_p11 = scmp.ne.s32.totalorder %s8269_s19, %s5659_s18  ;;  %p8837_p0 = scmp.ne.s32.totalorder %s8540_s16, 0 }
  0x72   : > { %8547 = vst [vmem:[#allocation13_spill] sm:$0xff] %v5990_v6  ;;  %1118 = vmatprep.mubr.f32.mxu0 %v5990_v6  ;;  %4621 = vmatpush1.bf16.msra.mxu0 %v4620_v12  ;;  %v4641_v33 = vpack.c.bf16 %v927_v32, %v926_v31  ;;  %v929_v35 = vld [vmem:[#allocation5 + $0x98] sm:$0xff]  ;;  %v930_v37 = vld [vmem:[#allocation5 + $0xa0] sm:$0xff]  ;;  %v931_v38 = vld [vmem:[#allocation5 + $0xa8] sm:$0xff]  ;;  %v6057_v28 = vsel %vm668_vm1, %v670_v4, %v672_v17  ;;  %s5738_s30 = smov [#allocation8]  }
  0x73   : > { %4622 = vmatprep.subr.bf16.mxu0 %v8328_v0  ;;  %v4644_v36 = vpack.c.bf16 %v929_v35, %v928_v34  ;;  %v4647_v39 = vpack.c.bf16 %v931_v38, %v930_v37  ;;  %v932_v40 = vld [vmem:[#allocation5 + $0xb0] sm:$0xff]  ;;  %v933_v41 = vld [vmem:[#allocation5 + $0xb8] sm:$0xff]  ;;  %v326_v42 = vld [vmem:[%s5968_s13] sm:$0xff]  ;;  %8550 = vst [vmem:[#allocation14_spill] sm:$0xff] %v6057_v28  ;;  %p5661_p2 = pnand %p5660_p11, %p8837_p0  ;;  %s5663_s9 = sshll.u32 %s5738_s30, 4  ;;  %s5664_s9 = int_to_ptr.vmem [resolvable:$false] %s5663_s9 }
  0x74   : > { %v327_v43 = vld [vmem:[%s5968_s13 + $0x8] sm:$0xff]  ;;  %v6008_v44 = vld [vmem:[%s8317_s1] ss:$0 sm:$0xff]  ;;  %v4650_v45 = vpack.c.bf16 %v933_v41, %v932_v40  ;;  %v936_v52 = vld [vmem:[#allocation5 + $0xd0] sm:$0xff]  ;;  %s5665_s29 = scalar_lea.vmem %s5664_s9, 8192  ;;  %p5666_p7 = scmp.lt.s32.totalorder %s8269_s19, %s5664_s9 }
  0x75   : > { %v934_v46 = vld [vmem:[#allocation5 + $0xc0] sm:$0xff]  ;;  %v935_v47 = vld [vmem:[#allocation5 + $0xc8] sm:$0xff]  ;;  %v365_v48 = vmul.f32 %v6008_v44, %v326_v42  ;;  %v366_v49 = vmul.f32 %v6008_v44, %v327_v43  ;;  %v937_v53 = vld [vmem:[#allocation5 + $0xd8] sm:$0xff]  ;;  %p5662_p3 = pneg %p5661_p2  ;;  %p5667_p9 = scmp.lt.s32.totalorder %s5665_s29, %s5659_s18 }
  0x76   : > { %4624 = vmatpush1.bf16.msra.mxu0 %v4623_v15  ;;  %v6016_v50 = vld [vmem:[%s8318_s2] ss:$0 sm:$0xff]  ;;  %v4653_v51 = vpack.c.bf16 %v935_v47, %v934_v46  ;;  %v328_v56 = vld [vmem:[%s5968_s13 + $0x10] sm:$0xff]  ;;  %v329_v57 = vld [vmem:[%s5968_s13 + $0x18] sm:$0xff]  ;;  %v4656_v58 = vpack.c.bf16 %v937_v53, %v936_v52 }
  0x77   : > { %4625 = vmatprep.subr.bf16.mxu0 %v8328_v0  ;;  %v404_v54 = vadd.f32 %v6016_v50, %v365_v48  ;;  %v405_v55 = vadd.f32 %v6016_v50, %v366_v49  ;;  %v938_v59 = vld [vmem:[#allocation5 + $0xe0] sm:$0xff]  ;;  %v939_v60 = vld [vmem:[#allocation5 + $0xe8] sm:$0xff]  ;;  %v367_v61 = vmul.f32 %v6008_v44, %v328_v56  ;;  %v368_v62 = vmul.f32 %v6008_v44, %v329_v57  ;;  %v940_v7 = vld [vmem:[#allocation5 + $0xf0] sm:$0xff]  ;;  %p5668_p12 = por %p5667_p9, %p5666_p7 }
  0x78   : > { %v4659_v5 = vpack.c.bf16 %v939_v60, %v938_v59  ;;  %v941_v8 = vld [vmem:[#allocation5 + $0xf8] sm:$0xff]  ;;  %v330_v12 = vld [vmem:[%s5968_s13 + $0x20] sm:$0xff]  ;;  %v331_v13 = vld [vmem:[%s5968_s13 + $0x28] sm:$0xff] }
  0x79   : > { %v436_v63 = vmax.f32 %v404_v54, 0.0  ;;  %v437_v1 = vmax.f32 %v405_v55, 0.0  ;;  %v406_v10 = vadd.f32 %v6016_v50, %v367_v61  ;;  %v407_v11 = vadd.f32 %v6016_v50, %v368_v62  ;;  %v942_v20 = vld [vmem:[#allocation5 + $0x100] sm:$0xff]  ;;  %vm6050_vm2 = vmneg %vm501_vm0  ;;  %v944_v29 = vld [vmem:[#allocation5 + $0x110] sm:$0xff]  ;;  %p5669_p1 = pnand %p5668_p12, %p5662_p3 }
  0x7a   : > { %4627 = vmatpush1.bf16.msra.mxu0 %v4626_v18  ;;  %v4662_v16 = vpack.c.bf16 %v941_v8, %v940_v7  ;;  %v369_v18 = vmul.f32 %v6008_v44, %v330_v12  ;;  %v370_v19 = vmul.f32 %v6008_v44, %v331_v13  ;;  %v945_v34 = vld [vmem:[#allocation5 + $0x118] sm:$0xff]  ;;  %v332_v37 = vld [vmem:[%s5968_s13 + $0x30] sm:$0xff]  ;;  %v946_v46 = vld [vmem:[#allocation5 + $0x120] sm:$0xff] }
  0x7b   : > { %4628 = vmatprep.subr.bf16.mxu0 %v8328_v0  ;;  %v6035_v14 = vrot.slane %v436_v63, 7  ;;  %v505_v15 = vrot.slane %v437_v1, 7  ;;  %v438_v22 = vmax.f32 %v406_v10, 0.0  ;;  %v439_v23 = vmax.f32 %v407_v11, 0.0  ;;  %v333_v4 = vld [vmem:[%s5968_s13 + $0x38] sm:$0xff]  ;;  %v947_v47 = vld [vmem:[#allocation5 + $0x128] sm:$0xff] }
  0x7c   : > { %v409_v31 = vadd.f32 %v6016_v50, %v370_v19  ;;  %v371_v41 = vmul.f32 %v6008_v44, %v332_v37  ;;  %v4671_v53 = vpack.c.bf16 %v947_v47, %v946_v46  ;;  %v948_v60 = vld [vmem:[#allocation5 + $0x130] sm:$0xff]  ;;  %v949_v61 = vld [vmem:[#allocation5 + $0x138] sm:$0xff]  ;;  %v334_v63 = vld [vmem:[%s5968_s13 + $0x40] sm:$0xff] }
  0x7d   : > { %v6047_v25 = vsel %vm501_vm0, 0.0, %v6035_v14  ;;  %v6064_v35 = vrot.slane %v438_v22, 7  ;;  %v6068_v38 = vsel %vm501_vm0, %v505_v15, 0.0  ;;  %v335_v1 = vld [vmem:[%s5968_s13 + $0x48] sm:$0xff]  ;;  %v4674_v7 = vpack.c.bf16 %v949_v61, %v948_v60  ;;  %v950_v12 = vld [vmem:[#allocation5 + $0x140] sm:$0xff]  ;;  %v336_v37 = vld [vmem:[%s5968_s13 + $0x50] sm:$0xff] }
  0x7e   : > { %4630 = vmatpush1.bf16.msra.mxu0 %v4629_v21  ;;  %v943_v21 = vld [vmem:[#allocation5 + $0x108] sm:$0xff]  ;;  %v674_v32 = vrot.slane %v6047_v25, 1  ;;  %v677_v43 = vrot.slane %v6068_v38, 1  ;;  %v441_v48 = vmax.f32 %v409_v31, 0.0  ;;  %v410_v55 = vadd.f32 %v6016_v50, %v371_v41  ;;  %v952_v31 = vld [vmem:[#allocation5 + $0x150] sm:$0xff] }
  0x7f   : > { %4631 = vmatprep.subr.bf16.mxu0 %v8328_v0  ;;  %v604_v49 = vsel %vm501_vm0, 0.0, %v6064_v35  ;;  %v951_v13 = vld [vmem:[#allocation5 + $0x148] sm:$0xff]  ;;  %v373_v17 = vmul.f32 %v6008_v44, %v334_v63 }
  0x80   : > { %v679_v57 = vrot.slane %v604_v49, 1  ;;  %v511_v59 = vrot.slane %v441_v48, 7  ;;  %v442_v11 = vmax.f32 %v410_v55, 0.0  ;;  %v792_v22 = vrot.slane %v604_v49, 2 }
  0x81   : > { %v375_v48 = vmul.f32 %v6008_v44, %v336_v37 }
  0x82   : > { %4633 = vmatpush1.bf16.msra.mxu0 %v4632_v24  ;;  %v6043_v24 = vsel %vm501_vm0, %v6035_v14, %v505_v15  ;;  %v6122_v19 = vsel %vm501_vm0, %v511_v59, 0.0 }
  0x83   : > { %4634 = vmatprep.subr.bf16.mxu0 %v8328_v0 }
  0x86   : > { %4636 = vmatpush1.bf16.msra.mxu0 %v4635_v27  ;;  %v4665_v27 = vpack.c.bf16 %v943_v21, %v942_v20  ;;  %v4677_v21 = vpack.c.bf16 %v951_v13, %v950_v12  ;;  %v414_v13 = vadd.f32 %v6016_v50, %v375_v48 }
  0x87   : > { %4637 = vmatprep.subr.bf16.mxu0 %v8328_v0 }
  0x8a   : > { %4639 = vmatpush1.bf16.msra.mxu0 %v4638_v30  ;;  %v408_v30 = vadd.f32 %v6016_v50, %v369_v18  ;;  %v374_v18 = vmul.f32 %v6008_v44, %v335_v1  ;;  %v338_v1 = vld [vmem:[%s5968_s13 + $0x60] sm:$0xff] }
  0x8b   : > { %4640 = vmatprep.subr.bf16.mxu0 %v8328_v0 }
  0x8c   : > { %v440_v40 = vmax.f32 %v408_v30, 0.0  ;;  %v6131_v30 = vrot.slane %v442_v11, 7 }
  0x8e   : > { %4642 = vmatpush1.bf16.msra.mxu0 %v4641_v33  ;;  %v675_v33 = vrot.slane %v6043_v24, 1  ;;  %v6091_v54 = vrot.slane %v440_v40, 7  ;;  %v687_v40 = vrot.slane %v6122_v19, 1  ;;  %v6152_v47 = vsel %vm501_vm0, 0.0, %v6131_v30 }
  0x8f   : > { %4643 = vmatprep.subr.bf16.mxu0 %v8328_v0  ;;  %v689_v61 = vrot.slane %v6152_v47, 1 }
  0x90   : > { %v6077_v42 = vsel %vm668_vm1, %v674_v32, %v675_v33  ;;  %v6095_v56 = vsel %vm668_vm1, %v675_v33, %v677_v43  ;;  %v6111_v10 = vsel %vm501_vm0, %v6091_v54, %v511_v59  ;;  %v6116_v15 = vsel %vm501_vm0, 0.0, %v6091_v54  ;;  %v953_v32 = vld [vmem:[#allocation5 + $0x158] sm:$0xff] }
  0x91   : > { %8551 = vst [vmem:[#allocation15_spill] sm:$0xff] %v6077_v42  ;;  %8552 = vst [vmem:[#allocation16_spill] sm:$0xff] %v6095_v56  ;;  %v4680_v41 = vpack.c.bf16 %v953_v32, %v952_v31  ;;  %v959_v31 = vld [vmem:[#allocation5 + $0x188] sm:$0xff] }
  0x92   : > { %4645 = vmatpush1.bf16.msra.mxu0 %v4644_v36  ;;  %v508_v36 = vrot.slane %v439_v23, 7 }
  0x93   : > { %4646 = vmatprep.subr.bf16.mxu0 %v8328_v0 }
  0x96   : > { %4648 = vmatpush1.bf16.msra.mxu0 %v4647_v39  ;;  %v4668_v39 = vpack.c.bf16 %v945_v34, %v944_v29  ;;  %v685_v29 = vrot.slane %v6111_v10, 1  ;;  %v412_v34 = vadd.f32 %v6016_v50, %v373_v17  ;;  %v339_v17 = vld [vmem:[%s5968_s13 + $0x68] sm:$0xff] }
  0x97   : > { %4649 = vmatprep.subr.bf16.mxu0 %v8328_v0 }
  0x98   : > { %v444_v55 = vmax.f32 %v412_v34, 0.0  ;;  %v6167_v60 = vsel %vm668_vm1, %v685_v29, %v687_v40  ;;  %v446_v34 = vmax.f32 %v414_v13, 0.0  ;;  %v962_v13 = vld [vmem:[#allocation5 + $0x1a0] sm:$0xff] }
  0x99   : > { %8556 = vst [vmem:[#allocation20_spill] sm:$0xff] %v6167_v60 }
  0x9a   : > { %4651 = vmatpush1.bf16.msra.mxu0 %v4650_v45  ;;  %v6083_v45 = vsel %vm501_vm0, %v6064_v35, %v508_v36  ;;  %v6176_v11 = vrot.slane %v444_v55, 7  ;;  %v6213_v55 = vrot.slane %v446_v34, 7 }
  0x9b   : > { %4652 = vmatprep.subr.bf16.mxu0 %v8328_v0  ;;  %v680_v52 = vrot.slane %v6083_v45, 1  ;;  %v793_v23 = vrot.slane %v6083_v45, 2 }
  0x9d   : > { %v6107_v8 = vsel %vm668_vm1, %v679_v57, %v680_v52 }
  0x9e   : > { %4654 = vmatpush1.bf16.msra.mxu0 %v4653_v51  ;;  %v372_v51 = vmul.f32 %v6008_v44, %v333_v4  ;;  %8553 = vst [vmem:[#allocation17_spill] sm:$0xff] %v6107_v8  ;;  %v337_v4 = vld [vmem:[%s5968_s13 + $0x58] sm:$0xff] }
  0x9f   : > { %4655 = vmatprep.subr.bf16.mxu0 %v8328_v0  ;;  %v376_v49 = vmul.f32 %v6008_v44, %v337_v4 }
  0xa0   : > { %v411_v62 = vadd.f32 %v6016_v50, %v372_v51  ;;  %v954_v51 = vld [vmem:[#allocation5 + $0x160] sm:$0xff] }
  0xa2   : > { %4657 = vmatpush1.bf16.msra.mxu0 %v4656_v58  ;;  %v621_v58 = vsel %vm501_vm0, %v508_v36, 0.0  ;;  %v413_v36 = vadd.f32 %v6016_v50, %v374_v18 }
  0xa3   : > { %4658 = vmatprep.subr.bf16.mxu0 %v8328_v0  ;;  %v795_v43 = vrot.slane %v621_v58, 2 }
  0xa4   : > { %v445_v57 = vmax.f32 %v413_v36, 0.0 }
  0xa6   : > { %4660 = vmatpush1.bf16.msra.mxu0 %v4659_v5  ;;  %v682_v5 = vrot.slane %v621_v58, 1  ;;  %v6162_v58 = vsel %vm781_vm3, %v793_v23, %v795_v43  ;;  %v517_v12 = vrot.slane %v445_v57, 7 }
  0xa7   : > { %4661 = vmatprep.subr.bf16.mxu0 %v8328_v0 }
  0xa8   : > { %v6126_v20 = vsel %vm668_vm1, %v680_v52, %v682_v5  ;;  %v955_v52 = vld [vmem:[#allocation5 + $0x168] sm:$0xff]  ;;  %v956_v5 = vld [vmem:[#allocation5 + $0x170] sm:$0xff]  ;;  %v6194_v32 = vsel %vm501_vm0, %v6176_v11, %v517_v12  ;;  %v6209_v48 = vsel %vm501_vm0, %v517_v12, 0.0 }
  0xa9   : > { %8554 = vst [vmem:[#allocation18_spill] sm:$0xff] %v6126_v20  ;;  %v4683_v59 = vpack.c.bf16 %v955_v52, %v954_v51  ;;  %v695_v43 = vrot.slane %v6194_v32, 1  ;;  %v960_v51 = vld [vmem:[#allocation5 + $0x190] sm:$0xff]  ;;  %v961_v52 = vld [vmem:[#allocation5 + $0x198] sm:$0xff] }
  0xaa   : > { %4663 = vmatpush1.bf16.msra.mxu0 %v4662_v16  ;;  %v443_v16 = vmax.f32 %v411_v62, 0.0 }
  0xab   : > { %4664 = vmatprep.subr.bf16.mxu0 %v8328_v0 }
  0xac   : > { %v514_v33 = vrot.slane %v443_v16, 7  ;;  %v415_v16 = vadd.f32 %v6016_v50, %v376_v49 }
  0xad   : > { %4160 = vmatmul.mubr.msk.f32.vlgmr.msra.gmra.mrb[0].mxu0 %vm6050_vm2, %v5979_v2 }
  0xae   : > { %4666 = vmatpush1.bf16.msra.mxu0 %v4665_v27  ;;  %1123 = vmatprep.mubr.f32.mxu0 %v6057_v28  ;;  %v684_v27 = vrot.slane %v6116_v15, 1  ;;  %v6172_v63 = vsel %vm501_vm0, %v514_v33, 0.0  ;;  %v447_v36 = vmax.f32 %v415_v16, 0.0  ;;  %v963_v16 = vld [vmem:[#allocation5 + $0x1a8] sm:$0xff]  ;;  %v969_v28 = vld [vmem:[#allocation5 + $0x1d8] sm:$0xff] }
  0xaf   : > { %4667 = vmatprep.subr.bf16.mxu0 %v8328_v0  ;;  %v692_v18 = vrot.slane %v6172_v63, 1 }
  0xb0   : > { %v6148_v46 = vsel %vm668_vm1, %v684_v27, %v685_v29  ;;  %v378_v27 = vmul.f32 %v6008_v44, %v339_v17  ;;  %v958_v29 = vld [vmem:[#allocation5 + $0x180] sm:$0xff]  ;;  %v520_v57 = vrot.slane %v447_v36, 7 }
  0xb1   : > { %1124 = vmatmul.mubr.f32.gmra.mrb[2].mxu0 %v5979_v2  ;;  %8555 = vst [vmem:[#allocation19_spill] sm:$0xff] %v6148_v46  ;;  %v4689_v40 = vpack.c.bf16 %v959_v31, %v958_v29  ;;  %v4695_v29 = vpack.c.bf16 %v963_v16, %v962_v13  ;;  %v967_v13 = vld [vmem:[#allocation5 + $0x1c8] sm:$0xff] }
  0xb2   : > { %1128 = vmatprep.mubr.f32.mxu0 %v6077_v42  ;;  %4669 = vmatpush1.bf16.msra.mxu0 %v4668_v39  ;;  %v6139_v39 = vsel %vm781_vm3, %v792_v22, %v793_v23  ;;  %v417_v49 = vadd.f32 %v6016_v50, %v378_v27  ;;  %v6228_v17 = vsel %vm501_vm0, %v6213_v55, %v520_v57 }
  0xb3   : > { %4670 = vmatprep.subr.bf16.mxu0 %v8328_v0  ;;  %4488 = vmatprep.mubr.f32.mxu1 %v6139_v39  ;;  %v700_v34 = vrot.slane %v6228_v17, 1 }
  0xb4   : > { %v449_v12 = vmax.f32 %v417_v49, 0.0  ;;  %v6247_v49 = vsel %vm501_vm0, %v520_v57, 0.0 }
  0xb5   : > { %4162 = vmatmul.mubr.msk.f32.gmra.mrb[4].mxu0 %vm6050_vm2, %v6035_v14  ;;  %v702_v57 = vrot.slane %v6247_v49, 1 }
  0xb6   : > { %1133 = vmatprep.mubr.f32.mxu0 %v6095_v56  ;;  %4672 = vmatpush1.bf16.msra.mxu0 %v4671_v53  ;;  %v6159_v53 = vsel %vm501_vm0, %v6131_v30, %v514_v33  ;;  %v6198_v33 = vsel %vm501_vm0, 0.0, %v6176_v11  ;;  %v350_v56 = vld [vmem:[%s5968_s13 + $0xc0] sm:$0xff] }
  0xb7   : > { %4673 = vmatprep.subr.bf16.mxu0 %v8328_v0  ;;  %v690_v62 = vrot.slane %v6159_v53, 1 }
  0xb9   : > { %1134 = vmatmul.mubr.f32.gmra.mrb[6].mxu0 %v6043_v24  ;;  %v6188_v23 = vsel %vm668_vm1, %v689_v61, %v690_v62  ;;  %v6203_v37 = vsel %vm668_vm1, %v690_v62, %v692_v18  ;;  %v341_v61 = vld [vmem:[%s5968_s13 + $0x78] sm:$0xff]  ;;  %v697_v62 = vrot.slane %v6209_v48, 1  ;;  %v6232_v18 = vsel %vm501_vm0, 0.0, %v6213_v55 }
  0xba   : > { %1138 = vmatprep.mubr.f32.mxu0 %v6107_v8  ;;  %4675 = vmatpush1.bf16.msra.mxu0 %v4674_v7  ;;  %v957_v7 = vld [vmem:[#allocation5 + $0x178] sm:$0xff]  ;;  %8557 = vst [vmem:[#allocation21_spill] sm:$0xff] %v6188_v23  ;;  %8558 = vst [vmem:[#allocation22_spill] sm:$0xff] %v6203_v37  ;;  %v699_v31 = vrot.slane %v6232_v18, 1 }
  0xbb   : > { %4676 = vmatprep.subr.bf16.mxu0 %v8328_v0  ;;  %v4686_v22 = vpack.c.bf16 %v957_v7, %v956_v5  ;;  %v6239_v27 = vsel %vm668_vm1, %v695_v43, %v697_v62 }
  0xbc   : > { %8560 = vst [vmem:[#allocation24_spill] sm:$0xff] %v6239_v27  ;;  %v6258_v62 = vsel %vm668_vm1, %v699_v31, %v700_v34 }
  0xbd   : > { %4164 = vmatmul.mubr.msk.f32.gmra.mrb[8].mxu0 %vm6050_vm2, %v6064_v35  ;;  %8561 = vst [vmem:[#allocation25_spill] sm:$0xff] %v6258_v62 }
  0xbe   : > { %1143 = vmatprep.mubr.f32.mxu0 %v6126_v20  ;;  %4678 = vmatpush1.bf16.msra.mxu0 %v4677_v21  ;;  %v377_v21 = vmul.f32 %v6008_v44, %v338_v1  ;;  %v4692_v1 = vpack.c.bf16 %v961_v52, %v960_v51  ;;  %v342_v52 = vld [vmem:[%s5968_s13 + $0x80] sm:$0xff] }
  0xbf   : > { %4679 = vmatprep.subr.bf16.mxu0 %v8328_v0 }
  0xc0   : > { %v416_v4 = vadd.f32 %v6016_v50, %v377_v21 }
  0xc1   : > { %1144 = vmatmul.mubr.f32.gmra.mrb[10].mxu0 %v6083_v45 }
  0xc2   : > { %1148 = vmatprep.mubr.f32.mxu0 %v6148_v46  ;;  %4681 = vmatpush1.bf16.msra.mxu0 %v4680_v41  ;;  %v694_v41 = vrot.slane %v6198_v33, 1  ;;  %v448_v7 = vmax.f32 %v416_v4, 0.0  ;;  %v523_v4 = vrot.slane %v449_v12, 7  ;;  %v966_v12 = vld [vmem:[#allocation5 + $0x1c0] sm:$0xff] }
  0xc3   : > { %4682 = vmatprep.subr.bf16.mxu0 %v8328_v0  ;;  %v4701_v31 = vpack.c.bf16 %v967_v13, %v966_v12 }
  0xc4   : > { %v6223_v5 = vsel %vm668_vm1, %v694_v41, %v695_v43  ;;  %v6243_v36 = vrot.slane %v448_v7, 7  ;;  %v965_v41 = vld [vmem:[#allocation5 + $0x1b8] sm:$0xff] }
  0xc5   : > { %4166 = vmatmul.mubr.msk.f32.gmra.mrb[12].mxu0 %vm6050_vm2, %v6091_v54  ;;  %8559 = vst [vmem:[#allocation23_spill] sm:$0xff] %v6223_v5 }
  0xc6   : > { %1153 = vmatprep.mubr.f32.mxu0 %v6167_v60  ;;  %4684 = vmatpush1.bf16.msra.mxu0 %v4683_v59  ;;  %v340_v59 = vld [vmem:[%s5968_s13 + $0x70] sm:$0xff]  ;;  %v6267_v7 = vsel %vm501_vm0, 0.0, %v6243_v36 }
  0xc7   : > { %4685 = vmatprep.subr.bf16.mxu0 %v8328_v0  ;;  %v379_v21 = vmul.f32 %v6008_v44, %v340_v59  ;;  %v343_v59 = vld [vmem:[%s5968_s13 + $0x88] sm:$0xff] }
  0xc9   : > { %1154 = vmatmul.mubr.f32.gmra.mrb[14].mxu0 %v6111_v10  ;;  %v418_v51 = vadd.f32 %v6016_v50, %v379_v21 }
  0xca   : > { %1158 = vmatprep.mubr.f32.mxu0 %v6188_v23  ;;  %4687 = vmatpush1.bf16.msra.mxu0 %v4686_v22  ;;  %v380_v22 = vmul.f32 %v6008_v44, %v341_v61 }
  0xcb   : > { %4688 = vmatprep.subr.bf16.mxu0 %v8328_v0  ;;  %v450_v16 = vmax.f32 %v418_v51, 0.0  ;;  %v6280_v51 = vsel %vm501_vm0, %v523_v4, 0.0 }
  0xcc   : > { %v419_v43 = vadd.f32 %v6016_v50, %v380_v22  ;;  %v381_v22 = vmul.f32 %v6008_v44, %v342_v52  ;;  %v8563_v52 = vmov 0.0|0.0  }
  0xcd   : > { %4168 = vmatmul.mubr.msk.f32.gmra.mrb[16].mxu0 %vm6050_vm2, %v6131_v30  ;;  %v6284_v6 = vrot.slane %v450_v16, 7  ;;  %v707_v16 = vrot.slane %v6280_v51, 1 }
  0xce   : > { %1163 = vmatprep.mubr.f32.mxu0 %v6203_v37  ;;  %4690 = vmatpush1.bf16.msra.mxu0 %v4689_v40  ;;  %v964_v40 = vld [vmem:[#allocation5 + $0x1b0] sm:$0xff]  ;;  %v451_v21 = vmax.f32 %v419_v43, 0.0 }
  0xcf   : > { %4691 = vmatprep.subr.bf16.mxu0 %v8328_v0  ;;  %v4698_v61 = vpack.c.bf16 %v965_v41, %v964_v40  ;;  %v6275_v40 = vsel %vm668_vm1, %v700_v34, %v702_v57  ;;  %v704_v41 = vrot.slane %v6267_v7, 1  ;;  %v344_v43 = vld [vmem:[%s5968_s13 + $0x90] sm:$0xff]  ;;  %v345_v57 = vld [vmem:[%s5968_s13 + $0x98] sm:$0xff] }
  0xd0   : > { %8562 = vst [vmem:[#allocation26_spill] sm:$0xff] %v6275_v40 }
  0xd1   : > { %1164 = vmatmul.mubr.f32.gmra.mrb[18].mxu0 %v6159_v53 }
  0xd2   : > { %1168 = vmatprep.mubr.f32.mxu0 %v6223_v5  ;;  %4693 = vmatpush1.bf16.msra.mxu0 %v4692_v1  ;;  %v6263_v1 = vsel %vm501_vm0, %v6243_v36, %v523_v4  ;;  %v383_v4 = vmul.f32 %v6008_v44, %v344_v43  ;;  %v6306_v43 = vsel %vm501_vm0, 0.0, %v6284_v6 }
  0xd3   : > { %4694 = vmatprep.subr.bf16.mxu0 %v8328_v0 }
  0xd5   : > { %4170 = vmatmul.mubr.msk.f32.gmra.mrb[20].mxu0 %vm6050_vm2, %v6176_v11 }
  0xd6   : > { %1173 = vmatprep.mubr.f32.mxu0 %v6239_v27  ;;  %4696 = vmatpush1.bf16.msra.mxu0 %v4695_v29  ;;  %v382_v29 = vmul.f32 %v6008_v44, %v343_v59  ;;  %v968_v59 = vld [vmem:[#allocation5 + $0x1d0] sm:$0xff] }
  0xd7   : > { %4697 = vmatprep.subr.bf16.mxu0 %v8328_v0  ;;  %v705_v0 = vrot.slane %v6263_v1, 1  ;;  %v4704_v12 = vpack.c.bf16 %v969_v28, %v968_v59 }
  0xd8   : > { %v421_v34 = vadd.f32 %v6016_v50, %v382_v29  ;;  %v971_v29 = vld [vmem:[#allocation5 + $0x1e8] sm:$0xff] }
  0xd9   : > { %1174 = vmatmul.mubr.f32.gmra.mrb[22].mxu0 %v6194_v32  ;;  %v6295_v13 = vsel %vm668_vm1, %v704_v41, %v705_v0  ;;  %v422_v41 = vadd.f32 %v6016_v50, %v383_v4 }
  0xda   : > { %1178 = vmatprep.mubr.f32.mxu0 %v6258_v62  ;;  %4699 = vmatpush1.bf16.msra.mxu0 %v4698_v61  ;;  %v526_v62 = vrot.slane %v451_v21, 7  ;;  %v420_v61 = vadd.f32 %v6016_v50, %v381_v22  ;;  %8564 = vst [vmem:[#allocation27_spill] sm:$0xff] %v6295_v13  ;;  %v384_v21 = vmul.f32 %v6008_v44, %v345_v57  ;;  %v970_v22 = vld [vmem:[#allocation5 + $0x1e0] sm:$0xff] }
  0xdb   : > { %4700 = vmatprep.subr.bf16.mxu0 %v8563_v52  ;;  %v4707_v59 = vpack.c.bf16 %v971_v29, %v970_v22  ;;  %v6312_v57 = vsel %vm668_vm1, %v705_v0, %v707_v16  ;;  %v347_v0 = vld [vmem:[%s5968_s13 + $0xa8] sm:$0xff]  ;;  %v454_v16 = vmax.f32 %v422_v41, 0.0 }
  0xdc   : > { %v6302_v27 = vsel %vm501_vm0, %v6284_v6, %v526_v62  ;;  %v452_v28 = vmax.f32 %v420_v61, 0.0  ;;  %8566 = vst [vmem:[#allocation29_spill] sm:$0xff] %v6312_v57  ;;  %v972_v61 = vld [vmem:[#allocation5 + $0x1f0] sm:$0xff]  ;;  %v6318_v37 = vsel %vm501_vm0, %v526_v62, 0.0  ;;  %v423_v4 = vadd.f32 %v6016_v50, %v384_v21 }
  0xdd   : > { %4172 = vmatmul.mubr.msk.f32.gmra.mrb[24].mxu0 %vm6050_vm2, %v6213_v55  ;;  %8565 = vst [vmem:[#allocation28_spill] sm:$0xff] %v6302_v27  ;;  %v710_v5 = vrot.slane %v6302_v27, 1  ;;  %v712_v62 = vrot.slane %v6318_v37, 1 }
  0xde   : > { %1183 = vmatprep.mubr.f32.mxu0 %v6275_v40  ;;  %4702 = vmatpush1.bf16.msra.mxu0 %v4701_v31  ;;  %v453_v31 = vmax.f32 %v421_v34, 0.0  ;;  %v709_v40 = vrot.slane %v6306_v43, 1  ;;  %v973_v34 = vld [vmem:[#allocation5 + $0x1f8] sm:$0xff]  ;;  %v455_v41 = vmax.f32 %v423_v4, 0.0 }
  0xdf   : > { %4703 = vmatprep.subr.bf16.mxu0 %v8563_v52  ;;  %v4710_v22 = vpack.c.bf16 %v973_v34, %v972_v61  ;;  %v6349_v61 = vsel %vm668_vm1, %v710_v5, %v712_v62 }
  0xe0   : > { %v529_v23 = vrot.slane %v453_v31, 7  ;;  %v6330_v29 = vsel %vm668_vm1, %v709_v40, %v710_v5  ;;  %v386_v40 = vmul.f32 %v6008_v44, %v347_v0  ;;  %8571 = vst [vmem:[#allocation34_spill] sm:$0xff] %v6349_v61  ;;  %v532_v0 = vrot.slane %v455_v41, 7  ;;  %v348_v5 = vld [vmem:[%s5968_s13 + $0xb0] sm:$0xff] }
  0xe1   : > { %1184 = vmatmul.mubr.f32.gmra.mrb[26].mxu0 %v6228_v17  ;;  %8568 = vst [vmem:[#allocation31_spill] sm:$0xff] %v6330_v29  ;;  %v387_v60 = vmul.f32 %v6008_v44, %v348_v5 }
  0xe2   : > { %1188 = vmatprep.mubr.f32.mxu0 %v6295_v13  ;;  %4705 = vmatpush1.bf16.msra.mxu0 %v4704_v12  ;;  %v6320_v13 = vrot.slane %v452_v28, 7  ;;  %v346_v12 = vld [vmem:[%s5968_s13 + $0xa0] sm:$0xff]  ;;  %v6356_v4 = vsel %vm501_vm0, %v529_v23, 0.0  ;;  %v6389_v8 = vsel %vm501_vm0, %v532_v0, 0.0 }
  0xe3   : > { %4706 = vmatprep.subr.bf16.mxu0 %v8563_v52  ;;  %v385_v28 = vmul.f32 %v6008_v44, %v346_v12  ;;  %8572 = vst [vmem:[#allocation35_spill] sm:$0xff] %v6356_v4  ;;  %v717_v62 = vrot.slane %v6356_v4, 1  ;;  %8578 = vst [vmem:[#allocation41_spill] sm:$0xff] %v6389_v8  ;;  %v426_v5 = vadd.f32 %v6016_v50, %v387_v60  ;;  %v352_v4 = vld [vmem:[%s5968_s13 + $0xd0] sm:$0xff] }
  0xe4   : > { %8567 = vst [vmem:[#allocation30_spill] sm:$0xff] %v6320_v13  ;;  %v6337_v21 = vsel %vm501_vm0, %v6320_v13, %v529_v23  ;;  %v6341_v31 = vsel %vm501_vm0, 0.0, %v6320_v13  ;;  %v389_v60 = vmul.f32 %v6008_v44, %v350_v56 }
  0xe5   : > { %4174 = vmatmul.mubr.msk.f32.gmra.mrb[28].mxu0 %vm6050_vm2, %v6243_v36  ;;  %8569 = vst [vmem:[#allocation32_spill] sm:$0xff] %v6337_v21  ;;  %v714_v34 = vrot.slane %v6341_v31, 1  ;;  %v715_v12 = vrot.slane %v6337_v21, 1 }
  0xe6   : > { %1193 = vmatprep.mubr.f32.mxu0 %v6312_v57  ;;  %4708 = vmatpush1.bf16.msra.mxu0 %v4707_v59  ;;  %v6346_v59 = vrot.slane %v454_v16, 7  ;;  %v424_v57 = vadd.f32 %v6016_v50, %v385_v28  ;;  %v349_v16 = vld [vmem:[%s5968_s13 + $0xb8] sm:$0xff] }
  0xe7   : > { %4709 = vmatprep.subr.bf16.mxu0 %v8563_v52 }
  0xe8   : > { %8570 = vst [vmem:[#allocation33_spill] sm:$0xff] %v6346_v59  ;;  %v6371_v23 = vsel %vm501_vm0, 0.0, %v6346_v59  ;;  %v456_v28 = vmax.f32 %v424_v57, 0.0  ;;  %v6375_v41 = vsel %vm501_vm0, %v6346_v59, %v532_v0 }
  0xe9   : > { %1194 = vmatmul.mubr.f32.gmra.mrb[30].mxu0 %v6263_v1  ;;  %8574 = vst [vmem:[#allocation37_spill] sm:$0xff] %v6371_v23  ;;  %8575 = vst [vmem:[#allocation38_spill] sm:$0xff] %v6375_v41  ;;  %v719_v46 = vrot.slane %v6371_v23, 1  ;;  %v720_v57 = vrot.slane %v6375_v41, 1 }
  0xea   : > { %1198 = vmatprep.mubr.f32.mxu0 %v6330_v29  ;;  %4711 = vmatpush1.bf16.msra.mxu0 %v4710_v22  ;;  %v425_v29 = vadd.f32 %v6016_v50, %v386_v40  ;;  %v6366_v22 = vsel %vm668_vm1, %v714_v34, %v715_v12  ;;  %v6382_v34 = vsel %vm668_vm1, %v715_v12, %v717_v62  ;;  %v6386_v20 = vrot.slane %v456_v28, 7  ;;  %v351_v12 = vld [vmem:[%s5968_s13 + $0xc8] sm:$0xff] }
  0xeb   : > { %4712 = vmatprep.subr.bf16.mxu0 %v8563_v52  ;;  %8573 = vst [vmem:[#allocation36_spill] sm:$0xff] %v6366_v22  ;;  %8576 = vst [vmem:[#allocation39_spill] sm:$0xff] %v6382_v34  ;;  %v6400_v62 = vsel %vm668_vm1, %v719_v46, %v720_v57  ;;  %v722_v28 = vrot.slane %v6389_v8, 1  ;;  %v428_v8 = vadd.f32 %v6016_v50, %v389_v60 }
  0xec   : > { %v457_v40 = vmax.f32 %v425_v29, 0.0  ;;  %8577 = vst [vmem:[#allocation40_spill] sm:$0xff] %v6386_v20  ;;  %8579 = vst [vmem:[#allocation42_spill] sm:$0xff] %v6400_v62  ;;  %v6405_v0 = vsel %vm501_vm0, 0.0, %v6386_v20 }
  0xed   : > { %4176 = vmatmul.mubr.msk.f32.gmra.mrb[32].mxu0 %vm6050_vm2, %v6284_v6  ;;  %8580 = vst [vmem:[#allocation43_spill] sm:$0xff] %v6405_v0  ;;  %v6416_v46 = vsel %vm668_vm1, %v720_v57, %v722_v28  ;;  %v724_v42 = vrot.slane %v6405_v0, 1  ;;  %v353_v57 = vld [vmem:[%s5968_s13 + $0xd8] sm:$0xff] }
  0xee   : > { %1203 = vmatprep.mubr.f32.mxu0 %v6349_v61  ;;  %v388_v61 = vmul.f32 %v6008_v44, %v349_v16  ;;  %v535_v29 = vrot.slane %v457_v40, 7  ;;  %v458_v40 = vmax.f32 %v426_v5, 0.0  ;;  %8582 = vst [vmem:[#allocation45_spill] sm:$0xff] %v6416_v46 }
  0xf0   : > { %v427_v16 = vadd.f32 %v6016_v50, %v388_v61  ;;  %v6410_v61 = vsel %vm501_vm0, %v6386_v20, %v535_v29  ;;  %v6422_v23 = vsel %vm501_vm0, %v535_v29, 0.0  ;;  %v6424_v5 = vrot.slane %v458_v40, 7 }
  0xf1   : > { %1204 = vmatmul.mubr.f32.gmra.mrb[34].mxu0 %v6302_v27  ;;  %8581 = vst [vmem:[#allocation44_spill] sm:$0xff] %v6410_v61  ;;  %v725_v56 = vrot.slane %v6410_v61, 1  ;;  %8583 = vst [vmem:[#allocation46_spill] sm:$0xff] %v6422_v23  ;;  %v727_v60 = vrot.slane %v6422_v23, 1  ;;  %v460_v29 = vmax.f32 %v428_v8, 0.0  ;;  %v391_v40 = vmul.f32 %v6008_v44, %v352_v4 }
  0xf2   : > { %1208 = vmatprep.mubr.f32.mxu0 %v6366_v22  ;;  %v459_v22 = vmax.f32 %v427_v16, 0.0  ;;  %8584 = vst [vmem:[#allocation47_spill] sm:$0xff] %v6424_v5 }
  0xf3   : > { %v6434_v28 = vsel %vm668_vm1, %v724_v42, %v725_v56  ;;  %v6450_v42 = vsel %vm668_vm1, %v725_v56, %v727_v60  ;;  %v6454_v23 = vrot.slane %v460_v29, 7  ;;  %v355_v56 = vld [vmem:[%s5968_s13 + $0xe8] sm:$0xff] }
  0xf4   : > { %v538_v16 = vrot.slane %v459_v22, 7  ;;  %8585 = vst [vmem:[#allocation48_spill] sm:$0xff] %v6434_v28  ;;  %8588 = vst [vmem:[#allocation51_spill] sm:$0xff] %v6450_v42 }
  0xf5   : > { %4178 = vmatmul.mubr.msk.f32.gmra.mrb[36].mxu0 %vm6050_vm2, %v6320_v13  ;;  %8589 = vst [vmem:[#allocation52_spill] sm:$0xff] %v6454_v23 }
  0xf6   : > { %1213 = vmatprep.mubr.f32.mxu0 %v6382_v34  ;;  %v390_v34 = vmul.f32 %v6008_v44, %v351_v12  ;;  %v6440_v22 = vsel %vm501_vm0, %v6424_v5, %v538_v16  ;;  %v6457_v0 = vsel %vm501_vm0, %v538_v16, 0.0 }
  0xf7   : > { %8586 = vst [vmem:[#allocation49_spill] sm:$0xff] %v6440_v22  ;;  %v730_v4 = vrot.slane %v6440_v22, 1  ;;  %8590 = vst [vmem:[#allocation53_spill] sm:$0xff] %v6457_v0  ;;  %v732_v29 = vrot.slane %v6457_v0, 1 }
  0xf8   : > { %v429_v12 = vadd.f32 %v6016_v50, %v390_v34  ;;  %v6444_v34 = vsel %vm501_vm0, 0.0, %v6424_v5 }
  0xf9   : > { %1214 = vmatmul.mubr.f32.gmra.mrb[38].mxu0 %v6337_v21  ;;  %8587 = vst [vmem:[#allocation50_spill] sm:$0xff] %v6444_v34  ;;  %v729_v8 = vrot.slane %v6444_v34, 1  ;;  %v394_v34 = vmul.f32 %v6008_v44, %v355_v56 }
  0xfa   : > { %1218 = vmatprep.mubr.f32.mxu0 %v6400_v62  ;;  %v461_v62 = vmax.f32 %v429_v12, 0.0  ;;  %v430_v12 = vadd.f32 %v6016_v50, %v391_v40 }
  0xfb   : > { %v6468_v60 = vsel %vm668_vm1, %v729_v8, %v730_v4  ;;  %v6484_v8 = vsel %vm668_vm1, %v730_v4, %v732_v29 }
  0xfc   : > { %8591 = vst [vmem:[#allocation54_spill] sm:$0xff] %v6468_v60  ;;  %v462_v40 = vmax.f32 %v430_v12, 0.0  ;;  %8593 = vst [vmem:[#allocation56_spill] sm:$0xff] %v6484_v8 }
  0xfd   : > { %4180 = vmatmul.mubr.msk.f32.gmra.mrb[40].mxu0 %vm6050_vm2, %v6346_v59  ;;  %v541_v59 = vrot.slane %v461_v62, 7  ;;  %v6473_v62 = vsel %vm501_vm0, 0.0, %v6454_v23 }
  0xfe   : > { %1223 = vmatprep.mubr.f32.mxu0 %v6416_v46  ;;  %v392_v46 = vmul.f32 %v6008_v44, %v353_v57  ;;  %v6492_v12 = vrot.slane %v462_v40, 7 }
 0x100   : > { %v431_v57 = vadd.f32 %v6016_v50, %v392_v46  ;;  %v6478_v46 = vsel %vm501_vm0, %v6454_v23, %v541_v59  ;;  %8594 = vst [vmem:[#allocation57_spill] sm:$0xff] %v6492_v12 }
 0x101   : > { %1224 = vmatmul.mubr.f32.gmra.mrb[42].mxu0 %v6375_v41  ;;  %v354_v41 = vld [vmem:[%s5968_s13 + $0xe0] sm:$0xff]  ;;  %8592 = vst [vmem:[#allocation55_spill] sm:$0xff] %v6478_v46  ;;  %v735_v0 = vrot.slane %v6478_v46, 1 }
 0x102   : > { %1228 = vmatprep.mubr.f32.mxu0 %v6434_v28  ;;  %v393_v16 = vmul.f32 %v6008_v44, %v354_v41  ;;  %v463_v28 = vmax.f32 %v431_v57, 0.0  ;;  %v433_v44 = vadd.f32 %v6016_v50, %v394_v34 }
 0x104   : > { %v432_v41 = vadd.f32 %v6016_v50, %v393_v16  ;;  %v544_v57 = vrot.slane %v463_v28, 7  ;;  %v6509_v28 = vsel %vm501_vm0, 0.0, %v6492_v12  ;;  %v465_v34 = vmax.f32 %v433_v44, 0.0 }
 0x105   : > { %4182 = vmatmul.mubr.msk.f32.gmra.mrb[44].mxu0 %vm6050_vm2, %v6386_v20  ;;  %v6490_v20 = vsel %vm501_vm0, %v541_v59, 0.0 }
 0x106   : > { %1233 = vmatprep.mubr.f32.mxu0 %v6450_v42  ;;  %v734_v42 = vrot.slane %v6473_v62, 1  ;;  %v737_v56 = vrot.slane %v6490_v20, 1  ;;  %v6505_v59 = vsel %vm501_vm0, %v6492_v12, %v544_v57  ;;  %v464_v50 = vmax.f32 %v432_v41, 0.0 }
 0x107   : > { %v740_v16 = vrot.slane %v6505_v59, 1  ;;  %v6519_v40 = vsel %vm501_vm0, %v544_v57, 0.0 }
 0x108   : > { %v6500_v4 = vsel %vm668_vm1, %v734_v42, %v735_v0  ;;  %v6514_v29 = vsel %vm668_vm1, %v735_v0, %v737_v56  ;;  %v739_v42 = vrot.slane %v6509_v28, 1  ;;  %v742_v0 = vrot.slane %v6519_v40, 1 }
 0x109   : > { %1234 = vmatmul.mubr.f32.gmra.mrb[46].mxu0 %v6410_v61  ;;  %8595 = vst [vmem:[#allocation58_spill] sm:$0xff] %v6500_v4  ;;  %8596 = vst [vmem:[#allocation59_spill] sm:$0xff] %v6514_v29 }
 0x10a   : > { %1238 = vmatprep.mubr.f32.mxu0 %v6468_v60  ;;  %v547_v60 = vrot.slane %v465_v34, 7  ;;  %v6528_v41 = vsel %vm668_vm1, %v739_v42, %v740_v16  ;;  %v6542_v56 = vsel %vm668_vm1, %v740_v16, %v742_v0  ;;  %v783_v0 = vrot.slane %v5979_v2, 2 }
 0x10b   : > { %8597 = vst [vmem:[#allocation60_spill] sm:$0xff] %v6528_v41  ;;  %8599 = vst [vmem:[#allocation62_spill] sm:$0xff] %v6542_v56 }
 0x10c   : > { %v6547_v42 = vsel %vm501_vm0, %v547_v60, 0.0 }
 0x10d   : > { %4184 = vmatmul.mubr.msk.f32.gmra.mrb[48].mxu0 %vm6050_vm2, %v6424_v5  ;;  %8600 = vst [vmem:[#allocation63_spill] sm:$0xff] %v6547_v42 }
 0x10e   : > { %1243 = vmatprep.mubr.f32.mxu0 %v6484_v8  ;;  %v6521_v8 = vrot.slane %v464_v50, 7 }
 0x110   : > { %v6533_v44 = vsel %vm501_vm0, %v6521_v8, %v547_v60  ;;  %v6537_v57 = vsel %vm501_vm0, 0.0, %v6521_v8  ;;  %v782_v60 = vrot.slane %v5983_v3, 2  ;;  %v977_v3 = vld [vmem:[#allocation5 + $0x218] sm:$0xff] }
 0x111   : > { %1244 = vmatmul.mubr.f32.gmra.mrb[50].mxu0 %v6440_v22  ;;  %8598 = vst [vmem:[#allocation61_spill] sm:$0xff] %v6533_v44  ;;  %v744_v50 = vrot.slane %v6537_v57, 1  ;;  %v745_v34 = vrot.slane %v6533_v44, 1 }
 0x112   : > { %1248 = vmatprep.mubr.f32.mxu0 %v6500_v4  ;;  %v976_v4 = vld [vmem:[#allocation5 + $0x210] sm:$0xff] }
 0x115   : > { %4186 = vmatmul.mubr.msk.f32.gmra.mrb[52].mxu0 %vm6050_vm2, %v6454_v23 }
 0x116   : > { %1253 = vmatprep.mubr.f32.mxu0 %v6514_v29  ;;  %v6554_v29 = vsel %vm668_vm1, %v744_v50, %v745_v34  ;;  %v974_v50 = vld [vmem:[#allocation5 + $0x200] sm:$0xff] }
 0x117   : > { %8601 = vst [vmem:[#allocation64_spill] sm:$0xff] %v6554_v29 }
 0x119   : > { %1254 = vmatmul.mubr.f32.gmra.mrb[54].mxu0 %v6478_v46 }
 0x11a   : > { %1258 = vmatprep.mubr.f32.mxu0 %v6528_v41  ;;  %v747_v41 = vrot.slane %v6547_v42, 1  ;;  %v4716_v42 = vpack.c.bf16 %v977_v3, %v976_v4  ;;  %v981_v4 = vld [vmem:[#allocation5 + $0x238] sm:$0xff] }
 0x11b   : > { %v985_v3 = vld [vmem:[#allocation5 + $0x258] sm:$0xff] }
 0x11c   : > { %v6560_v16 = vsel %vm668_vm1, %v745_v34, %v747_v41  ;;  %v6573_v41 = vsel %vm781_vm3, %v782_v60, %v783_v0  ;;  %v979_v60 = vld [vmem:[#allocation5 + $0x228] sm:$0xff] }
 0x11d   : > { %4188 = vmatmul.mubr.msk.f32.gmra.mrb[56].mxu0 %vm6050_vm2, %v6492_v12  ;;  %8602 = vst [vmem:[#allocation65_spill] sm:$0xff] %v6560_v16  ;;  %8603 = vst [vmem:[#allocation66_spill] sm:$0xff] %v6573_v41 }
 0x11e   : > { %1263 = vmatprep.mubr.f32.mxu0 %v6542_v56  ;;  %v975_v56 = vld [vmem:[#allocation5 + $0x208] sm:$0xff] }
 0x11f   : > { %v4713_v34 = vpack.c.bf16 %v975_v56, %v974_v50  ;;  %v978_v56 = vld [vmem:[#allocation5 + $0x220] sm:$0xff] }
 0x121   : > { %1264 = vmatmul.mubr.f32.gmra.mrb[58].mxu0 %v6505_v59 }
 0x122   : > { %1268 = vmatprep.mubr.f32.mxu0 %v6554_v29  ;;  %v785_v29 = vrot.slane %v6029_v9, 2 }
 0x124   : > { %v6579_v2 = vsel %vm781_vm3, %v783_v0, %v785_v29  ;;  %v790_v29 = vrot.slane %v6068_v38, 2  ;;  %v8814_v26 = vld [vmem:[#allocation66_spill] sm:$0xff] }
 0x125   : > { %4190 = vmatmul.mubr.msk.f32.gmra.mrb[60].mxu0 %vm6050_vm2, %v6521_v8  ;;  %8604 = vst [vmem:[#allocation67_spill] sm:$0xff] %v6579_v2 }
 0x126   : > { %1273 = vmatprep.mubr.f32.mxu0 %v6560_v16  ;;  %v787_v16 = vrot.slane %v6047_v25, 2  ;;  %v4719_v25 = vpack.c.bf16 %v979_v60, %v978_v56  ;;  %v798_v56 = vrot.slane %v6111_v10, 2 }
 0x129   : > { %1274 = vmatmul.mubr.f32.gmra.mrb[62].mxu0 %v6533_v44 }
 0x12a   : > { %4192 = vmatprep.mubr.msk.f32.mxu0 %vm6050_vm2, %v6035_v14  ;;  %v788_v14 = vrot.slane %v6043_v24, 2 }
 0x12c   : > { %v6589_v9 = vsel %vm781_vm3, %v787_v16, %v788_v14  ;;  %v6596_v0 = vsel %vm781_vm3, %v788_v14, %v790_v29  ;;  %v982_v16 = vld [vmem:[#allocation5 + $0x240] sm:$0xff]  ;;  %v797_v14 = vrot.slane %v6116_v15, 2 }
 0x12d   : > { %1344 = vmatmul.mubr.f32.vlgmr.msra.gmra.mrb[0].mxu0 %v6573_v41  ;;  %v986_v29 = vld [vmem:[#allocation5 + $0x260] sm:$0xff] }
 0x12e   : > { %4714 = vmatpush1.bf16.msra.mxu0 %v4713_v34  ;;  %1348 = vmatprep.mubr.f32.mxu0 %v6043_v24  ;;  %v980_v24 = vld [vmem:[#allocation5 + $0x230] sm:$0xff] }
 0x12f   : > { %4715 = vmatprep.subr.bf16.mxu0 %v8563_v52  ;;  %v4722_v50 = vpack.c.bf16 %v981_v4, %v980_v24  ;;  %v984_v34 = vld [vmem:[#allocation5 + $0x250] sm:$0xff]  ;;  %v6614_v24 = vsel %vm781_vm3, %v797_v14, %v798_v56  ;;  %v800_v4 = vrot.slane %v6122_v19, 2  ;;  %v990_v19 = vld [vmem:[#allocation5 + $0x280] sm:$0xff]  ;;  %v991_v14 = vld [vmem:[#allocation5 + $0x288] sm:$0xff] }
 0x130   : > { %v4728_v60 = vpack.c.bf16 %v985_v3, %v984_v34  ;;  %v803_v34 = vrot.slane %v6159_v53, 2 }
 0x131   : > { %1349 = vmatmul.mubr.f32.gmra.mrb[2].mxu0 %v6579_v2 }
 0x132   : > { %4194 = vmatprep.mubr.msk.f32.mxu0 %vm6050_vm2, %v6064_v35  ;;  %4717 = vmatpush1.bf16.msra.mxu0 %v4716_v42  ;;  %v983_v42 = vld [vmem:[#allocation5 + $0x248] sm:$0xff] }
 0x133   : > { %4718 = vmatprep.subr.bf16.mxu0 %v8563_v52  ;;  %v4725_v38 = vpack.c.bf16 %v983_v42, %v982_v16  ;;  %v989_v16 = vld [vmem:[#allocation5 + $0x278] sm:$0xff]  ;;  %v6621_v42 = vsel %vm781_vm3, %v798_v56, %v800_v4  ;;  %v805_v56 = vrot.slane %v6172_v63, 2  ;;  %v994_v63 = vld [vmem:[#allocation5 + $0x2a0] sm:$0xff] }
 0x135   : > { %1354 = vmatmul.mubr.f32.gmra.mrb[4].mxu0 %v6589_v9  ;;  %v6638_v4 = vsel %vm781_vm3, %v803_v34, %v805_v56 }
 0x136   : > { %1358 = vmatprep.mubr.f32.mxu0 %v6083_v45  ;;  %4720 = vmatpush1.bf16.msra.mxu0 %v4719_v25  ;;  %v987_v25 = vld [vmem:[#allocation5 + $0x268] sm:$0xff] }
 0x137   : > { %4721 = vmatprep.subr.bf16.mxu0 %v8563_v52  ;;  %v4731_v15 = vpack.c.bf16 %v987_v25, %v986_v29  ;;  %v992_v29 = vld [vmem:[#allocation5 + $0x290] sm:$0xff]  ;;  %v993_v25 = vld [vmem:[#allocation5 + $0x298] sm:$0xff] }
 0x139   : > { %1359 = vmatmul.mubr.f32.gmra.mrb[6].mxu0 %v6596_v0 }
 0x13a   : > { %4196 = vmatprep.mubr.msk.f32.mxu0 %vm6050_vm2, %v6091_v54  ;;  %4723 = vmatpush1.bf16.msra.mxu0 %v4722_v50  ;;  %v988_v50 = vld [vmem:[#allocation5 + $0x270] sm:$0xff] }
 0x13b   : > { %4724 = vmatprep.subr.bf16.mxu0 %v8563_v52  ;;  %v4734_v3 = vpack.c.bf16 %v989_v16, %v988_v50  ;;  %v808_v50 = vrot.slane %v6194_v32, 2  ;;  %v4740_v16 = vpack.c.bf16 %v993_v25, %v992_v29  ;;  %v813_v29 = vrot.slane %v6228_v17, 2 }
 0x13d   : > { %1364 = vmatmul.mubr.f32.gmra.mrb[8].mxu0 %v6139_v39 }
 0x13e   : > { %1368 = vmatprep.mubr.f32.mxu0 %v6111_v10  ;;  %4726 = vmatpush1.bf16.msra.mxu0 %v4725_v38  ;;  %v802_v38 = vrot.slane %v6152_v47, 2  ;;  %v4737_v47 = vpack.c.bf16 %v991_v14, %v990_v19  ;;  %v996_v19 = vld [vmem:[#allocation5 + $0x2b0] sm:$0xff]  ;;  %v997_v14 = vld [vmem:[#allocation5 + $0x2b8] sm:$0xff] }
 0x13f   : > { %4727 = vmatprep.subr.bf16.mxu0 %v8563_v52  ;;  %v4746_v25 = vpack.c.bf16 %v997_v14, %v996_v19  ;;  %v818_v19 = vrot.slane %v6263_v1, 2 }
 0x141   : > { %1369 = vmatmul.mubr.f32.gmra.mrb[10].mxu0 %v6162_v58 }
 0x142   : > { %4198 = vmatprep.mubr.msk.f32.mxu0 %vm6050_vm2, %v6131_v30  ;;  %4729 = vmatpush1.bf16.msra.mxu0 %v4728_v60  ;;  %v6631_v60 = vsel %vm781_vm3, %v802_v38, %v803_v34  ;;  %v995_v38 = vld [vmem:[#allocation5 + $0x2a8] sm:$0xff]  ;;  %v810_v34 = vrot.slane %v6209_v48, 2  ;;  %v998_v48 = vld [vmem:[#allocation5 + $0x2c0] sm:$0xff] }
 0x143   : > { %4730 = vmatprep.subr.bf16.mxu0 %v8563_v52 }
 0x144   : > { %v6655_v56 = vsel %vm781_vm3, %v808_v50, %v810_v34 }
 0x145   : > { %1374 = vmatmul.mubr.f32.gmra.mrb[12].mxu0 %v6614_v24 }
 0x146   : > { %1378 = vmatprep.mubr.f32.mxu0 %v6159_v53  ;;  %4732 = vmatpush1.bf16.msra.mxu0 %v4731_v15  ;;  %v807_v15 = vrot.slane %v6198_v33, 2  ;;  %v4743_v33 = vpack.c.bf16 %v995_v38, %v994_v63  ;;  %v1000_v63 = vld [vmem:[#allocation5 + $0x2d0] sm:$0xff]  ;;  %v1001_v38 = vld [vmem:[#allocation5 + $0x2d8] sm:$0xff] }
 0x147   : > { %4733 = vmatprep.subr.bf16.mxu0 %v8563_v52  ;;  %v4752_v14 = vpack.c.bf16 %v1001_v38, %v1000_v63  ;;  %v823_v63 = vrot.slane %v6302_v27, 2 }
 0x149   : > { %1379 = vmatmul.mubr.f32.gmra.mrb[14].mxu0 %v6621_v42 }
 0x14a   : > { %4200 = vmatprep.mubr.msk.f32.mxu0 %vm6050_vm2, %v6176_v11  ;;  %4735 = vmatpush1.bf16.msra.mxu0 %v4734_v3  ;;  %v6648_v3 = vsel %vm781_vm3, %v807_v15, %v808_v50  ;;  %v999_v15 = vld [vmem:[#allocation5 + $0x2c8] sm:$0xff]  ;;  %v815_v50 = vrot.slane %v6247_v49, 2  ;;  %v1002_v49 = vld [vmem:[#allocation5 + $0x2e0] sm:$0xff] }
 0x14b   : > { %4736 = vmatprep.subr.bf16.mxu0 %v8563_v52 }
 0x14c   : > { %v6672_v34 = vsel %vm781_vm3, %v813_v29, %v815_v50 }
 0x14d   : > { %1384 = vmatmul.mubr.f32.gmra.mrb[16].mxu0 %v6631_v60 }
 0x14e   : > { %1388 = vmatprep.mubr.f32.mxu0 %v6194_v32  ;;  %4738 = vmatpush1.bf16.msra.mxu0 %v4737_v47  ;;  %v812_v47 = vrot.slane %v6232_v18, 2  ;;  %v4749_v18 = vpack.c.bf16 %v999_v15, %v998_v48  ;;  %v1004_v48 = vld [vmem:[#allocation5 + $0x2f0] sm:$0xff]  ;;  %v1005_v15 = vld [vmem:[#allocation5 + $0x2f8] sm:$0xff] }
 0x14f   : > { %4739 = vmatprep.subr.bf16.mxu0 %v8563_v52  ;;  %v4758_v38 = vpack.c.bf16 %v1005_v15, %v1004_v48 }
 0x151   : > { %1389 = vmatmul.mubr.f32.gmra.mrb[18].mxu0 %v6638_v4 }
 0x152   : > { %4202 = vmatprep.mubr.msk.f32.mxu0 %vm6050_vm2, %v6213_v55  ;;  %4741 = vmatpush1.bf16.msra.mxu0 %v4740_v16  ;;  %v6665_v16 = vsel %vm781_vm3, %v812_v47, %v813_v29  ;;  %v1003_v47 = vld [vmem:[#allocation5 + $0x2e8] sm:$0xff]  ;;  %v820_v29 = vrot.slane %v6280_v51, 2 }
 0x153   : > { %4742 = vmatprep.subr.bf16.mxu0 %v8563_v52 }
 0x154   : > { %v6689_v50 = vsel %vm781_vm3, %v818_v19, %v820_v29 }
 0x155   : > { %1394 = vmatmul.mubr.f32.gmra.mrb[20].mxu0 %v6648_v3 }
 0x156   : > { %1398 = vmatprep.mubr.f32.mxu0 %v6228_v17  ;;  %4744 = vmatpush1.bf16.msra.mxu0 %v4743_v33  ;;  %v817_v33 = vrot.slane %v6267_v7, 2  ;;  %v4755_v7 = vpack.c.bf16 %v1003_v47, %v1002_v49  ;;  %v8605_v49 = vld [vmem:[#allocation33_spill] sm:$0xff]  ;;  %v8606_v47 = vld [vmem:[#allocation35_spill] sm:$0xff] }
 0x157   : > { %4745 = vmatprep.subr.bf16.mxu0 %v8563_v52  ;;  %v830_v29 = vrot.slane %v8606_v47, 2  ;;  %v8611_v47 = vld [vmem:[#allocation43_spill] sm:$0xff] }
 0x159   : > { %1399 = vmatmul.mubr.f32.gmra.mrb[22].mxu0 %v6655_v56 }
 0x15a   : > { %4204 = vmatprep.mubr.msk.f32.mxu0 %vm6050_vm2, %v6243_v36  ;;  %4747 = vmatpush1.bf16.msra.mxu0 %v4746_v25  ;;  %v6682_v25 = vsel %vm781_vm3, %v817_v33, %v818_v19  ;;  %v825_v33 = vrot.slane %v6318_v37, 2  ;;  %v827_v19 = vrot.slane %v6341_v31, 2  ;;  %v8608_v31 = vld [vmem:[#allocation37_spill] sm:$0xff] }
 0x15b   : > { %4748 = vmatprep.subr.bf16.mxu0 %v8563_v52  ;;  %v832_v15 = vrot.slane %v8608_v31, 2  ;;  %v838_v31 = vrot.slane %v6410_v61, 2 }
 0x15d   : > { %1404 = vmatmul.mubr.f32.gmra.mrb[24].mxu0 %v6665_v16 }
 0x15e   : > { %1408 = vmatprep.mubr.f32.mxu0 %v6263_v1  ;;  %4750 = vmatpush1.bf16.msra.mxu0 %v4749_v18  ;;  %v822_v18 = vrot.slane %v6306_v43, 2  ;;  %v6706_v43 = vsel %vm781_vm3, %v823_v63, %v825_v33  ;;  %v8610_v33 = vld [vmem:[#allocation41_spill] sm:$0xff] }
 0x15f   : > { %4751 = vmatprep.subr.bf16.mxu0 %v8563_v52 }
 0x160   : > { %v6699_v51 = vsel %vm781_vm3, %v822_v18, %v823_v63  ;;  %v8609_v63 = vld [vmem:[#allocation40_spill] sm:$0xff] }
 0x161   : > { %1409 = vmatmul.mubr.f32.gmra.mrb[26].mxu0 %v6672_v34 }
 0x162   : > { %4206 = vmatprep.mubr.msk.f32.mxu0 %vm6050_vm2, %v6284_v6  ;;  %4753 = vmatpush1.bf16.msra.mxu0 %v4752_v14  ;;  %v828_v14 = vrot.slane %v6337_v21, 2 }
 0x163   : > { %4754 = vmatprep.subr.bf16.mxu0 %v8563_v52 }
 0x164   : > { %v6715_v37 = vsel %vm781_vm3, %v827_v19, %v828_v14  ;;  %v6721_v48 = vsel %vm781_vm3, %v828_v14, %v830_v29  ;;  %v835_v19 = vrot.slane %v8610_v33, 2  ;;  %v837_v29 = vrot.slane %v8611_v47, 2  ;;  %v8612_v33 = vld [vmem:[#allocation46_spill] sm:$0xff] }
 0x165   : > { %1414 = vmatmul.mubr.f32.gmra.mrb[28].mxu0 %v6682_v25 }
 0x166   : > { %1418 = vmatprep.mubr.f32.mxu0 %v6302_v27  ;;  %4756 = vmatpush1.bf16.msra.mxu0 %v4755_v7  ;;  %v8607_v7 = vld [vmem:[#allocation38_spill] sm:$0xff]  ;;  %v357_v27 = vld [vmem:[%s5968_s13 + $0xf8] sm:$0xff] }
 0x167   : > { %4757 = vmatprep.subr.bf16.mxu0 %v8563_v52  ;;  %v833_v18 = vrot.slane %v8607_v7, 2 }
 0x169   : > { %1419 = vmatmul.mubr.f32.gmra.mrb[30].mxu0 %v6689_v50  ;;  %v6736_v14 = vsel %vm781_vm3, %v833_v18, %v835_v19  ;;  %v8613_v19 = vld [vmem:[#allocation50_spill] sm:$0xff] }
 0x16a   : > { %4208 = vmatprep.mubr.msk.f32.mxu0 %vm6050_vm2, %v6320_v13  ;;  %4759 = vmatpush1.bf16.msra.mxu0 %v4758_v38  ;;  %v6730_v38 = vsel %vm781_vm3, %v832_v15, %v833_v18  ;;  %v6745_v15 = vsel %vm781_vm3, %v837_v29, %v838_v31  ;;  %v842_v47 = vrot.slane %v8613_v19, 2  ;;  %v1040_v19 = vld [vmem:[#allocation5 + $0x410] sm:$0xff] }
 0x16b   : > { %4760 = vmatprep.subr.bf16.mxu0 %v8563_v52 }
 0x16d   : > { %1424 = vmatmul.mubr.f32.gmra.mrb[32].mxu0 %v6699_v51 }
 0x16e   : > { %1428 = vmatprep.mubr.f32.mxu0 %v6337_v21  ;;  %v1041_v21 = vld [vmem:[#allocation5 + $0x418] sm:$0xff] }
 0x16f   : > { %v4812_v13 = vpack.c.bf16 %v1041_v21, %v1040_v19  ;;  %v1044_v19 = vld [vmem:[#allocation5 + $0x430] sm:$0xff] }
 0x171   : > { %1429 = vmatmul.mubr.f32.gmra.mrb[34].mxu0 %v6706_v43 }
 0x172   : > { %4210 = vmatprep.mubr.msk.f32.mxu0 %vm6050_vm2, %v8605_v49  ;;  %v847_v49 = vrot.slane %v6473_v62, 2  ;;  %v850_v62 = vrot.slane %v6490_v20, 2  ;;  %v853_v20 = vrot.slane %v6505_v59, 2 }
 0x175   : > { %1434 = vmatmul.mubr.f32.gmra.mrb[36].mxu0 %v6715_v37 }
 0x176   : > { %1438 = vmatprep.mubr.f32.mxu0 %v8607_v7  ;;  %v1039_v7 = vld [vmem:[#allocation5 + $0x408] sm:$0xff] }
 0x179   : > { %1439 = vmatmul.mubr.f32.gmra.mrb[38].mxu0 %v6721_v48 }
 0x17a   : > { %4212 = vmatprep.mubr.msk.f32.mxu0 %vm6050_vm2, %v8609_v63  ;;  %v840_v63 = vrot.slane %v8612_v33, 2  ;;  %v8614_v33 = vld [vmem:[#allocation53_spill] sm:$0xff] }
 0x17c   : > { %v6751_v18 = vsel %vm781_vm3, %v838_v31, %v840_v63  ;;  %v845_v63 = vrot.slane %v8614_v33, 2  ;;  %v5537_v33 = vld [vmem:[%s8317_s1] ss:$0 sm:$0xff] }
 0x17d   : > { %1444 = vmatmul.mubr.f32.gmra.mrb[40].mxu0 %v6730_v38 }
 0x17e   : > { %1448 = vmatprep.mubr.f32.mxu0 %v6410_v61  ;;  %v843_v61 = vrot.slane %v6440_v22, 2 }
 0x180   : > { %v6760_v29 = vsel %vm781_vm3, %v842_v47, %v843_v61  ;;  %v356_v47 = vld [vmem:[%s5968_s13 + $0xf0] sm:$0xff] }
 0x181   : > { %1449 = vmatmul.mubr.f32.gmra.mrb[42].mxu0 %v6736_v14  ;;  %v395_v21 = vmul.f32 %v5537_v33, %v356_v47  ;;  %v5538_v47 = vld [vmem:[%s8318_s2] ss:$0 sm:$0xff] }
 0x182   : > { %4214 = vmatprep.mubr.msk.f32.mxu0 %vm6050_vm2, %v6424_v5  ;;  %v1038_v5 = vld [vmem:[#allocation5 + $0x400] sm:$0xff] }
 0x183   : > { %v4808_v31 = vpack.c.bf16 %v1039_v7, %v1038_v5  ;;  %v1042_v5 = vld [vmem:[#allocation5 + $0x420] sm:$0xff]  ;;  %v1043_v7 = vld [vmem:[#allocation5 + $0x428] sm:$0xff] }
 0x185   : > { %1454 = vmatmul.mubr.f32.gmra.mrb[44].mxu0 %v6745_v15  ;;  %4809 = vmatprep.subr.bf16.mxu1 %v4808_v31 }
 0x186   : > { %1458 = vmatprep.mubr.f32.mxu0 %v6440_v22  ;;  %4811 = vmatpush3.bf16.msra.mxu1 %v4808_v31  ;;  %v6766_v22 = vsel %vm781_vm3, %v843_v61, %v845_v63  ;;  %v4816_v63 = vpack.c.bf16 %v1043_v7, %v1042_v5  ;;  %v396_v31 = vmul.f32 %v5537_v33, %v357_v27  ;;  %v1045_v27 = vld [vmem:[#allocation5 + $0x438] sm:$0xff]  ;;  %v1046_v33 = vld [vmem:[#allocation5 + $0x440] sm:$0xff] }
 0x187   : > { %4813 = vmatprep.subr.bf16.mxu1 %v4812_v13  ;;  %v4820_v7 = vpack.c.bf16 %v1045_v27, %v1044_v19  ;;  %v858_v27 = vrot.slane %v6533_v44, 2 }
 0x188   : > { %v435_v5 = vadd.f32 %v5538_v47, %v396_v31  ;;  %v1048_v31 = vld [vmem:[#allocation5 + $0x450] sm:$0xff] }
 0x189   : > { %1459 = vmatmul.mubr.f32.gmra.mrb[46].mxu0 %v6751_v18 }
 0x18a   : > { %4216 = vmatprep.mubr.msk.f32.mxu0 %vm6050_vm2, %v6454_v23  ;;  %v848_v23 = vrot.slane %v6478_v46, 2  ;;  %4815 = vmatpush3.bf16.msra.mxu1 %v4812_v13  ;;  %v434_v13 = vadd.f32 %v5538_v47, %v395_v21 }
 0x18b   : > { %4817 = vmatprep.subr.bf16.mxu1 %v4816_v63 }
 0x18c   : > { %v6777_v61 = vsel %vm781_vm3, %v847_v49, %v848_v23  ;;  %v852_v49 = vrot.slane %v6509_v28, 2  ;;  %v855_v28 = vrot.slane %v6519_v40, 2  ;;  %v1049_v40 = vld [vmem:[#allocation5 + $0x458] sm:$0xff] }
 0x18d   : > { %1464 = vmatmul.mubr.f32.gmra.mrb[48].mxu0 %v6760_v29 }
 0x18e   : > { %1468 = vmatprep.mubr.f32.mxu0 %v6478_v46  ;;  %4819 = vmatpush3.bf16.msra.mxu1 %v4816_v63  ;;  %v1047_v46 = vld [vmem:[#allocation5 + $0x448] sm:$0xff]  ;;  %v467_v63 = vmax.f32 %v435_v5, 0.0  ;;  %v6804_v19 = vsel %vm781_vm3, %v853_v20, %v855_v28  ;;  %v1050_v5 = vld [vmem:[#allocation5 + $0x460] sm:$0xff] }
 0x18f   : > { %4821 = vmatprep.subr.bf16.mxu1 %v4820_v7  ;;  %v4824_v21 = vpack.c.bf16 %v1047_v46, %v1046_v33  ;;  %v4828_v46 = vpack.c.bf16 %v1049_v40, %v1048_v31  ;;  %v1053_v31 = vld [vmem:[#allocation5 + $0x478] sm:$0xff]  ;;  %v1007_v40 = vld [vmem:[#allocation5 + $0x308] sm:$0xff] }
 0x191   : > { %1469 = vmatmul.mubr.f32.gmra.mrb[50].mxu0 %v6766_v22 }
 0x192   : > { %4218 = vmatprep.mubr.msk.f32.mxu0 %vm6050_vm2, %v6492_v12  ;;  %v6786_v12 = vsel %vm781_vm3, %v848_v23, %v850_v62  ;;  %v6798_v23 = vsel %vm781_vm3, %v852_v49, %v853_v20  ;;  %v466_v62 = vmax.f32 %v434_v13, 0.0  ;;  %4823 = vmatpush3.bf16.msra.mxu1 %v4820_v7  ;;  %v857_v49 = vrot.slane %v6537_v57, 2  ;;  %v1051_v7 = vld [vmem:[#allocation5 + $0x468] sm:$0xff]  ;;  %v8615_v57 = vld [vmem:[#allocation63_spill] sm:$0xff] }
 0x193   : > { %4825 = vmatprep.subr.bf16.mxu1 %v4824_v21  ;;  %v6810_v13 = vrot.slane %v467_v63, 7  ;;  %v860_v33 = vrot.slane %v8615_v57, 2  ;;  %v4832_v28 = vpack.c.bf16 %v1051_v7, %v1050_v5  ;;  %v1008_v7 = vld [vmem:[#allocation5 + $0x310] sm:$0xff]  ;;  %v1009_v57 = vld [vmem:[#allocation5 + $0x318] sm:$0xff] }
 0x194   : > { %v6806_v47 = vrot.slane %v466_v62, 7  ;;  %v6817_v20 = vsel %vm781_vm3, %v857_v49, %v858_v27  ;;  %v1006_v49 = vld [vmem:[#allocation5 + $0x300] sm:$0xff] }
 0x195   : > { %1474 = vmatmul.mubr.f32.gmra.mrb[52].mxu0 %v6777_v61  ;;  %v6828_v63 = vsel %vm781_vm3, %v858_v27, %v860_v33  ;;  %v4761_v5 = vpack.c.bf16 %v1007_v40, %v1006_v49  ;;  %v4764_v27 = vpack.c.bf16 %v1009_v57, %v1008_v7  ;;  %v1010_v33 = vld [vmem:[#allocation5 + $0x320] sm:$0xff]  ;;  %v1016_v7 = vld [vmem:[#allocation5 + $0x350] sm:$0xff]  ;;  %v8620_v57 = vld [vmem:[#allocation19_spill] sm:$0xff] }
 0x196   : > { %1478 = vmatprep.mubr.f32.mxu0 %v6505_v59  ;;  %4827 = vmatpush3.bf16.msra.mxu1 %v4824_v21  ;;  %v6823_v62 = vsel %vm501_vm0, %v6806_v47, %v6810_v13  ;;  %v1052_v21 = vld [vmem:[#allocation5 + $0x470] sm:$0xff]  ;;  %v1014_v40 = vld [vmem:[#allocation5 + $0x340] sm:$0xff] }
 0x197   : > { %4829 = vmatprep.subr.bf16.mxu1 %v4828_v46 }
 0x199   : > { %1479 = vmatmul.mubr.f32.gmra.mrb[54].mxu0 %v6786_v12 }
 0x19a   : > { %4220 = vmatprep.mubr.msk.f32.mxu0 %vm6050_vm2, %v6521_v8  ;;  %4831 = vmatpush3.bf16.msra.mxu1 %v4828_v46  ;;  %v4836_v46 = vpack.c.bf16 %v1053_v31, %v1052_v21  ;;  %v1012_v21 = vld [vmem:[#allocation5 + $0x330] sm:$0xff]  ;;  %v1013_v31 = vld [vmem:[#allocation5 + $0x338] sm:$0xff] }
 0x19b   : > { %4833 = vmatprep.subr.bf16.mxu1 %v4832_v28  ;;  %v4770_v49 = vpack.c.bf16 %v1013_v31, %v1012_v21  ;;  %v8622_v21 = vld [vmem:[#allocation21_spill] sm:$0xff] }
 0x19d   : > { %1484 = vmatmul.mubr.f32.gmra.mrb[56].mxu0 %v6798_v23 }
 0x19e   : > { %1488 = vmatprep.mubr.f32.mxu0 %v6533_v44  ;;  %4835 = vmatpush3.bf16.msra.mxu1 %v4832_v28  ;;  %v8616_v44 = vld [vmem:[#allocation15_spill] sm:$0xff]  ;;  %v1011_v28 = vld [vmem:[#allocation5 + $0x328] sm:$0xff] }
 0x19f   : > { %4837 = vmatprep.subr.bf16.mxu1 %v4836_v46 }
 0x1a1   : > { %1489 = vmatmul.mubr.f32.gmra.mrb[58].mxu0 %v6804_v19 }
 0x1a2   : > { %4222 = vmatprep.mubr.msk.f32.mxu0 %vm6050_vm2, %v6806_v47  ;;  %4839 = vmatpush3.bf16.msra.mxu1 %v4836_v46  ;;  %v8619_v46 = vld [vmem:[#allocation18_spill] sm:$0xff] }
 0x1a3   : > { %4840 = vmatprep.subr.bf16.mxu1 %v8563_v52 }
 0x1a5   : > { %1494 = vmatmul.mubr.f32.gmra.mrb[60].mxu0 %v6817_v20  ;;  %4489 = vmatmul.mubr.f32.vlgmr.msra.gmra.mrb[0].mxu1 %v6162_v58 }
 0x1a6   : > { %1498 = vmatprep.mubr.f32.mxu0 %v6823_v62  ;;  %4491 = vmatprep.mubr.f32.mxu1 %v6614_v24 }
 0x1a9   : > { %1499 = vmatmul.mubr.f32.gmra.mrb[62].mxu0 %v6828_v63  ;;  %4492 = vmatmul.mubr.f32.gmra.mrb[2].mxu1 %v6621_v42 }
 0x1aa   : > { %1568 = vmatprep.mubr.f32.mxu0 %v6589_v9  ;;  %v8617_v9 = vld [vmem:[#allocation16_spill] sm:$0xff]  ;;  %4494 = vmatprep.mubr.f32.mxu1 %v6631_v60 }
 0x1ad   : > { %1569 = vmatmul.mubr.f32.vlgmr.msra.gmra.mrb[0].mxu0 %v8616_v44  ;;  %v4767_v44 = vpack.c.bf16 %v1011_v28, %v1010_v33  ;;  %4495 = vmatmul.mubr.f32.gmra.mrb[4].mxu1 %v6638_v4  ;;  %v1018_v33 = vld [vmem:[#allocation5 + $0x360] sm:$0xff] }
 0x1ae   : > { %4762 = vmatpush1.bf16.msra.mxu0 %v4761_v5  ;;  %1573 = vmatprep.mubr.f32.mxu0 %v6596_v0  ;;  %v8618_v0 = vld [vmem:[#allocation17_spill] sm:$0xff]  ;;  %v8621_v28 = vld [vmem:[#allocation20_spill] sm:$0xff] }
 0x1af   : > { %4763 = vmatprep.subr.bf16.mxu0 %v8563_v52  ;;  %4497 = vmatprep.mubr.f32.mxu1 %v6648_v3 }
 0x1b1   : > { %1574 = vmatmul.mubr.f32.gmra.mrb[2].mxu0 %v8617_v9  ;;  %4498 = vmatmul.mubr.f32.gmra.mrb[6].mxu1 %v6655_v56 }
 0x1b2   : > { %1578 = vmatprep.mubr.f32.mxu0 %v6139_v39  ;;  %4765 = vmatpush1.bf16.msra.mxu0 %v4764_v27  ;;  %v1015_v39 = vld [vmem:[#allocation5 + $0x348] sm:$0xff] }
 0x1b3   : > { %4766 = vmatprep.subr.bf16.mxu0 %v8563_v52  ;;  %v4773_v5 = vpack.c.bf16 %v1015_v39, %v1014_v40  ;;  %4500 = vmatprep.mubr.f32.mxu1 %v6665_v16  ;;  %v8623_v40 = vld [vmem:[#allocation22_spill] sm:$0xff] }
 0x1b5   : > { %1579 = vmatmul.mubr.f32.gmra.mrb[4].mxu0 %v8618_v0  ;;  %4501 = vmatmul.mubr.f32.gmra.mrb[8].mxu1 %v6672_v34 }
 0x1b6   : > { %1583 = vmatprep.mubr.f32.mxu0 %v6162_v58  ;;  %4768 = vmatpush1.bf16.msra.mxu0 %v4767_v44  ;;  %v1017_v58 = vld [vmem:[#allocation5 + $0x358] sm:$0xff]  ;;  %v1020_v44 = vld [vmem:[#allocation5 + $0x370] sm:$0xff] }
 0x1b7   : > { %4769 = vmatprep.subr.bf16.mxu0 %v8563_v52  ;;  %v4776_v27 = vpack.c.bf16 %v1017_v58, %v1016_v7  ;;  %4503 = vmatprep.mubr.f32.mxu1 %v6682_v25  ;;  %v8624_v7 = vld [vmem:[#allocation23_spill] sm:$0xff] }
 0x1b9   : > { %1584 = vmatmul.mubr.f32.gmra.mrb[6].mxu0 %v8619_v46  ;;  %4504 = vmatmul.mubr.f32.gmra.mrb[10].mxu1 %v6689_v50 }
 0x1ba   : > { %1588 = vmatprep.mubr.f32.mxu0 %v6614_v24  ;;  %4771 = vmatpush1.bf16.msra.mxu0 %v4770_v49  ;;  %v1019_v24 = vld [vmem:[#allocation5 + $0x368] sm:$0xff]  ;;  %v1022_v49 = vld [vmem:[#allocation5 + $0x380] sm:$0xff] }
 0x1bb   : > { %4772 = vmatprep.subr.bf16.mxu0 %v8563_v52  ;;  %v4779_v9 = vpack.c.bf16 %v1019_v24, %v1018_v33  ;;  %4506 = vmatprep.mubr.f32.mxu1 %v6699_v51  ;;  %v8625_v33 = vld [vmem:[#allocation24_spill] sm:$0xff] }
 0x1bd   : > { %1589 = vmatmul.mubr.f32.gmra.mrb[8].mxu0 %v8620_v57  ;;  %4507 = vmatmul.mubr.f32.gmra.mrb[12].mxu1 %v6706_v43 }
 0x1be   : > { %1593 = vmatprep.mubr.f32.mxu0 %v6621_v42  ;;  %4774 = vmatpush1.bf16.msra.mxu0 %v4773_v5  ;;  %v1021_v42 = vld [vmem:[#allocation5 + $0x378] sm:$0xff]  ;;  %v1024_v5 = vld [vmem:[#allocation5 + $0x390] sm:$0xff] }
 0x1bf   : > { %4775 = vmatprep.subr.bf16.mxu0 %v8563_v52  ;;  %v4782_v31 = vpack.c.bf16 %v1021_v42, %v1020_v44  ;;  %4509 = vmatprep.mubr.f32.mxu1 %v6715_v37  ;;  %v8626_v44 = vld [vmem:[#allocation25_spill] sm:$0xff] }
 0x1c1   : > { %1594 = vmatmul.mubr.f32.gmra.mrb[10].mxu0 %v8621_v28  ;;  %4510 = vmatmul.mubr.f32.gmra.mrb[14].mxu1 %v6721_v48 }
 0x1c2   : > { %1598 = vmatprep.mubr.f32.mxu0 %v6631_v60  ;;  %4777 = vmatpush1.bf16.msra.mxu0 %v4776_v27  ;;  %v1023_v60 = vld [vmem:[#allocation5 + $0x388] sm:$0xff]  ;;  %v1026_v27 = vld [vmem:[#allocation5 + $0x3a0] sm:$0xff] }
 0x1c3   : > { %4778 = vmatprep.subr.bf16.mxu0 %v8563_v52  ;;  %v4785_v39 = vpack.c.bf16 %v1023_v60, %v1022_v49  ;;  %4512 = vmatprep.mubr.f32.mxu1 %v6730_v38  ;;  %v8627_v49 = vld [vmem:[#allocation26_spill] sm:$0xff] }
 0x1c5   : > { %1599 = vmatmul.mubr.f32.gmra.mrb[12].mxu0 %v8622_v21  ;;  %4513 = vmatmul.mubr.f32.gmra.mrb[16].mxu1 %v6736_v14 }
 0x1c6   : > { %1603 = vmatprep.mubr.f32.mxu0 %v6638_v4  ;;  %4780 = vmatpush1.bf16.msra.mxu0 %v4779_v9  ;;  %v1025_v4 = vld [vmem:[#allocation5 + $0x398] sm:$0xff]  ;;  %v1028_v9 = vld [vmem:[#allocation5 + $0x3b0] sm:$0xff] }
 0x1c7   : > { %4781 = vmatprep.subr.bf16.mxu0 %v8563_v52  ;;  %v4788_v58 = vpack.c.bf16 %v1025_v4, %v1024_v5  ;;  %4515 = vmatprep.mubr.f32.mxu1 %v6745_v15  ;;  %v6894_v5 = vsel %vm501_vm0, 0.0, %v6806_v47  ;;  %v8628_v4 = vld [vmem:[#allocation27_spill] sm:$0xff] }
 0x1c9   : > { %1604 = vmatmul.mubr.f32.gmra.mrb[14].mxu0 %v8623_v40  ;;  %4516 = vmatmul.mubr.f32.gmra.mrb[18].mxu1 %v6751_v18 }
 0x1ca   : > { %1608 = vmatprep.mubr.f32.mxu0 %v6648_v3  ;;  %4783 = vmatpush1.bf16.msra.mxu0 %v4782_v31  ;;  %v1027_v3 = vld [vmem:[#allocation5 + $0x3a8] sm:$0xff]  ;;  %v1030_v31 = vld [vmem:[#allocation5 + $0x3c0] sm:$0xff] }
 0x1cb   : > { %4784 = vmatprep.subr.bf16.mxu0 %v8563_v52  ;;  %v4791_v24 = vpack.c.bf16 %v1027_v3, %v1026_v27  ;;  %4518 = vmatprep.mubr.f32.mxu1 %v6760_v29  ;;  %v903_v27 = vrot.slane %v6894_v5, 2  ;;  %v904_v3 = vrot.slane %v6823_v62, 2 }
 0x1cd   : > { %1609 = vmatmul.mubr.f32.gmra.mrb[16].mxu0 %v8624_v7  ;;  %4519 = vmatmul.mubr.f32.gmra.mrb[20].mxu1 %v6766_v22 }
 0x1ce   : > { %1613 = vmatprep.mubr.f32.mxu0 %v6655_v56  ;;  %4786 = vmatpush1.bf16.msra.mxu0 %v4785_v39  ;;  %v1029_v56 = vld [vmem:[#allocation5 + $0x3b8] sm:$0xff]  ;;  %v1032_v39 = vld [vmem:[#allocation5 + $0x3d0] sm:$0xff] }
 0x1cf   : > { %4787 = vmatprep.subr.bf16.mxu0 %v8563_v52  ;;  %v4794_v42 = vpack.c.bf16 %v1029_v56, %v1028_v9  ;;  %4521 = vmatprep.mubr.f32.mxu1 %v6777_v61  ;;  %v1035_v9 = vld [vmem:[#allocation5 + $0x3e8] sm:$0xff] }
 0x1d1   : > { %1614 = vmatmul.mubr.f32.gmra.mrb[18].mxu0 %v8625_v33  ;;  %4522 = vmatmul.mubr.f32.gmra.mrb[22].mxu1 %v6786_v12 }
 0x1d2   : > { %1618 = vmatprep.mubr.f32.mxu0 %v6665_v16  ;;  %4789 = vmatpush1.bf16.msra.mxu0 %v4788_v58  ;;  %v1031_v16 = vld [vmem:[#allocation5 + $0x3c8] sm:$0xff]  ;;  %v6900_v58 = vsel %vm501_vm0, %v6810_v13, 0.0 }
 0x1d3   : > { %4790 = vmatprep.subr.bf16.mxu0 %v8563_v52  ;;  %v4797_v60 = vpack.c.bf16 %v1031_v16, %v1030_v31  ;;  %4524 = vmatprep.mubr.f32.mxu1 %v6798_v23  ;;  %v906_v56 = vrot.slane %v6900_v58, 2  ;;  %v8629_v13 = vld [vmem:[#allocation29_spill] sm:$0xff]  ;;  %v1036_v31 = vld [vmem:[#allocation5 + $0x3f0] sm:$0xff]  ;;  %v1037_v16 = vld [vmem:[#allocation5 + $0x3f8] sm:$0xff] }
 0x1d5   : > { %1619 = vmatmul.mubr.f32.gmra.mrb[20].mxu0 %v8626_v44  ;;  %4525 = vmatmul.mubr.f32.gmra.mrb[24].mxu1 %v6804_v19 }
 0x1d6   : > { %1623 = vmatprep.mubr.f32.mxu0 %v6672_v34  ;;  %4792 = vmatpush1.bf16.msra.mxu0 %v4791_v24  ;;  %v1033_v34 = vld [vmem:[#allocation5 + $0x3d8] sm:$0xff]  ;;  %v1034_v24 = vld [vmem:[#allocation5 + $0x3e0] sm:$0xff] }
 0x1d7   : > { %4793 = vmatprep.subr.bf16.mxu0 %v8563_v52  ;;  %4527 = vmatprep.mubr.f32.mxu1 %v6817_v20 }
 0x1d9   : > { %1624 = vmatmul.mubr.f32.gmra.mrb[22].mxu0 %v8627_v49  ;;  %4528 = vmatmul.mubr.f32.gmra.mrb[26].mxu1 %v6828_v63 }
 0x1da   : > { %1628 = vmatprep.mubr.f32.mxu0 %v6682_v25  ;;  %4795 = vmatpush1.bf16.msra.mxu0 %v4794_v42  ;;  %v4800_v25 = vpack.c.bf16 %v1033_v34, %v1032_v39  ;;  %v905_v42 = vsel %vm781_vm3, %v903_v27, %v904_v3  ;;  %v8630_v39 = vld [vmem:[#allocation31_spill] sm:$0xff]  ;;  %v4806_v34 = vpack.c.bf16 %v1037_v16, %v1036_v31  ;;  %v8633_v27 = vld [vmem:[#allocation36_spill] sm:$0xff] }
 0x1db   : > { %4796 = vmatprep.subr.bf16.mxu0 %v8563_v52  ;;  %4530 = vmatprep.mubr.f32.mxu1 %v905_v42 }
 0x1dd   : > { %1629 = vmatmul.mubr.f32.gmra.mrb[24].mxu0 %v8628_v4 }
 0x1de   : > { %1633 = vmatprep.mubr.f32.mxu0 %v6689_v50  ;;  %4798 = vmatpush1.bf16.msra.mxu0 %v4797_v60  ;;  %v4803_v50 = vpack.c.bf16 %v1035_v9, %v1034_v24  ;;  %v907_v60 = vsel %vm781_vm3, %v904_v3, %v906_v56  ;;  %v8635_v3 = vld [vmem:[#allocation42_spill] sm:$0xff]  ;;  %v8636_v24 = vld [vmem:[#allocation45_spill] sm:$0xff]  ;;  %v8638_v9 = vld [vmem:[#allocation51_spill] sm:$0xff] }
 0x1df   : > { %4799 = vmatprep.subr.bf16.mxu0 %v8563_v52  ;;  %4531 = vmatmul.mubr.f32.gmra.mrb[28].mxu1 %v907_v60  ;;  %v8646_v56 = vld [vmem:[#allocation65_spill] sm:$0xff] }
 0x1e0   : > { %4533 = vmatprep.mubr.f32.mxu1 %v6573_v41 }
 0x1e1   : > { %1634 = vmatmul.mubr.f32.gmra.mrb[26].mxu0 %v8629_v13 }
 0x1e2   : > { %1638 = vmatprep.mubr.f32.mxu0 %v6699_v51  ;;  %4801 = vmatpush1.bf16.msra.mxu0 %v4800_v25  ;;  %v8631_v51 = vld [vmem:[#allocation34_spill] sm:$0xff]  ;;  %v8632_v25 = vld [vmem:[#allocation13_spill] sm:$0xff] }
 0x1e3   : > { %4802 = vmatprep.subr.bf16.mxu0 %v8563_v52  ;;  %4534 = vmatmul.mubr.f32.gmra.mrb[30].mxu1 %v6579_v2 }
 0x1e4   : > { %2913 = vmatprep.mubr.f32.mxu1 %v8632_v25 }
 0x1e5   : > { %1639 = vmatmul.mubr.f32.gmra.mrb[28].mxu0 %v8630_v39 }
 0x1e6   : > { %1643 = vmatprep.mubr.f32.mxu0 %v6706_v43  ;;  %4804 = vmatpush1.bf16.msra.mxu0 %v4803_v50  ;;  %v8634_v43 = vld [vmem:[#allocation39_spill] sm:$0xff]  ;;  %v2707_v50 = vld [vmem:[#allocation7 + $0x10] sm:$0xff] }
 0x1e7   : > { %4805 = vmatprep.subr.bf16.mxu0 %v8563_v52 }
 0x1e9   : > { %1644 = vmatmul.mubr.f32.gmra.mrb[30].mxu0 %v8631_v51 }
 0x1ea   : > { %1648 = vmatprep.mubr.f32.mxu0 %v6715_v37  ;;  %4807 = vmatpush1.bf16.msra.mxu0 %v4806_v34  ;;  %v8637_v37 = vld [vmem:[#allocation48_spill] sm:$0xff] }
 0x1ed   : > { %1649 = vmatmul.mubr.f32.gmra.mrb[32].mxu0 %v8633_v27 }
 0x1ee   : > { %1653 = vmatprep.mubr.f32.mxu0 %v6721_v48  ;;  %v8639_v48 = vld [vmem:[#allocation54_spill] sm:$0xff] }
 0x1f1   : > { %1654 = vmatmul.mubr.f32.gmra.mrb[34].mxu0 %v8634_v43 }
 0x1f2   : > { %1658 = vmatprep.mubr.f32.mxu0 %v6730_v38  ;;  %v8640_v38 = vld [vmem:[#allocation56_spill] sm:$0xff] }
 0x1f5   : > { %1659 = vmatmul.mubr.f32.gmra.mrb[36].mxu0 %v8635_v3 }
 0x1f6   : > { %1663 = vmatprep.mubr.f32.mxu0 %v6736_v14  ;;  %v8641_v14 = vld [vmem:[#allocation58_spill] sm:$0xff] }
 0x1f9   : > { %1664 = vmatmul.mubr.f32.gmra.mrb[38].mxu0 %v8636_v24 }
 0x1fa   : > { %1668 = vmatprep.mubr.f32.mxu0 %v6745_v15  ;;  %v8642_v15 = vld [vmem:[#allocation59_spill] sm:$0xff] }
 0x1fd   : > { %1669 = vmatmul.mubr.f32.gmra.mrb[40].mxu0 %v8637_v37 }
 0x1fe   : > { %1673 = vmatprep.mubr.f32.mxu0 %v6751_v18  ;;  %v8643_v18 = vld [vmem:[#allocation60_spill] sm:$0xff] }
 0x201   : > { %1674 = vmatmul.mubr.f32.gmra.mrb[42].mxu0 %v8638_v9 }
 0x202   : > { %1678 = vmatprep.mubr.f32.mxu0 %v6760_v29  ;;  %v8644_v29 = vld [vmem:[#allocation62_spill] sm:$0xff] }
 0x205   : > { %1679 = vmatmul.mubr.f32.gmra.mrb[44].mxu0 %v8639_v48 }
 0x206   : > { %1683 = vmatprep.mubr.f32.mxu0 %v6766_v22  ;;  %v8645_v22 = vld [vmem:[#allocation64_spill] sm:$0xff] }
 0x209   : > { %1684 = vmatmul.mubr.f32.gmra.mrb[46].mxu0 %v8640_v38 }
 0x20a   : > { %1688 = vmatprep.mubr.f32.mxu0 %v6777_v61  ;;  %v896_v61 = vrot.slane %v6894_v5, 1  ;;  %v2706_v5 = vld [vmem:[#allocation7 + $0x8] sm:$0xff] }
 0x20d   : > { %1689 = vmatmul.mubr.f32.gmra.mrb[48].mxu0 %v8641_v14 }
 0x20e   : > { %1693 = vmatprep.mubr.f32.mxu0 %v6786_v12  ;;  %v897_v12 = vrot.slane %v6823_v62, 1 }
 0x211   : > { %1694 = vmatmul.mubr.f32.gmra.mrb[50].mxu0 %v8642_v15 }
 0x212   : > { %1698 = vmatprep.mubr.f32.mxu0 %v6798_v23  ;;  %v6953_v23 = vsel %vm668_vm1, %v896_v61, %v897_v12  ;;  %v2711_v61 = vld [vmem:[#allocation7 + $0x30] sm:$0xff] }
 0x215   : > { %1699 = vmatmul.mubr.f32.gmra.mrb[52].mxu0 %v8643_v18 }
 0x216   : > { %1703 = vmatprep.mubr.f32.mxu0 %v6804_v19  ;;  %v899_v19 = vrot.slane %v6900_v58, 1  ;;  %v2709_v58 = vld [vmem:[#allocation7 + $0x20] sm:$0xff] }
 0x219   : > { %1704 = vmatmul.mubr.f32.gmra.mrb[54].mxu0 %v8644_v29 }
 0x21a   : > { %1708 = vmatprep.mubr.f32.mxu0 %v6817_v20  ;;  %v6958_v20 = vsel %vm668_vm1, %v897_v12, %v899_v19  ;;  %v2833_v12 = vld [vmem:[#allocation7 + $0x400] sm:$0xff]  ;;  %v2834_v19 = vld [vmem:[#allocation7 + $0x408] sm:$0xff] }
 0x21d   : > { %1709 = vmatmul.mubr.f32.gmra.mrb[56].mxu0 %v8645_v22 }
 0x21e   : > { %1713 = vmatprep.mubr.f32.mxu0 %v6828_v63  ;;  %v2705_v63 = vld [vmem:[#allocation7] sm:$0xff] }
 0x21f   : > { %v4841_v31 = vpack.c.bf16 %v2706_v5, %v2705_v63  ;;  %v6970_v63 = vpack.c.bf16 %v2834_v19, %v2833_v12  ;;  %v2715_v5 = vld [vmem:[#allocation7 + $0x50] sm:$0xff] }
 0x221   : > { %1714 = vmatmul.mubr.f32.gmra.mrb[58].mxu0 %v8646_v56  ;;  %4842 = vmatpush1.bf16.msra.mxu1 %v4841_v31  ;;  %8647 = vst [vmem:[#allocation35_spill] sm:$0xff] %v6970_v63  ;;  %v2718_v31 = vld [vmem:[#allocation7 + $0x68] sm:$0xff] }
 0x222   : > { %1718 = vmatprep.mubr.f32.mxu0 %v905_v42  ;;  %v2708_v42 = vld [vmem:[#allocation7 + $0x18] sm:$0xff]  ;;  %4843 = vmatprep.subr.bf16.mxu1 %v8563_v52 }
 0x223   : > { %v4844_v16 = vpack.c.bf16 %v2708_v42, %v2707_v50  ;;  %5033 = vmatprep.subr.bf16.mxu0 %v6970_v63  ;;  %v2716_v50 = vld [vmem:[#allocation7 + $0x58] sm:$0xff]  ;;  %v2719_v42 = vld [vmem:[#allocation7 + $0x70] sm:$0xff] }
 0x225   : > { %1719 = vmatmul.mubr.f32.gmra.mrb[60].mxu0 %v6953_v23  ;;  %4845 = vmatpush1.bf16.msra.mxu1 %v4844_v16 }
 0x226   : > { %1723 = vmatprep.mubr.f32.mxu0 %v907_v60  ;;  %v2710_v60 = vld [vmem:[#allocation7 + $0x28] sm:$0xff]  ;;  %4846 = vmatprep.subr.bf16.mxu1 %v8563_v52 }
 0x227   : > { %v4847_v34 = vpack.c.bf16 %v2710_v60, %v2709_v58  ;;  %v2723_v58 = vld [vmem:[#allocation7 + $0x90] sm:$0xff] }
 0x229   : > { %1724 = vmatmul.mubr.f32.gmra.mrb[62].mxu0 %v6958_v20  ;;  %4848 = vmatpush1.bf16.msra.mxu1 %v4847_v34  ;;  %v2727_v34 = vld [vmem:[#allocation7 + $0xb0] sm:$0xff] }
 0x22a   : > { %1793 = vmatprep.mubr.f32.mxu0 %v8618_v0  ;;  %v2712_v0 = vld [vmem:[#allocation7 + $0x38] sm:$0xff]  ;;  %4849 = vmatprep.subr.bf16.mxu1 %v8563_v52 }
 0x22d   : > { %4224 = vmatmul.mubr.msk.f32.vlgmr.msra.gmra.mrb[0].mxu0 %vm6050_vm2, %v6064_v35  ;;  %v4850_v35 = vpack.c.bf16 %v2712_v0, %v2711_v61  ;;  %v2732_v0 = vld [vmem:[#allocation7 + $0xd8] sm:$0xff] }
 0x22e   : > { %1798 = vmatprep.mubr.f32.mxu0 %v8619_v46  ;;  %v2714_v46 = vld [vmem:[#allocation7 + $0x48] sm:$0xff]  ;;  %5035 = vmatpush3.bf16.msra.mxu0 %v6970_v63 }
 0x22f   : > { %4851 = vmatpush1.bf16.msra.mxu1 %v4850_v35  ;;  %v2837_v35 = vld [vmem:[#allocation7 + $0x420] sm:$0xff] }
 0x230   : > { %4852 = vmatprep.subr.bf16.mxu1 %v8563_v52 }
 0x231   : > { %1799 = vmatmul.mubr.f32.gmra.mrb[2].mxu0 %v6083_v45  ;;  %v2713_v45 = vld [vmem:[#allocation7 + $0x40] sm:$0xff] }
 0x232   : > { %1803 = vmatprep.mubr.f32.mxu0 %v8620_v57  ;;  %v4853_v57 = vpack.c.bf16 %v2714_v46, %v2713_v45  ;;  %v2838_v45 = vld [vmem:[#allocation7 + $0x428] sm:$0xff]  ;;  %v2733_v46 = vld [vmem:[#allocation7 + $0xe0] sm:$0xff] }
 0x234   : > { %4854 = vmatpush1.bf16.msra.mxu1 %v4853_v57  ;;  %v2734_v57 = vld [vmem:[#allocation7 + $0xe8] sm:$0xff] }
 0x235   : > { %4226 = vmatmul.mubr.msk.f32.gmra.mrb[4].mxu0 %vm6050_vm2, %v6091_v54  ;;  %v4856_v54 = vpack.c.bf16 %v2716_v50, %v2715_v5  ;;  %4855 = vmatprep.subr.bf16.mxu1 %v8563_v52  ;;  %v4883_v5 = vpack.c.bf16 %v2734_v57, %v2733_v46  ;;  %v8659_v50 = vld [vmem:[#allocation52_spill] sm:$0xff] }
 0x236   : > { %1808 = vmatprep.mubr.f32.mxu0 %v8621_v28  ;;  %v2717_v28 = vld [vmem:[#allocation7 + $0x60] sm:$0xff] }
 0x238   : > { %4857 = vmatpush1.bf16.msra.mxu1 %v4856_v54  ;;  %v2839_v54 = vld [vmem:[#allocation7 + $0x430] sm:$0xff] }
 0x239   : > { %1809 = vmatmul.mubr.f32.gmra.mrb[6].mxu0 %v6111_v10  ;;  %v4859_v10 = vpack.c.bf16 %v2718_v31, %v2717_v28  ;;  %4858 = vmatprep.subr.bf16.mxu1 %v8563_v52  ;;  %v2840_v28 = vld [vmem:[#allocation7 + $0x438] sm:$0xff]  ;;  %v2735_v31 = vld [vmem:[#allocation7 + $0xf0] sm:$0xff] }
 0x23a   : > { %1813 = vmatprep.mubr.f32.mxu0 %v8622_v21  ;;  %v2720_v21 = vld [vmem:[#allocation7 + $0x78] sm:$0xff] }
 0x23b   : > { %v4862_v16 = vpack.c.bf16 %v2720_v21, %v2719_v42 }
 0x23c   : > { %4860 = vmatpush1.bf16.msra.mxu1 %v4859_v10  ;;  %v2736_v10 = vld [vmem:[#allocation7 + $0xf8] sm:$0xff] }
 0x23d   : > { %4228 = vmatmul.mubr.msk.f32.gmra.mrb[8].mxu0 %vm6050_vm2, %v6131_v30  ;;  %4861 = vmatprep.subr.bf16.mxu1 %v8563_v52  ;;  %v2721_v30 = vld [vmem:[#allocation7 + $0x80] sm:$0xff]  ;;  %v4886_v21 = vpack.c.bf16 %v2736_v10, %v2735_v31 }
 0x23e   : > { %1818 = vmatprep.mubr.f32.mxu0 %v8623_v40  ;;  %v2722_v40 = vld [vmem:[#allocation7 + $0x88] sm:$0xff]  ;;  %v2749_v10 = vld [vmem:[#allocation7 + $0x160] sm:$0xff] }
 0x240   : > { %4863 = vmatpush1.bf16.msra.mxu1 %v4862_v16 }
 0x241   : > { %1819 = vmatmul.mubr.f32.gmra.mrb[10].mxu0 %v6159_v53  ;;  %v4865_v53 = vpack.c.bf16 %v2722_v40, %v2721_v30  ;;  %4864 = vmatprep.subr.bf16.mxu1 %v8563_v52  ;;  %v8661_v30 = vld [vmem:[#allocation55_spill] sm:$0xff]  ;;  %v2841_v40 = vld [vmem:[#allocation7 + $0x440] sm:$0xff] }
 0x242   : > { %1823 = vmatprep.mubr.f32.mxu0 %v8624_v7  ;;  %v2724_v7 = vld [vmem:[#allocation7 + $0x98] sm:$0xff] }
 0x243   : > { %v4868_v60 = vpack.c.bf16 %v2724_v7, %v2723_v58  ;;  %v8663_v58 = vld [vmem:[#allocation12_spill] sm:$0xff]  ;;  %v8664_v7 = vld [vmem:[#allocation57_spill] sm:$0xff] }
 0x244   : > { %4866 = vmatpush1.bf16.msra.mxu1 %v4865_v53 }
 0x245   : > { %4230 = vmatmul.mubr.msk.f32.gmra.mrb[12].mxu0 %vm6050_vm2, %v6176_v11  ;;  %4867 = vmatprep.subr.bf16.mxu1 %v8563_v52  ;;  %v2725_v11 = vld [vmem:[#allocation7 + $0xa0] sm:$0xff] }
 0x246   : > { %1828 = vmatprep.mubr.f32.mxu0 %v8625_v33  ;;  %v2726_v33 = vld [vmem:[#allocation7 + $0xa8] sm:$0xff] }
 0x248   : > { %4869 = vmatpush1.bf16.msra.mxu1 %v4868_v60  ;;  %v8665_v60 = vld [vmem:[#allocation14_spill] sm:$0xff] }
 0x249   : > { %1829 = vmatmul.mubr.f32.gmra.mrb[14].mxu0 %v6194_v32  ;;  %v4871_v32 = vpack.c.bf16 %v2726_v33, %v2725_v11  ;;  %4870 = vmatprep.subr.bf16.mxu1 %v8563_v52  ;;  %v2843_v11 = vld [vmem:[#allocation7 + $0x450] sm:$0xff] }
 0x24a   : > { %1833 = vmatprep.mubr.f32.mxu0 %v8626_v44  ;;  %v2728_v44 = vld [vmem:[#allocation7 + $0xb8] sm:$0xff] }
 0x24b   : > { %v4874_v61 = vpack.c.bf16 %v2728_v44, %v2727_v34  ;;  %v2845_v44 = vld [vmem:[#allocation7 + $0x460] sm:$0xff] }
 0x24c   : > { %4872 = vmatpush1.bf16.msra.mxu1 %v4871_v32 }
 0x24d   : > { %4232 = vmatmul.mubr.msk.f32.gmra.mrb[16].mxu0 %vm6050_vm2, %v6213_v55  ;;  %4873 = vmatprep.subr.bf16.mxu1 %v8563_v52  ;;  %v2729_v55 = vld [vmem:[#allocation7 + $0xc0] sm:$0xff] }
 0x24e   : > { %1838 = vmatprep.mubr.f32.mxu0 %v8627_v49  ;;  %v2730_v49 = vld [vmem:[#allocation7 + $0xc8] sm:$0xff] }
 0x250   : > { %4875 = vmatpush1.bf16.msra.mxu1 %v4874_v61  ;;  %v2846_v61 = vld [vmem:[#allocation7 + $0x468] sm:$0xff] }
 0x251   : > { %1839 = vmatmul.mubr.f32.gmra.mrb[18].mxu0 %v6228_v17  ;;  %v4877_v17 = vpack.c.bf16 %v2730_v49, %v2729_v55  ;;  %4876 = vmatprep.subr.bf16.mxu1 %v8563_v52  ;;  %v2847_v55 = vld [vmem:[#allocation7 + $0x470] sm:$0xff]  ;;  %v2848_v49 = vld [vmem:[#allocation7 + $0x478] sm:$0xff] }
 0x252   : > { %1843 = vmatprep.mubr.f32.mxu0 %v8628_v4  ;;  %v8649_v4 = vld [vmem:[#allocation30_spill] sm:$0xff] }
 0x254   : > { %4878 = vmatpush1.bf16.msra.mxu1 %v4877_v17 }
 0x255   : > { %4234 = vmatmul.mubr.msk.f32.gmra.mrb[20].mxu0 %vm6050_vm2, %v6243_v36  ;;  %4879 = vmatprep.subr.bf16.mxu1 %v8563_v52  ;;  %v8648_v36 = vld [vmem:[#allocation28_spill] sm:$0xff] }
 0x256   : > { %1848 = vmatprep.mubr.f32.mxu0 %v8629_v13  ;;  %v8651_v13 = vld [vmem:[#allocation33_spill] sm:$0xff] }
 0x259   : > { %1849 = vmatmul.mubr.f32.gmra.mrb[22].mxu0 %v6263_v1  ;;  %v8650_v1 = vld [vmem:[#allocation32_spill] sm:$0xff] }
 0x25a   : > { %1853 = vmatprep.mubr.f32.mxu0 %v8630_v39  ;;  %v8653_v39 = vld [vmem:[#allocation40_spill] sm:$0xff] }
 0x25d   : > { %4236 = vmatmul.mubr.msk.f32.gmra.mrb[24].mxu0 %vm6050_vm2, %v6284_v6  ;;  %v8652_v6 = vld [vmem:[#allocation38_spill] sm:$0xff] }
 0x25e   : > { %1858 = vmatprep.mubr.f32.mxu0 %v8631_v51  ;;  %v8654_v51 = vld [vmem:[#allocation44_spill] sm:$0xff] }
 0x261   : > { %1859 = vmatmul.mubr.f32.gmra.mrb[26].mxu0 %v8648_v36  ;;  %v2738_v36 = vld [vmem:[#allocation7 + $0x108] sm:$0xff] }
 0x262   : > { %1863 = vmatprep.mubr.f32.mxu0 %v8633_v27  ;;  %v8655_v27 = vld [vmem:[#allocation47_spill] sm:$0xff] }
 0x265   : > { %4238 = vmatmul.mubr.msk.f32.gmra.mrb[28].mxu0 %vm6050_vm2, %v8649_v4 }
 0x266   : > { %1868 = vmatprep.mubr.f32.mxu0 %v8634_v43  ;;  %v2835_v43 = vld [vmem:[#allocation7 + $0x410] sm:$0xff] }
 0x269   : > { %1869 = vmatmul.mubr.f32.gmra.mrb[30].mxu0 %v8650_v1  ;;  %v8669_v1 = vld [vmem:[#allocation61_spill] sm:$0xff] }
 0x26a   : > { %1873 = vmatprep.mubr.f32.mxu0 %v8635_v3  ;;  %v2836_v3 = vld [vmem:[#allocation7 + $0x418] sm:$0xff] }
 0x26d   : > { %4240 = vmatmul.mubr.msk.f32.gmra.mrb[32].mxu0 %vm6050_vm2, %v8651_v13 }
 0x26e   : > { %1878 = vmatprep.mubr.f32.mxu0 %v8636_v24  ;;  %v7043_v24 = vpack.c.bf16 %v2836_v3, %v2835_v43  ;;  %v2744_v3 = vld [vmem:[#allocation7 + $0x138] sm:$0xff] }
 0x270   : > { %8656 = vst [vmem:[#allocation37_spill] sm:$0xff] %v7043_v24  ;;  %5037 = vmatprep.subr.bf16.mxu0 %v7043_v24 }
 0x271   : > { %1879 = vmatmul.mubr.f32.gmra.mrb[34].mxu0 %v8652_v6 }
 0x272   : > { %1883 = vmatprep.mubr.f32.mxu0 %v8637_v37  ;;  %v2731_v37 = vld [vmem:[#allocation7 + $0xd0] sm:$0xff]  ;;  %5039 = vmatpush3.bf16.msra.mxu0 %v7043_v24 }
 0x273   : > { %v4880_v12 = vpack.c.bf16 %v2732_v0, %v2731_v37 }
 0x275   : > { %4242 = vmatmul.mubr.msk.f32.gmra.mrb[36].mxu0 %vm6050_vm2, %v8653_v39  ;;  %4881 = vmatpush1.bf16.msra.mxu1 %v4880_v12 }
 0x276   : > { %1888 = vmatprep.mubr.f32.mxu0 %v8638_v9  ;;  %v8657_v9 = vld [vmem:[#allocation49_spill] sm:$0xff]  ;;  %4882 = vmatprep.subr.bf16.mxu1 %v8563_v52 }
 0x278   : > { %v7045_v19 = vpop.f32.mrb[0].mxu1 }
 0x279   : > { %1889 = vmatmul.mubr.f32.gmra.mrb[38].mxu0 %v8654_v51  ;;  %4884 = vmatpush1.bf16.msra.mxu1 %v4883_v5  ;;  %v2747_v5 = vld [vmem:[#allocation7 + $0x150] sm:$0xff] }
 0x27a   : > { %1893 = vmatprep.mubr.f32.mxu0 %v8639_v48  ;;  %v7049_v48 = vpop.f32.mrb[1].mxu1  ;;  %4885 = vmatprep.subr.bf16.mxu1 %v8563_v52 }
 0x27c   : > { %v7064_v42 = vpop.f32.mrb[2].mxu1 }
 0x27d   : > { %4244 = vmatmul.mubr.msk.f32.gmra.mrb[40].mxu0 %vm6050_vm2, %v8655_v27  ;;  %v7067_v16 = vpop.f32.mrb[3].mxu1  ;;  %4887 = vmatpush1.bf16.msra.mxu1 %v4886_v21  ;;  %v2750_v21 = vld [vmem:[#allocation7 + $0x168] sm:$0xff] }
 0x27e   : > { %1898 = vmatprep.mubr.f32.mxu0 %v8640_v38  ;;  %v7053_v38 = vpack.c.bf16 %v2838_v45, %v2837_v35  ;;  %4888 = vmatprep.subr.bf16.mxu1 %v8563_v52  ;;  %v2746_v35 = vld [vmem:[#allocation7 + $0x148] sm:$0xff] }
 0x280   : > { %8658 = vst [vmem:[#allocation41_spill] sm:$0xff] %v7053_v38  ;;  %5041 = vmatprep.subr.bf16.mxu0 %v7053_v38  ;;  %4258 = vmatmul.mubr.msk.f32.vlgmr.msra.gmra.mrb[32].mxu1 %vm6050_vm2, %v8663_v58  ;;  %v7088_v32 = vpop.f32.mrb[4].mxu1 }
 0x281   : > { %1899 = vmatmul.mubr.f32.gmra.mrb[42].mxu0 %v8657_v9  ;;  %2918 = vmatprep.mubr.f32.mxu1 %v8665_v60  ;;  %v7090_v34 = vpop.f32.mrb[5].mxu1  ;;  %v2745_v9 = vld [vmem:[#allocation7 + $0x140] sm:$0xff] }
 0x282   : > { %1903 = vmatprep.mubr.f32.mxu0 %v8641_v14  ;;  %5043 = vmatpush3.bf16.msra.mxu0 %v7053_v38  ;;  %v7062_v14 = vpack.c.bf16 %v2840_v28, %v2839_v54  ;;  %v4901_v46 = vpack.c.bf16 %v2746_v35, %v2745_v9  ;;  %v2759_v9 = vld [vmem:[#allocation7 + $0x1b0] sm:$0xff]  ;;  %v2760_v35 = vld [vmem:[#allocation7 + $0x1b8] sm:$0xff] }
 0x284   : > { %8660 = vst [vmem:[#allocation43_spill] sm:$0xff] %v7062_v14  ;;  %5045 = vmatprep.subr.bf16.mxu0 %v7062_v14  ;;  %2919 = vmatmul.mubr.f32.gmra.mrb[34].mxu1 %v8663_v58  ;;  %v7107_v17 = vpop.f32.mrb[6].mxu1 }
 0x285   : > { %4246 = vmatmul.mubr.msk.f32.gmra.mrb[44].mxu0 %vm6050_vm2, %v8659_v50  ;;  %v7109_v4 = vpop.f32.mrb[7].mxu1  ;;  %v2748_v50 = vld [vmem:[#allocation7 + $0x158] sm:$0xff] }
 0x286   : > { %1908 = vmatprep.mubr.f32.mxu0 %v8642_v15  ;;  %v2842_v15 = vld [vmem:[#allocation7 + $0x448] sm:$0xff]  ;;  %5047 = vmatpush3.bf16.msra.mxu0 %v7062_v14  ;;  %v4904_v28 = vpack.c.bf16 %v2748_v50, %v2747_v5  ;;  %v4922_v5 = vpack.c.bf16 %v2760_v35, %v2759_v9 }
 0x287   : > { %v7073_v53 = vpack.c.bf16 %v2842_v15, %v2841_v40  ;;  %v4907_v40 = vpack.c.bf16 %v2750_v21, %v2749_v10  ;;  %v2762_v10 = vld [vmem:[#allocation7 + $0x1c8] sm:$0xff] }
 0x288   : > { %v7120_v6 = vpop.f32.mrb[8].mxu1 }
 0x289   : > { %1909 = vmatmul.mubr.f32.gmra.mrb[46].mxu0 %v8661_v30  ;;  %8662 = vst [vmem:[#allocation46_spill] sm:$0xff] %v7073_v53  ;;  %5049 = vmatprep.subr.bf16.mxu0 %v7073_v53  ;;  %v7122_v51 = vpop.f32.mrb[9].mxu1 }
 0x28a   : > { %1913 = vmatprep.mubr.f32.mxu0 %v8643_v18  ;;  %v2844_v18 = vld [vmem:[#allocation7 + $0x458] sm:$0xff]  ;;  %5051 = vmatpush3.bf16.msra.mxu0 %v7073_v53 }
 0x28b   : > { %v7086_v33 = vpack.c.bf16 %v2844_v18, %v2843_v11  ;;  %v2752_v11 = vld [vmem:[#allocation7 + $0x178] sm:$0xff] }
 0x28d   : > { %4248 = vmatmul.mubr.msk.f32.gmra.mrb[48].mxu0 %vm6050_vm2, %v8664_v7  ;;  %8666 = vst [vmem:[#allocation50_spill] sm:$0xff] %v7086_v33  ;;  %5053 = vmatprep.subr.bf16.mxu0 %v7086_v33  ;;  %v2751_v7 = vld [vmem:[#allocation7 + $0x170] sm:$0xff] }
 0x28e   : > { %1918 = vmatprep.mubr.f32.mxu0 %v8644_v29  ;;  %5055 = vmatpush3.bf16.msra.mxu0 %v7086_v33  ;;  %v7097_v29 = vpack.c.bf16 %v2846_v61, %v2845_v44  ;;  %v4910_v44 = vpack.c.bf16 %v2752_v11, %v2751_v7  ;;  %v2763_v11 = vld [vmem:[#allocation7 + $0x1d0] sm:$0xff] }
 0x290   : > { %8667 = vst [vmem:[#allocation53_spill] sm:$0xff] %v7097_v29  ;;  %5057 = vmatprep.subr.bf16.mxu0 %v7097_v29 }
 0x291   : > { %1919 = vmatmul.mubr.f32.gmra.mrb[50].mxu0 %v6505_v59  ;;  %v7105_v59 = vpack.c.bf16 %v2848_v49, %v2847_v55  ;;  %v2753_v55 = vld [vmem:[#allocation7 + $0x180] sm:$0xff]  ;;  %v2754_v49 = vld [vmem:[#allocation7 + $0x188] sm:$0xff] }
 0x292   : > { %1923 = vmatprep.mubr.f32.mxu0 %v8645_v22  ;;  %5059 = vmatpush3.bf16.msra.mxu0 %v7097_v29  ;;  %v2737_v22 = vld [vmem:[#allocation7 + $0x100] sm:$0xff] }
 0x293   : > { %8668 = vst [vmem:[#allocation63_spill] sm:$0xff] %v7105_v59  ;;  %5061 = vmatprep.subr.bf16.mxu0 %v7105_v59  ;;  %v4889_v13 = vpack.c.bf16 %v2738_v36, %v2737_v22  ;;  %v4913_v36 = vpack.c.bf16 %v2754_v49, %v2753_v55 }
 0x295   : > { %4250 = vmatmul.mubr.msk.f32.gmra.mrb[52].mxu0 %vm6050_vm2, %v6521_v8  ;;  %4890 = vmatpush1.bf16.msra.mxu1 %v4889_v13  ;;  %v2739_v8 = vld [vmem:[#allocation7 + $0x110] sm:$0xff] }
 0x296   : > { %1928 = vmatprep.mubr.f32.mxu0 %v8646_v56  ;;  %5063 = vmatpush3.bf16.msra.mxu0 %v7105_v59  ;;  %v2740_v56 = vld [vmem:[#allocation7 + $0x118] sm:$0xff]  ;;  %v2755_v13 = vld [vmem:[#allocation7 + $0x190] sm:$0xff] }
 0x297   : > { %4891 = vmatprep.subr.bf16.mxu1 %v8563_v52  ;;  %v4892_v39 = vpack.c.bf16 %v2740_v56, %v2739_v8  ;;  %v2756_v8 = vld [vmem:[#allocation7 + $0x198] sm:$0xff] }
 0x299   : > { %1929 = vmatmul.mubr.f32.gmra.mrb[54].mxu0 %v8669_v1  ;;  %4893 = vmatpush1.bf16.msra.mxu1 %v4892_v39  ;;  %v4916_v39 = vpack.c.bf16 %v2756_v8, %v2755_v13 }
 0x29a   : > { %1933 = vmatprep.mubr.f32.mxu0 %v6953_v23  ;;  %4894 = vmatprep.subr.bf16.mxu1 %v8563_v52  ;;  %v2742_v23 = vld [vmem:[#allocation7 + $0x128] sm:$0xff] }
 0x29d   : > { %4252 = vmatmul.mubr.msk.f32.gmra.mrb[56].mxu0 %vm6050_vm2, %v6806_v47  ;;  %v2741_v47 = vld [vmem:[#allocation7 + $0x120] sm:$0xff] }
 0x29e   : > { %1938 = vmatprep.mubr.f32.mxu0 %v6958_v20  ;;  %v7131_v20 = vpop.f32.mrb[10].mxu1  ;;  %v4895_v27 = vpack.c.bf16 %v2742_v23, %v2741_v47  ;;  %v2757_v23 = vld [vmem:[#allocation7 + $0x1a0] sm:$0xff] }
 0x29f   : > { %v7133_v43 = vpop.f32.mrb[11].mxu1 }
 0x2a0   : > { %4896 = vmatpush1.bf16.msra.mxu1 %v4895_v27  ;;  %v7137_v37 = vpop.f32.mrb[12].mxu1  ;;  %v2758_v27 = vld [vmem:[#allocation7 + $0x1a8] sm:$0xff] }
 0x2a1   : > { %1939 = vmatmul.mubr.f32.gmra.mrb[58].mxu0 %v6823_v62  ;;  %4897 = vmatprep.subr.bf16.mxu1 %v8563_v52  ;;  %v2743_v62 = vld [vmem:[#allocation7 + $0x130] sm:$0xff]  ;;  %v7139_v12 = vpop.f32.mrb[13].mxu1 }
 0x2a2   : > { %1943 = vmatprep.mubr.f32.mxu0 %v8632_v25  ;;  %v4898_v0 = vpack.c.bf16 %v2744_v3, %v2743_v62  ;;  %v7142_v45 = vpop.f32.mrb[14].mxu1  ;;  %v4919_v3 = vpack.c.bf16 %v2758_v27, %v2757_v23  ;;  %v2765_v23 = vld [vmem:[#allocation7 + $0x1e0] sm:$0xff]  ;;  %v2766_v27 = vld [vmem:[#allocation7 + $0x1e8] sm:$0xff] }
 0x2a3   : > { %v7144_v57 = vpop.f32.mrb[15].mxu1  ;;  %v4931_v9 = vpack.c.bf16 %v2766_v27, %v2765_v23 }
 0x2a4   : > { %4899 = vmatpush1.bf16.msra.mxu1 %v4898_v0  ;;  %v7147_v54 = vpop.f32.mrb[16].mxu1 }
 0x2a5   : > { %4254 = vmatmul.mubr.msk.f32.gmra.mrb[60].mxu0 %vm6050_vm2, %v8663_v58  ;;  %4900 = vmatprep.subr.bf16.mxu1 %v8563_v52  ;;  %v7149_v31 = vpop.f32.mrb[17].mxu1 }
 0x2a6   : > { %1948 = vmatprep.mubr.f32.mxu0 %v8665_v60  ;;  %v7152_v30 = vpop.f32.mrb[18].mxu1 }
 0x2a7   : > { %v7154_v15 = vpop.f32.mrb[19].mxu1 }
 0x2a8   : > { %4902 = vmatpush1.bf16.msra.mxu1 %v4901_v46  ;;  %v7157_v18 = vpop.f32.mrb[20].mxu1 }
 0x2a9   : > { %1949 = vmatmul.mubr.f32.gmra.mrb[62].mxu0 %v8663_v58  ;;  %4903 = vmatprep.subr.bf16.mxu1 %v8563_v52  ;;  %v7159_v61 = vpop.f32.mrb[21].mxu1 }
 0x2aa   : > { %v7162_v22 = vpop.f32.mrb[22].mxu1 }
 0x2ab   : > { %v7164_v1 = vpop.f32.mrb[23].mxu1 }
 0x2ac   : > { %4905 = vmatpush1.bf16.msra.mxu1 %v4904_v28  ;;  %v7167_v56 = vpop.f32.mrb[24].mxu1  ;;  %v2761_v28 = vld [vmem:[#allocation7 + $0x1c0] sm:$0xff] }
 0x2ad   : > { %4906 = vmatprep.subr.bf16.mxu1 %v8563_v52  ;;  %v7169_v47 = vpop.f32.mrb[25].mxu1 }
 0x2ae   : > { %v7172_v62 = vpop.f32.mrb[26].mxu1 }
 0x2af   : > { %v7174_v0 = vpop.f32.mrb[27].mxu1 }
 0x2b0   : > { %4908 = vmatpush1.bf16.msra.mxu1 %v4907_v40  ;;  %v4925_v40 = vpack.c.bf16 %v2762_v10, %v2761_v28  ;;  %v2767_v10 = vld [vmem:[#allocation7 + $0x1f0] sm:$0xff] }
 0x2b1   : > { %4909 = vmatprep.subr.bf16.mxu1 %v8563_v52 }
 0x2b2   : > { %v7177_v46 = vpop.f32.mrb[28].mxu1 }
 0x2b3   : > { %v7179_v50 = vpop.f32.mrb[29].mxu1 }
 0x2b4   : > { %4911 = vmatpush1.bf16.msra.mxu1 %v4910_v44  ;;  %v2764_v44 = vld [vmem:[#allocation7 + $0x1d8] sm:$0xff] }
 0x2b5   : > { %4912 = vmatprep.subr.bf16.mxu1 %v8563_v52  ;;  %v4928_v55 = vpack.c.bf16 %v2764_v44, %v2763_v11 }
 0x2b6   : > { %v7182_v21 = vpop.f32.mrb[30].mxu1 }
 0x2b7   : > { %v7184_v7 = vpop.f32.mrb[31].mxu1 }
 0x2b8   : > { %4914 = vmatpush1.bf16.msra.mxu1 %v4913_v36  ;;  %v7190_v36 = vld [vmem:[%s8320_s4] ss:$0 sm:$0xff] }
 0x2b9   : > { %4915 = vmatprep.subr.bf16.mxu1 %v8563_v52 }
 0x2bc   : > { %4917 = vmatpush1.bf16.msra.mxu1 %v4916_v39  ;;  %v7196_v39 = vld [vmem:[%s8321_s5] ss:$0 sm:$0xff] }
 0x2bd   : > { %4918 = vmatprep.subr.bf16.mxu1 %v8563_v52 }
 0x2c0   : > { %4920 = vmatpush1.bf16.msra.mxu1 %v4919_v3 }
 0x2c1   : > { %4921 = vmatprep.subr.bf16.mxu1 %v8563_v52 }
 0x2c4   : > { %4923 = vmatpush1.bf16.msra.mxu1 %v4922_v5 }
 0x2c5   : > { %4924 = vmatprep.subr.bf16.mxu1 %v8563_v52 }
 0x2c8   : > { %4926 = vmatpush1.bf16.msra.mxu1 %v4925_v40  ;;  %v2768_v40 = vld [vmem:[#allocation7 + $0x1f8] sm:$0xff] }
 0x2c9   : > { %4927 = vmatprep.subr.bf16.mxu1 %v8563_v52  ;;  %v4934_v11 = vpack.c.bf16 %v2768_v40, %v2767_v10 }
 0x2cc   : > { %4929 = vmatpush1.bf16.msra.mxu1 %v4928_v55 }
 0x2cd   : > { %4930 = vmatprep.subr.bf16.mxu1 %v8563_v52 }
 0x2d0   : > { %4932 = vmatpush1.bf16.msra.mxu1 %v4931_v9 }
 0x2d1   : > { %4933 = vmatprep.subr.bf16.mxu1 %v8563_v52 }
 0x2d4   : > { %4935 = vmatpush1.bf16.msra.mxu1 %v4934_v11 }
 0x2d5   : > { %4936 = vmatprep.subr.bf16.mxu1 %v8563_v52 }
 0x300   : > { %v1795_v49 = vpop.f32.mrb[0].mxu0 }
 0x301   : > { %v2021_v13 = vadd.f32 %v7049_v48, %v1795_v49  ;;  %v1797_v8 = vpop.f32.mrb[1].mxu0 }
 0x303   : > { %v2186_v3 = vmul.f32 %v7190_v36, %v2021_v13 }
 0x304   : > { %v1800_v35 = vpop.f32.mrb[2].mxu0 }
 0x305   : > { %v2225_v5 = vadd.f32 %v7196_v39, %v2186_v3  ;;  %v2026_v28 = vadd.f32 %v7045_v19, %v1800_v35  ;;  %v1802_v48 = vpop.f32.mrb[3].mxu0 }
 0x307   : > { %v2257_v44 = vmax.f32 %v2225_v5, 0.0  ;;  %v2187_v55 = vmul.f32 %v7190_v36, %v2026_v28 }
 0x308   : > { %v1805_v49 = vpop.f32.mrb[4].mxu0 }
 0x309   : > { %v7204_v8 = vrot.slane %v2257_v44, 7  ;;  %v2226_v13 = vadd.f32 %v7196_v39, %v2187_v55  ;;  %v2031_v23 = vadd.f32 %v7067_v16, %v1805_v49  ;;  %v1807_v27 = vpop.f32.mrb[5].mxu0 }
 0x30b   : > { %v2258_v19 = vmax.f32 %v2226_v13, 0.0  ;;  %v2188_v3 = vmul.f32 %v7190_v36, %v2031_v23  ;;  %v7214_v10 = vsel %vm501_vm0, 0.0, %v7204_v8 }
 0x30c   : > { %v1810_v9 = vpop.f32.mrb[6].mxu0  ;;  %v2479_v49 = vrot.slane %v7214_v10, 1 }
 0x30d   : > { %v2322_v35 = vrot.slane %v2258_v19, 7  ;;  %v2227_v5 = vadd.f32 %v7196_v39, %v2188_v3  ;;  %v2036_v28 = vadd.f32 %v7064_v42, %v1810_v9  ;;  %v1812_v48 = vpop.f32.mrb[7].mxu0 }
 0x30f   : > { %v7218_v16 = vsel %vm501_vm0, %v7204_v8, %v2322_v35  ;;  %v2259_v40 = vmax.f32 %v2227_v5, 0.0  ;;  %v2189_v11 = vmul.f32 %v7190_v36, %v2036_v28  ;;  %v7222_v44 = vsel %vm501_vm0, %v2322_v35, 0.0 }
 0x310   : > { %v1815_v55 = vpop.f32.mrb[8].mxu0  ;;  %v2480_v42 = vrot.slane %v7218_v16, 1  ;;  %v2482_v13 = vrot.slane %v7222_v44, 1 }
 0x311   : > { %v7227_v23 = vrot.slane %v2259_v40, 7  ;;  %v2228_v27 = vadd.f32 %v7196_v39, %v2189_v11  ;;  %v2041_v19 = vadd.f32 %v7090_v34, %v1815_v55  ;;  %v1817_v3 = vpop.f32.mrb[9].mxu0 }
 0x312   : > { %v7232_v9 = vsel %vm668_vm1, %v2479_v49, %v2480_v42  ;;  %v7242_v40 = vsel %vm668_vm1, %v2480_v42, %v2482_v13 }
 0x313   : > { %8670 = vst [vmem:[#allocation15_spill] sm:$0xff] %v7232_v9  ;;  %v2260_v5 = vmax.f32 %v2228_v27, 0.0  ;;  %v2190_v35 = vmul.f32 %v7190_v36, %v2041_v19  ;;  %2923 = vmatprep.mubr.f32.mxu1 %v7232_v9  ;;  %v2418_v28 = vsel %vm501_vm0, 0.0, %v7227_v23  ;;  %8671 = vst [vmem:[#allocation16_spill] sm:$0xff] %v7242_v40 }
 0x314   : > { %v1820_v48 = vpop.f32.mrb[10].mxu0  ;;  %4260 = vmatmul.mubr.msk.f32.gmra.mrb[36].mxu1 %vm6050_vm2, %v7204_v8  ;;  %v2484_v27 = vrot.slane %v2418_v28, 1  ;;  %v2589_v19 = vrot.slane %v2418_v28, 2 }
 0x315   : > { %v2325_v34 = vrot.slane %v2260_v5, 7  ;;  %v2229_v11 = vadd.f32 %v7196_v39, %v2190_v35  ;;  %v2046_v55 = vadd.f32 %v7088_v32, %v1820_v48  ;;  %v1822_v49 = vpop.f32.mrb[11].mxu0  ;;  %2928 = vmatprep.mubr.f32.mxu1 %v7242_v40 }
 0x317   : > { %v7249_v3 = vsel %vm501_vm0, %v7227_v23, %v2325_v34  ;;  %v2434_v60 = vsel %vm501_vm0, %v2325_v34, 0.0  ;;  %v2261_v58 = vmax.f32 %v2229_v11, 0.0  ;;  %v2191_v42 = vmul.f32 %v7190_v36, %v2046_v55 }
 0x318   : > { %v2592_v13 = vrot.slane %v2434_v60, 2  ;;  %v1825_v5 = vpop.f32.mrb[12].mxu0  ;;  %2929 = vmatmul.mubr.f32.gmra.mrb[38].mxu1 %v7218_v16  ;;  %v2485_v32 = vrot.slane %v7249_v3, 1  ;;  %v2590_v35 = vrot.slane %v7249_v3, 2  ;;  %v2487_v48 = vrot.slane %v2434_v60, 1 }
 0x319   : > { %v7256_v49 = vrot.slane %v2261_v58, 7  ;;  %v2230_v28 = vadd.f32 %v7196_v39, %v2191_v42  ;;  %v2051_v25 = vadd.f32 %v7109_v4, %v1825_v5  ;;  %v1827_v59 = vpop.f32.mrb[13].mxu0 }
 0x31a   : > { %v7261_v34 = vsel %vm668_vm1, %v2484_v27, %v2485_v32  ;;  %v7264_v11 = vsel %vm781_vm3, %v2589_v19, %v2590_v35  ;;  %v7267_v55 = vsel %vm781_vm3, %v2590_v35, %v2592_v13  ;;  %v7279_v59 = vsel %vm668_vm1, %v2485_v32, %v2487_v48 }
 0x31b   : > { %8672 = vst [vmem:[#allocation17_spill] sm:$0xff] %v7261_v34  ;;  %v2262_v29 = vmax.f32 %v2230_v28, 0.0  ;;  %v2192_v33 = vmul.f32 %v7190_v36, %v2051_v25  ;;  %2933 = vmatprep.mubr.f32.mxu1 %v7261_v34  ;;  %4568 = vmatprep.mubr.f32.mxu0 %v7264_v11  ;;  %v2419_v58 = vsel %vm501_vm0, 0.0, %v7256_v49  ;;  %8673 = vst [vmem:[#allocation18_spill] sm:$0xff] %v7279_v59 }
 0x31c   : > { %v1830_v60 = vpop.f32.mrb[14].mxu0  ;;  %4262 = vmatmul.mubr.msk.f32.gmra.mrb[40].mxu1 %vm6050_vm2, %v7227_v23  ;;  %4569 = vmatmul.mubr.f32.vlgmr.msra.gmra.mrb[64].mxu0 %v7267_v55  ;;  %v2489_v42 = vrot.slane %v2419_v58, 1  ;;  %v2594_v13 = vrot.slane %v2419_v58, 2 }
 0x31d   : > { %v2328_v4 = vrot.slane %v2262_v29, 7  ;;  %v2231_v25 = vadd.f32 %v7196_v39, %v2192_v33  ;;  %v2056_v27 = vadd.f32 %v7107_v17, %v1830_v60  ;;  %v1832_v19 = vpop.f32.mrb[15].mxu0  ;;  %2938 = vmatprep.mubr.f32.mxu1 %v7279_v59 }
 0x31f   : > { %v7286_v5 = vsel %vm501_vm0, %v7256_v49, %v2328_v4  ;;  %v2263_v35 = vmax.f32 %v2231_v25, 0.0  ;;  %v2193_v28 = vmul.f32 %v7190_v36, %v2056_v27  ;;  %v2435_v32 = vsel %vm501_vm0, %v2328_v4, 0.0 }
 0x320   : > { %v1835_v48 = vpop.f32.mrb[16].mxu0  ;;  %2939 = vmatmul.mubr.f32.gmra.mrb[42].mxu1 %v7249_v3  ;;  %v2490_v33 = vrot.slane %v7286_v5, 1  ;;  %v2595_v29 = vrot.slane %v7286_v5, 2  ;;  %v2597_v17 = vrot.slane %v2435_v32, 2  ;;  %v2492_v60 = vrot.slane %v2435_v32, 1 }
 0x321   : > { %v7293_v19 = vrot.slane %v2263_v35, 7  ;;  %v2232_v58 = vadd.f32 %v7196_v39, %v2193_v28  ;;  %v2061_v53 = vadd.f32 %v7122_v51, %v1835_v48  ;;  %v1837_v25 = vpop.f32.mrb[17].mxu0 }
 0x322   : > { %v7298_v27 = vsel %vm668_vm1, %v2489_v42, %v2490_v33  ;;  %v7301_v4 = vsel %vm781_vm3, %v2594_v13, %v2595_v29  ;;  %v7304_v14 = vsel %vm781_vm3, %v2595_v29, %v2597_v17  ;;  %v7316_v42 = vsel %vm668_vm1, %v2490_v33, %v2492_v60 }
 0x323   : > { %8674 = vst [vmem:[#allocation19_spill] sm:$0xff] %v7298_v27  ;;  %v2264_v38 = vmax.f32 %v2232_v58, 0.0  ;;  %v2194_v24 = vmul.f32 %v7190_v36, %v2061_v53  ;;  %2943 = vmatprep.mubr.f32.mxu1 %v7298_v27  ;;  %4571 = vmatprep.mubr.f32.mxu0 %v7301_v4  ;;  %v2420_v51 = vsel %vm501_vm0, 0.0, %v7293_v19  ;;  %8675 = vst [vmem:[#allocation20_spill] sm:$0xff] %v7316_v42 }
 0x324   : > { %v1840_v35 = vpop.f32.mrb[18].mxu0  ;;  %4264 = vmatmul.mubr.msk.f32.gmra.mrb[44].mxu1 %vm6050_vm2, %v7256_v49  ;;  %4572 = vmatmul.mubr.f32.gmra.mrb[66].mxu0 %v7304_v14  ;;  %v2494_v48 = vrot.slane %v2420_v51, 1  ;;  %v2599_v29 = vrot.slane %v2420_v51, 2 }
 0x325   : > { %v2331_v13 = vrot.slane %v2264_v38, 7  ;;  %v2233_v53 = vadd.f32 %v7196_v39, %v2194_v24  ;;  %v2066_v28 = vadd.f32 %v7120_v6, %v1840_v35  ;;  %v1842_v32 = vpop.f32.mrb[19].mxu0  ;;  %2948 = vmatprep.mubr.f32.mxu1 %v7316_v42 }
 0x327   : > { %v7323_v17 = vsel %vm501_vm0, %v7293_v19, %v2331_v13  ;;  %v2265_v58 = vmax.f32 %v2233_v53, 0.0  ;;  %v2195_v25 = vmul.f32 %v7190_v36, %v2066_v28  ;;  %v2436_v33 = vsel %vm501_vm0, %v2331_v13, 0.0 }
 0x328   : > { %v1845_v60 = vpop.f32.mrb[20].mxu0  ;;  %2949 = vmatmul.mubr.f32.gmra.mrb[46].mxu1 %v7286_v5  ;;  %v2495_v24 = vrot.slane %v7323_v17, 1  ;;  %v2600_v38 = vrot.slane %v7323_v17, 2  ;;  %v2602_v6 = vrot.slane %v2436_v33, 2  ;;  %v2497_v35 = vrot.slane %v2436_v33, 1 }
 0x329   : > { %v7330_v32 = vrot.slane %v2265_v58, 7  ;;  %v2234_v51 = vadd.f32 %v7196_v39, %v2195_v25  ;;  %v2071_v63 = vadd.f32 %v7133_v43, %v1845_v60  ;;  %v1847_v53 = vpop.f32.mrb[21].mxu0 }
 0x32a   : > { %v7335_v28 = vsel %vm668_vm1, %v2494_v48, %v2495_v24  ;;  %v7338_v13 = vsel %vm781_vm3, %v2599_v29, %v2600_v38  ;;  %v7341_v42 = vsel %vm781_vm3, %v2600_v38, %v2602_v6  ;;  %v7353_v48 = vsel %vm668_vm1, %v2495_v24, %v2497_v35 }
 0x32b   : > { %8676 = vst [vmem:[#allocation21_spill] sm:$0xff] %v7335_v28  ;;  %v2266_v27 = vmax.f32 %v2234_v51, 0.0  ;;  %v2196_v59 = vmul.f32 %v7190_v36, %v2071_v63  ;;  %2953 = vmatprep.mubr.f32.mxu1 %v7335_v28  ;;  %4574 = vmatprep.mubr.f32.mxu0 %v7338_v13  ;;  %v2421_v43 = vsel %vm501_vm0, 0.0, %v7330_v32  ;;  %8677 = vst [vmem:[#allocation22_spill] sm:$0xff] %v7353_v48 }
 0x32c   : > { %v1850_v58 = vpop.f32.mrb[22].mxu0  ;;  %4266 = vmatmul.mubr.msk.f32.gmra.mrb[48].mxu1 %vm6050_vm2, %v7293_v19  ;;  %4575 = vmatmul.mubr.f32.gmra.mrb[68].mxu0 %v7341_v42  ;;  %v2499_v60 = vrot.slane %v2421_v43, 1  ;;  %v2604_v38 = vrot.slane %v2421_v43, 2 }
 0x32d   : > { %v2334_v29 = vrot.slane %v2266_v27, 7  ;;  %v2235_v63 = vadd.f32 %v7196_v39, %v2196_v59  ;;  %v2076_v25 = vadd.f32 %v7131_v20, %v1850_v58  ;;  %v1852_v33 = vpop.f32.mrb[23].mxu0  ;;  %2958 = vmatprep.mubr.f32.mxu1 %v7353_v48 }
 0x32f   : > { %v7360_v6 = vsel %vm501_vm0, %v7330_v32, %v2334_v29  ;;  %v2267_v51 = vmax.f32 %v2235_v63, 0.0  ;;  %v2197_v53 = vmul.f32 %v7190_v36, %v2076_v25  ;;  %v2437_v24 = vsel %vm501_vm0, %v2334_v29, 0.0 }
 0x330   : > { %v1855_v35 = vpop.f32.mrb[24].mxu0  ;;  %2959 = vmatmul.mubr.f32.gmra.mrb[50].mxu1 %v7323_v17  ;;  %v2500_v59 = vrot.slane %v7360_v6, 1  ;;  %v2605_v20 = vrot.slane %v7360_v6, 2  ;;  %v2607_v27 = vrot.slane %v2437_v24, 2  ;;  %v2502_v58 = vrot.slane %v2437_v24, 1 }
 0x331   : > { %v7367_v33 = vrot.slane %v2267_v51, 7  ;;  %v2236_v43 = vadd.f32 %v7196_v39, %v2197_v53  ;;  %v2081_v48 = vadd.f32 %v7139_v12, %v1855_v35  ;;  %v1857_v63 = vpop.f32.mrb[25].mxu0 }
 0x332   : > { %v7372_v25 = vsel %vm668_vm1, %v2499_v60, %v2500_v59  ;;  %v7375_v29 = vsel %vm781_vm3, %v2604_v38, %v2605_v20  ;;  %v7378_v28 = vsel %vm781_vm3, %v2605_v20, %v2607_v27  ;;  %v7390_v60 = vsel %vm668_vm1, %v2500_v59, %v2502_v58 }
 0x333   : > { %8678 = vst [vmem:[#allocation23_spill] sm:$0xff] %v7372_v25  ;;  %8679 = vst [vmem:[#allocation24_spill] sm:$0xff] %v7378_v28  ;;  %v2268_v34 = vmax.f32 %v2236_v43, 0.0  ;;  %v2198_v40 = vmul.f32 %v7190_v36, %v2081_v48  ;;  %2963 = vmatprep.mubr.f32.mxu1 %v7372_v25  ;;  %4577 = vmatprep.mubr.f32.mxu0 %v7375_v29  ;;  %v2422_v12 = vsel %vm501_vm0, 0.0, %v7367_v33 }
 0x334   : > { %v1860_v51 = vpop.f32.mrb[26].mxu0  ;;  %4268 = vmatmul.mubr.msk.f32.gmra.mrb[52].mxu1 %vm6050_vm2, %v7330_v32  ;;  %4578 = vmatmul.mubr.f32.gmra.mrb[70].mxu0 %v7378_v28  ;;  %8680 = vst [vmem:[#allocation25_spill] sm:$0xff] %v7390_v60  ;;  %v2504_v35 = vrot.slane %v2422_v12, 1  ;;  %v2609_v20 = vrot.slane %v2422_v12, 2 }
 0x335   : > { %v2337_v38 = vrot.slane %v2268_v34, 7  ;;  %v2237_v48 = vadd.f32 %v7196_v39, %v2198_v40  ;;  %v2086_v53 = vadd.f32 %v7137_v37, %v1860_v51  ;;  %v1862_v24 = vpop.f32.mrb[27].mxu0  ;;  %2968 = vmatprep.mubr.f32.mxu1 %v7390_v60 }
 0x337   : > { %v7397_v27 = vsel %vm501_vm0, %v7367_v33, %v2337_v38  ;;  %v2269_v43 = vmax.f32 %v2237_v48, 0.0  ;;  %v2199_v63 = vmul.f32 %v7190_v36, %v2086_v53  ;;  %v2438_v59 = vsel %vm501_vm0, %v2337_v38, 0.0 }
 0x338   : > { %v1865_v58 = vpop.f32.mrb[28].mxu0  ;;  %2969 = vmatmul.mubr.f32.gmra.mrb[54].mxu1 %v7360_v6  ;;  %v2505_v40 = vrot.slane %v7397_v27, 1  ;;  %v2610_v37 = vrot.slane %v7397_v27, 2  ;;  %v2612_v34 = vrot.slane %v2438_v59, 2  ;;  %v2507_v51 = vrot.slane %v2438_v59, 1 }
 0x339   : > { %v7404_v24 = vrot.slane %v2269_v43, 7  ;;  %v2238_v12 = vadd.f32 %v7196_v39, %v2199_v63  ;;  %v2091_v60 = vadd.f32 %v7144_v57, %v1865_v58  ;;  %v1867_v48 = vpop.f32.mrb[29].mxu0 }
 0x33a   : > { %v7409_v53 = vsel %vm668_vm1, %v2504_v35, %v2505_v40  ;;  %v7412_v38 = vsel %vm781_vm3, %v2609_v20, %v2610_v37  ;;  %v7415_v25 = vsel %vm781_vm3, %v2610_v37, %v2612_v34  ;;  %v7427_v35 = vsel %vm668_vm1, %v2505_v40, %v2507_v51 }
 0x33b   : > { %8681 = vst [vmem:[#allocation26_spill] sm:$0xff] %v7409_v53  ;;  %8682 = vst [vmem:[#allocation27_spill] sm:$0xff] %v7412_v38  ;;  %v2270_v9 = vmax.f32 %v2238_v12, 0.0  ;;  %v2200_v28 = vmul.f32 %v7190_v36, %v2091_v60  ;;  %2973 = vmatprep.mubr.f32.mxu1 %v7409_v53  ;;  %4580 = vmatprep.mubr.f32.mxu0 %v7412_v38  ;;  %v2423_v57 = vsel %vm501_vm0, 0.0, %v7404_v24 }
 0x33c   : > { %8683 = vst [vmem:[#allocation29_spill] sm:$0xff] %v7415_v25  ;;  %v1870_v43 = vpop.f32.mrb[30].mxu0  ;;  %4270 = vmatmul.mubr.msk.f32.gmra.mrb[56].mxu1 %vm6050_vm2, %v7367_v33  ;;  %4581 = vmatmul.mubr.f32.gmra.mrb[72].mxu0 %v7415_v25  ;;  %8684 = vst [vmem:[#allocation31_spill] sm:$0xff] %v7427_v35  ;;  %v2509_v58 = vrot.slane %v2423_v57, 1  ;;  %v2614_v37 = vrot.slane %v2423_v57, 2 }
 0x33d   : > { %v2340_v20 = vrot.slane %v2270_v9, 7  ;;  %v2239_v60 = vadd.f32 %v7196_v39, %v2200_v28  ;;  %v2096_v63 = vadd.f32 %v7142_v45, %v1870_v43  ;;  %v1872_v59 = vpop.f32.mrb[31].mxu0  ;;  %2978 = vmatprep.mubr.f32.mxu1 %v7427_v35 }
 0x33f   : > { %v7434_v34 = vsel %vm501_vm0, %v7404_v24, %v2340_v20  ;;  %v2271_v12 = vmax.f32 %v2239_v60, 0.0  ;;  %v2201_v48 = vmul.f32 %v7190_v36, %v2096_v63  ;;  %v2439_v40 = vsel %vm501_vm0, %v2340_v20, 0.0 }
 0x340   : > { %v1875_v51 = vpop.f32.mrb[32].mxu0  ;;  %2979 = vmatmul.mubr.f32.gmra.mrb[58].mxu1 %v7397_v27  ;;  %v2510_v9 = vrot.slane %v7434_v34, 1  ;;  %v2615_v45 = vrot.slane %v7434_v34, 2  ;;  %v2617_v28 = vrot.slane %v2439_v40, 2  ;;  %v2512_v43 = vrot.slane %v2439_v40, 1 }
 0x341   : > { %v7441_v59 = vrot.slane %v2271_v12, 7  ;;  %v2240_v57 = vadd.f32 %v7196_v39, %v2201_v48  ;;  %v2101_v35 = vadd.f32 %v7149_v31, %v1875_v51  ;;  %v1877_v60 = vpop.f32.mrb[33].mxu0 }
 0x342   : > { %v7446_v63 = vsel %vm668_vm1, %v2509_v58, %v2510_v9  ;;  %v7449_v20 = vsel %vm781_vm3, %v2614_v37, %v2615_v45  ;;  %v7452_v53 = vsel %vm781_vm3, %v2615_v45, %v2617_v28  ;;  %v7464_v58 = vsel %vm668_vm1, %v2510_v9, %v2512_v43 }
 0x343   : > { %8685 = vst [vmem:[#allocation34_spill] sm:$0xff] %v7446_v63  ;;  %8686 = vst [vmem:[#allocation36_spill] sm:$0xff] %v7449_v20  ;;  %v2272_v25 = vmax.f32 %v2240_v57, 0.0  ;;  %v2202_v38 = vmul.f32 %v7190_v36, %v2101_v35  ;;  %2983 = vmatprep.mubr.f32.mxu1 %v7446_v63  ;;  %4583 = vmatprep.mubr.f32.mxu0 %v7449_v20  ;;  %v2424_v31 = vsel %vm501_vm0, 0.0, %v7441_v59 }
 0x344   : > { %8687 = vst [vmem:[#allocation39_spill] sm:$0xff] %v7452_v53  ;;  %v1880_v12 = vpop.f32.mrb[34].mxu0  ;;  %4272 = vmatmul.mubr.msk.f32.gmra.mrb[60].mxu1 %vm6050_vm2, %v7404_v24  ;;  %4584 = vmatmul.mubr.f32.gmra.mrb[74].mxu0 %v7452_v53  ;;  %8688 = vst [vmem:[#allocation42_spill] sm:$0xff] %v7464_v58  ;;  %v2514_v51 = vrot.slane %v2424_v31, 1  ;;  %v2619_v45 = vrot.slane %v2424_v31, 2 }
 0x345   : > { %v2343_v37 = vrot.slane %v2272_v25, 7  ;;  %v2241_v35 = vadd.f32 %v7196_v39, %v2202_v38  ;;  %v2106_v48 = vadd.f32 %v7147_v54, %v1880_v12  ;;  %v1882_v40 = vpop.f32.mrb[35].mxu0  ;;  %2988 = vmatprep.mubr.f32.mxu1 %v7464_v58 }
 0x347   : > { %v7471_v28 = vsel %vm501_vm0, %v7441_v59, %v2343_v37  ;;  %v2273_v57 = vmax.f32 %v2241_v35, 0.0  ;;  %v2203_v60 = vmul.f32 %v7190_v36, %v2106_v48  ;;  %v2440_v9 = vsel %vm501_vm0, %v2343_v37, 0.0 }
 0x348   : > { %8689 = vst [vmem:[#allocation45_spill] sm:$0xff] %v7471_v28  ;;  %v1885_v43 = vpop.f32.mrb[36].mxu0  ;;  %2989 = vmatmul.mubr.f32.gmra.mrb[62].mxu1 %v7434_v34  ;;  %v2515_v25 = vrot.slane %v7471_v28, 1  ;;  %v2620_v54 = vrot.slane %v7471_v28, 2  ;;  %v2622_v38 = vrot.slane %v2440_v9, 2  ;;  %v2517_v12 = vrot.slane %v2440_v9, 1 }
 0x349   : > { %v7478_v40 = vrot.slane %v2273_v57, 7  ;;  %v2242_v31 = vadd.f32 %v7196_v39, %v2203_v60  ;;  %v2111_v58 = vadd.f32 %v7154_v15, %v1885_v43  ;;  %v1887_v35 = vpop.f32.mrb[37].mxu0 }
 0x34a   : > { %v7483_v48 = vsel %vm668_vm1, %v2514_v51, %v2515_v25  ;;  %v7486_v37 = vsel %vm781_vm3, %v2619_v45, %v2620_v54  ;;  %v7489_v63 = vsel %vm781_vm3, %v2620_v54, %v2622_v38  ;;  %v7501_v51 = vsel %vm668_vm1, %v2515_v25, %v2517_v12 }
 0x34b   : > { %8690 = vst [vmem:[#allocation48_spill] sm:$0xff] %v7478_v40  ;;  %8691 = vst [vmem:[#allocation51_spill] sm:$0xff] %v7483_v48  ;;  %v2274_v53 = vmax.f32 %v2242_v31, 0.0  ;;  %v2204_v20 = vmul.f32 %v7190_v36, %v2111_v58  ;;  %2993 = vmatprep.mubr.f32.mxu1 %v7483_v48  ;;  %4586 = vmatprep.mubr.f32.mxu0 %v7486_v37  ;;  %v2425_v15 = vsel %vm501_vm0, 0.0, %v7478_v40 }
 0x34c   : > { %8692 = vst [vmem:[#allocation54_spill] sm:$0xff] %v7486_v37  ;;  %8693 = vst [vmem:[#allocation56_spill] sm:$0xff] %v7489_v63  ;;  %v1890_v57 = vpop.f32.mrb[38].mxu0  ;;  %4274 = vmatmul.mubr.msk.f32.gmra.mrb[64].mxu1 %vm6050_vm2, %v7441_v59  ;;  %4587 = vmatmul.mubr.f32.gmra.mrb[76].mxu0 %v7489_v63  ;;  %v2519_v43 = vrot.slane %v2425_v15, 1  ;;  %v2624_v54 = vrot.slane %v2425_v15, 2 }
 0x34d   : > { %8694 = vst [vmem:[#allocation58_spill] sm:$0xff] %v7501_v51  ;;  %v2346_v45 = vrot.slane %v2274_v53, 7  ;;  %v2243_v58 = vadd.f32 %v7196_v39, %v2204_v20  ;;  %v2116_v60 = vadd.f32 %v7152_v30, %v1890_v57  ;;  %v1892_v9 = vpop.f32.mrb[39].mxu0  ;;  %2998 = vmatprep.mubr.f32.mxu1 %v7501_v51 }
 0x34f   : > { %v7508_v38 = vsel %vm501_vm0, %v7478_v40, %v2346_v45  ;;  %v2275_v31 = vmax.f32 %v2243_v58, 0.0  ;;  %v2205_v35 = vmul.f32 %v7190_v36, %v2116_v60  ;;  %v2441_v25 = vsel %vm501_vm0, %v2346_v45, 0.0 }
 0x350   : > { %8695 = vst [vmem:[#allocation59_spill] sm:$0xff] %v7508_v38  ;;  %v1895_v12 = vpop.f32.mrb[40].mxu0  ;;  %2999 = vmatmul.mubr.f32.gmra.mrb[66].mxu1 %v7471_v28  ;;  %v2520_v53 = vrot.slane %v7508_v38, 1  ;;  %v2625_v30 = vrot.slane %v7508_v38, 2  ;;  %v2627_v20 = vrot.slane %v2441_v25, 2  ;;  %v2522_v57 = vrot.slane %v2441_v25, 1 }
 0x351   : > { %v7515_v9 = vrot.slane %v2275_v31, 7  ;;  %v2244_v15 = vadd.f32 %v7196_v39, %v2205_v35  ;;  %v2121_v51 = vadd.f32 %v7159_v61, %v1895_v12  ;;  %v1897_v58 = vpop.f32.mrb[41].mxu0 }
 0x352   : > { %v7520_v60 = vsel %vm668_vm1, %v2519_v43, %v2520_v53  ;;  %v7523_v45 = vsel %vm781_vm3, %v2624_v54, %v2625_v30  ;;  %v7526_v48 = vsel %vm781_vm3, %v2625_v30, %v2627_v20  ;;  %v7538_v43 = vsel %vm668_vm1, %v2520_v53, %v2522_v57 }
 0x353   : > { %8696 = vst [vmem:[#allocation60_spill] sm:$0xff] %v7515_v9  ;;  %8697 = vst [vmem:[#allocation62_spill] sm:$0xff] %v7520_v60  ;;  %v2276_v63 = vmax.f32 %v2244_v15, 0.0  ;;  %v2206_v37 = vmul.f32 %v7190_v36, %v2121_v51  ;;  %3003 = vmatprep.mubr.f32.mxu1 %v7520_v60  ;;  %4589 = vmatprep.mubr.f32.mxu0 %v7523_v45  ;;  %v2426_v61 = vsel %vm501_vm0, 0.0, %v7515_v9 }
 0x354   : > { %8698 = vst [vmem:[#allocation64_spill] sm:$0xff] %v7523_v45  ;;  %8699 = vst [vmem:[#allocation65_spill] sm:$0xff] %v7526_v48  ;;  %v1900_v31 = vpop.f32.mrb[42].mxu0  ;;  %4276 = vmatmul.mubr.msk.f32.gmra.mrb[68].mxu1 %vm6050_vm2, %v7478_v40  ;;  %4590 = vmatmul.mubr.f32.gmra.mrb[78].mxu0 %v7526_v48  ;;  %v2524_v12 = vrot.slane %v2426_v61, 1  ;;  %v2629_v30 = vrot.slane %v2426_v61, 2 }
 0x355   : > { %8700 = vst [vmem:[#allocation28_spill] sm:$0xff] %v7538_v43  ;;  %v2349_v54 = vrot.slane %v2276_v63, 7  ;;  %v2245_v51 = vadd.f32 %v7196_v39, %v2206_v37  ;;  %v2126_v35 = vadd.f32 %v7157_v18, %v1900_v31  ;;  %v1902_v25 = vpop.f32.mrb[43].mxu0  ;;  %3008 = vmatprep.mubr.f32.mxu1 %v7538_v43 }
 0x357   : > { %v7545_v20 = vsel %vm501_vm0, %v7515_v9, %v2349_v54  ;;  %v2277_v15 = vmax.f32 %v2245_v51, 0.0  ;;  %v2207_v58 = vmul.f32 %v7190_v36, %v2126_v35  ;;  %v2442_v53 = vsel %vm501_vm0, %v2349_v54, 0.0 }
 0x358   : > { %8701 = vst [vmem:[#allocation30_spill] sm:$0xff] %v7545_v20  ;;  %v1905_v57 = vpop.f32.mrb[44].mxu0  ;;  %3009 = vmatmul.mubr.f32.gmra.mrb[70].mxu1 %v7508_v38  ;;  %v2525_v63 = vrot.slane %v7545_v20, 1  ;;  %v2630_v18 = vrot.slane %v7545_v20, 2  ;;  %v2632_v37 = vrot.slane %v2442_v53, 2  ;;  %v2527_v31 = vrot.slane %v2442_v53, 1 }
 0x359   : > { %v7552_v25 = vrot.slane %v2277_v15, 7  ;;  %v2246_v61 = vadd.f32 %v7196_v39, %v2207_v58  ;;  %v2131_v43 = vadd.f32 %v7164_v1, %v1905_v57  ;;  %v1907_v51 = vpop.f32.mrb[45].mxu0 }
 0x35a   : > { %v7557_v35 = vsel %vm668_vm1, %v2524_v12, %v2525_v63  ;;  %v7560_v54 = vsel %vm781_vm3, %v2629_v30, %v2630_v18  ;;  %v7563_v60 = vsel %vm781_vm3, %v2630_v18, %v2632_v37  ;;  %v7575_v12 = vsel %vm668_vm1, %v2525_v63, %v2527_v31 }
 0x35b   : > { %8702 = vst [vmem:[#allocation32_spill] sm:$0xff] %v7552_v25  ;;  %8703 = vst [vmem:[#allocation33_spill] sm:$0xff] %v7557_v35  ;;  %v2278_v48 = vmax.f32 %v2246_v61, 0.0  ;;  %v2208_v45 = vmul.f32 %v7190_v36, %v2131_v43  ;;  %3013 = vmatprep.mubr.f32.mxu1 %v7557_v35  ;;  %4592 = vmatprep.mubr.f32.mxu0 %v7560_v54  ;;  %v2427_v1 = vsel %vm501_vm0, 0.0, %v7552_v25 }
 0x35c   : > { %8704 = vst [vmem:[#allocation38_spill] sm:$0xff] %v7560_v54  ;;  %8705 = vst [vmem:[#allocation40_spill] sm:$0xff] %v7563_v60  ;;  %v1910_v15 = vpop.f32.mrb[46].mxu0  ;;  %4278 = vmatmul.mubr.msk.f32.gmra.mrb[72].mxu1 %vm6050_vm2, %v7515_v9  ;;  %4593 = vmatmul.mubr.f32.gmra.mrb[80].mxu0 %v7563_v60  ;;  %v2529_v57 = vrot.slane %v2427_v1, 1  ;;  %v2634_v18 = vrot.slane %v2427_v1, 2 }
 0x35d   : > { %8706 = vst [vmem:[#allocation44_spill] sm:$0xff] %v7575_v12  ;;  %v2352_v30 = vrot.slane %v2278_v48, 7  ;;  %v2247_v43 = vadd.f32 %v7196_v39, %v2208_v45  ;;  %v2136_v58 = vadd.f32 %v7162_v22, %v1910_v15  ;;  %v1912_v53 = vpop.f32.mrb[47].mxu0  ;;  %3018 = vmatprep.mubr.f32.mxu1 %v7575_v12 }
 0x35f   : > { %v7582_v37 = vsel %vm501_vm0, %v7552_v25, %v2352_v30  ;;  %v2279_v61 = vmax.f32 %v2247_v43, 0.0  ;;  %v2209_v51 = vmul.f32 %v7190_v36, %v2136_v58  ;;  %v2443_v63 = vsel %vm501_vm0, %v2352_v30, 0.0 }
 0x360   : > { %8707 = vst [vmem:[#allocation47_spill] sm:$0xff] %v7582_v37  ;;  %v1915_v31 = vpop.f32.mrb[48].mxu0  ;;  %3019 = vmatmul.mubr.f32.gmra.mrb[74].mxu1 %v7545_v20  ;;  %v2530_v48 = vrot.slane %v7582_v37, 1  ;;  %v2635_v22 = vrot.slane %v7582_v37, 2  ;;  %v2637_v45 = vrot.slane %v2443_v63, 2  ;;  %v2532_v15 = vrot.slane %v2443_v63, 1 }
 0x361   : > { %v7589_v53 = vrot.slane %v2279_v61, 7  ;;  %v2248_v1 = vadd.f32 %v7196_v39, %v2209_v51  ;;  %v2141_v12 = vadd.f32 %v7169_v47, %v1915_v31  ;;  %v1917_v43 = vpop.f32.mrb[49].mxu0 }
 0x362   : > { %v7594_v58 = vsel %vm668_vm1, %v2529_v57, %v2530_v48  ;;  %v7597_v30 = vsel %vm781_vm3, %v2634_v18, %v2635_v22  ;;  %v7600_v35 = vsel %vm781_vm3, %v2635_v22, %v2637_v45  ;;  %v7612_v57 = vsel %vm668_vm1, %v2530_v48, %v2532_v15 }
 0x363   : > { %8708 = vst [vmem:[#allocation49_spill] sm:$0xff] %v7589_v53  ;;  %8709 = vst [vmem:[#allocation52_spill] sm:$0xff] %v7594_v58  ;;  %v2280_v60 = vmax.f32 %v2248_v1, 0.0  ;;  %v2210_v54 = vmul.f32 %v7190_v36, %v2141_v12  ;;  %3023 = vmatprep.mubr.f32.mxu1 %v7594_v58  ;;  %4595 = vmatprep.mubr.f32.mxu0 %v7597_v30  ;;  %v2428_v47 = vsel %vm501_vm0, 0.0, %v7589_v53 }
 0x364   : > { %8710 = vst [vmem:[#allocation55_spill] sm:$0xff] %v7597_v30  ;;  %8711 = vst [vmem:[#allocation57_spill] sm:$0xff] %v7600_v35  ;;  %v1920_v61 = vpop.f32.mrb[50].mxu0  ;;  %4280 = vmatmul.mubr.msk.f32.gmra.mrb[76].mxu1 %vm6050_vm2, %v7552_v25  ;;  %4596 = vmatmul.mubr.f32.gmra.mrb[82].mxu0 %v7600_v35  ;;  %v2534_v31 = vrot.slane %v2428_v47, 1  ;;  %v2639_v22 = vrot.slane %v2428_v47, 2 }
 0x365   : > { %8712 = vst [vmem:[#allocation61_spill] sm:$0xff] %v7612_v57  ;;  %v2355_v18 = vrot.slane %v2280_v60, 7  ;;  %v2249_v12 = vadd.f32 %v7196_v39, %v2210_v54  ;;  %v2146_v51 = vadd.f32 %v7167_v56, %v1920_v61  ;;  %v1922_v63 = vpop.f32.mrb[51].mxu0  ;;  %3028 = vmatprep.mubr.f32.mxu1 %v7612_v57 }
 0x367   : > { %v7619_v45 = vsel %vm501_vm0, %v7589_v53, %v2355_v18  ;;  %v2281_v1 = vmax.f32 %v2249_v12, 0.0  ;;  %v2211_v43 = vmul.f32 %v7190_v36, %v2146_v51  ;;  %v2444_v48 = vsel %vm501_vm0, %v2355_v18, 0.0 }
 0x368   : > { %8713 = vst [vmem:[#allocation68_spill] sm:$0xff] %v7619_v45  ;;  %v1925_v15 = vpop.f32.mrb[52].mxu0  ;;  %3029 = vmatmul.mubr.f32.gmra.mrb[78].mxu1 %v7582_v37  ;;  %v2535_v60 = vrot.slane %v7619_v45, 1  ;;  %v2640_v56 = vrot.slane %v7619_v45, 2  ;;  %v2642_v54 = vrot.slane %v2444_v48, 2  ;;  %v2537_v61 = vrot.slane %v2444_v48, 1 }
 0x369   : > { %v7626_v63 = vrot.slane %v2281_v1, 7  ;;  %v2250_v47 = vadd.f32 %v7196_v39, %v2211_v43  ;;  %v2151_v57 = vadd.f32 %v7174_v0, %v1925_v15  ;;  %v1927_v12 = vpop.f32.mrb[53].mxu0 }
 0x36a   : > { %v7631_v51 = vsel %vm668_vm1, %v2534_v31, %v2535_v60  ;;  %v7634_v18 = vsel %vm781_vm3, %v2639_v22, %v2640_v56  ;;  %v7637_v58 = vsel %vm781_vm3, %v2640_v56, %v2642_v54  ;;  %v7649_v31 = vsel %vm668_vm1, %v2535_v60, %v2537_v61 }
 0x36b   : > { %8714 = vst [vmem:[#allocation69_spill] sm:$0xff] %v7626_v63  ;;  %8715 = vst [vmem:[#allocation70_spill] sm:$0xff] %v7631_v51  ;;  %v2282_v35 = vmax.f32 %v2250_v47, 0.0  ;;  %v2212_v30 = vmul.f32 %v7190_v36, %v2151_v57  ;;  %3033 = vmatprep.mubr.f32.mxu1 %v7631_v51  ;;  %4598 = vmatprep.mubr.f32.mxu0 %v7634_v18  ;;  %v2429_v0 = vsel %vm501_vm0, 0.0, %v7626_v63 }
 0x36c   : > { %8716 = vst [vmem:[#allocation71_spill] sm:$0xff] %v7634_v18  ;;  %8717 = vst [vmem:[#allocation72_spill] sm:$0xff] %v7637_v58  ;;  %v1930_v1 = vpop.f32.mrb[54].mxu0  ;;  %4282 = vmatmul.mubr.msk.f32.gmra.mrb[80].mxu1 %vm6050_vm2, %v7589_v53  ;;  %4599 = vmatmul.mubr.f32.gmra.mrb[84].mxu0 %v7637_v58  ;;  %v2539_v15 = vrot.slane %v2429_v0, 1  ;;  %v2644_v56 = vrot.slane %v2429_v0, 2 }
 0x36d   : > { %8718 = vst [vmem:[#allocation73_spill] sm:$0xff] %v7649_v31  ;;  %v2358_v22 = vrot.slane %v2282_v35, 7  ;;  %v2251_v57 = vadd.f32 %v7196_v39, %v2212_v30  ;;  %v2156_v43 = vadd.f32 %v7172_v62, %v1930_v1  ;;  %v1932_v48 = vpop.f32.mrb[55].mxu0  ;;  %3038 = vmatprep.mubr.f32.mxu1 %v7649_v31 }
 0x36f   : > { %v7656_v54 = vsel %vm501_vm0, %v7626_v63, %v2358_v22  ;;  %v2283_v47 = vmax.f32 %v2251_v57, 0.0  ;;  %v2213_v12 = vmul.f32 %v7190_v36, %v2156_v43  ;;  %v2445_v60 = vsel %vm501_vm0, %v2358_v22, 0.0 }
 0x370   : > { %8719 = vst [vmem:[#allocation74_spill] sm:$0xff] %v7656_v54  ;;  %v1935_v61 = vpop.f32.mrb[56].mxu0  ;;  %3039 = vmatmul.mubr.f32.gmra.mrb[82].mxu1 %v7619_v45  ;;  %v2540_v35 = vrot.slane %v7656_v54, 1  ;;  %v2645_v62 = vrot.slane %v7656_v54, 2  ;;  %v2647_v30 = vrot.slane %v2445_v60, 2  ;;  %v2542_v1 = vrot.slane %v2445_v60, 1 }
 0x371   : > { %v7663_v48 = vrot.slane %v2283_v47, 7  ;;  %v2252_v0 = vadd.f32 %v7196_v39, %v2213_v12  ;;  %v2161_v31 = vadd.f32 %v7179_v50, %v1935_v61  ;;  %v1937_v57 = vpop.f32.mrb[57].mxu0 }
 0x372   : > { %v7668_v43 = vsel %vm668_vm1, %v2539_v15, %v2540_v35  ;;  %v7671_v22 = vsel %vm781_vm3, %v2644_v56, %v2645_v62  ;;  %v7674_v51 = vsel %vm781_vm3, %v2645_v62, %v2647_v30  ;;  %v7684_v50 = vsel %vm668_vm1, %v2540_v35, %v2542_v1 }
 0x373   : > { %8720 = vst [vmem:[#allocation75_spill] sm:$0xff] %v7663_v48  ;;  %v2284_v58 = vmax.f32 %v2252_v0, 0.0  ;;  %v2214_v18 = vmul.f32 %v7190_v36, %v2161_v31  ;;  %3043 = vmatprep.mubr.f32.mxu1 %v7668_v43  ;;  %4601 = vmatprep.mubr.f32.mxu0 %v7671_v22  ;;  %v7691_v60 = vsel %vm501_vm0, 0.0, %v7663_v48 }
 0x374   : > { %v1940_v47 = vpop.f32.mrb[58].mxu0  ;;  %4284 = vmatmul.mubr.msk.f32.gmra.mrb[84].mxu1 %vm6050_vm2, %v7626_v63  ;;  %4602 = vmatmul.mubr.f32.gmra.mrb[86].mxu0 %v7674_v51 }
 0x375   : > { %v2361_v15 = vrot.slane %v2284_v58, 7  ;;  %v2253_v56 = vadd.f32 %v7196_v39, %v2214_v18  ;;  %v2166_v12 = vadd.f32 %v7177_v46, %v1940_v47  ;;  %v1942_v31 = vpop.f32.mrb[59].mxu0  ;;  %3048 = vmatprep.mubr.f32.mxu1 %v7684_v50  ;;  %v2544_v46 = vrot.slane %v7691_v60, 1 }
 0x377   : > { %v7695_v61 = vsel %vm501_vm0, %v7663_v48, %v2361_v15  ;;  %v2285_v62 = vmax.f32 %v2253_v56, 0.0  ;;  %v2215_v35 = vmul.f32 %v7190_v36, %v2166_v12  ;;  %v7699_v58 = vsel %vm501_vm0, %v2361_v15, 0.0 }
 0x378   : > { %8721 = vst [vmem:[#allocation76_spill] sm:$0xff] %v7695_v61  ;;  %v1945_v18 = vpop.f32.mrb[60].mxu0  ;;  %3049 = vmatmul.mubr.f32.gmra.mrb[86].mxu1 %v7656_v54  ;;  %v2545_v30 = vrot.slane %v7695_v61, 1  ;;  %v2547_v1 = vrot.slane %v7699_v58, 1 }
 0x379   : > { %v7705_v0 = vrot.slane %v2285_v62, 7  ;;  %v2254_v57 = vadd.f32 %v7196_v39, %v2215_v35  ;;  %v7709_v47 = vadd.f32 %v7184_v7, %v1945_v18  ;;  %v1947_v36 = vpop.f32.mrb[61].mxu0 }
 0x37a   : > { %v7712_v15 = vsel %vm668_vm1, %v2544_v46, %v2545_v30  ;;  %v7719_v31 = vsel %vm668_vm1, %v2545_v30, %v2547_v1 }
 0x37b   : > { %8722 = vst [vmem:[#allocation77_spill] sm:$0xff] %v7705_v0  ;;  %v2286_v56 = vmax.f32 %v2254_v57, 0.0  ;;  %3053 = vmatprep.mubr.f32.mxu1 %v7712_v15  ;;  %v7727_v35 = vsel %vm501_vm0, 0.0, %v7705_v0 }
 0x37c   : > { %v1950_v12 = vpop.f32.mrb[62].mxu0  ;;  %4286 = vmatmul.mubr.msk.f32.gmra.mrb[88].mxu1 %vm6050_vm2, %v7663_v48  ;;  %v2549_v30 = vrot.slane %v7727_v35, 1 }
 0x37d   : > { %v2364_v62 = vrot.slane %v2286_v56, 7  ;;  %v7722_v39 = vadd.f32 %v7182_v21, %v1950_v12  ;;  %v1952_v7 = vpop.f32.mrb[63].mxu0  ;;  %3058 = vmatprep.mubr.f32.mxu1 %v7719_v31  ;;  %v2769_v56 = vld [vmem:[#allocation7 + $0x200] sm:$0xff]  ;;  %v2770_v12 = vld [vmem:[#allocation7 + $0x208] sm:$0xff] }
 0x37e   : > { %v2771_v7 = vld [vmem:[#allocation7 + $0x210] sm:$0xff] }
 0x37f   : > { %v7731_v18 = vsel %vm501_vm0, %v7705_v0, %v2364_v62  ;;  %v7734_v46 = vsel %vm501_vm0, %v2364_v62, 0.0  ;;  %v4937_v62 = vpack.c.bf16 %v2770_v12, %v2769_v56  ;;  %v2775_v12 = vld [vmem:[#allocation7 + $0x230] sm:$0xff] }
 0x380   : > { %8723 = vst [vmem:[#allocation78_spill] sm:$0xff] %v7731_v18  ;;  %3059 = vmatmul.mubr.f32.gmra.mrb[90].mxu1 %v7695_v61  ;;  %v2550_v21 = vrot.slane %v7731_v18, 1  ;;  %v2552_v1 = vrot.slane %v7734_v46, 1 }
 0x382   : > { %v7741_v57 = vsel %vm668_vm1, %v2549_v30, %v2550_v21  ;;  %v7748_v36 = vsel %vm668_vm1, %v2550_v21, %v2552_v1  ;;  %v2772_v30 = vld [vmem:[#allocation7 + $0x218] sm:$0xff]  ;;  %v2773_v1 = vld [vmem:[#allocation7 + $0x220] sm:$0xff] }
 0x383   : > { %8724 = vst [vmem:[#allocation79_spill] sm:$0xff] %v7741_v57  ;;  %3063 = vmatprep.mubr.f32.mxu1 %v7741_v57  ;;  %8725 = vst [vmem:[#allocation80_spill] sm:$0xff] %v7748_v36  ;;  %v4940_v21 = vpack.c.bf16 %v2772_v30, %v2771_v7  ;;  %v2585_v57 = vrot.slane %v7218_v16, 2  ;;  %v2587_v30 = vrot.slane %v7222_v44, 2 }
 0x384   : > { %4288 = vmatmul.mubr.msk.f32.gmra.mrb[92].mxu1 %vm6050_vm2, %v7705_v0 }
 0x385   : > { %3068 = vmatprep.mubr.f32.mxu1 %v7748_v36  ;;  %v2774_v36 = vld [vmem:[#allocation7 + $0x228] sm:$0xff] }
 0x386   : > { %v4943_v56 = vpack.c.bf16 %v2774_v36, %v2773_v1  ;;  %v7773_v36 = vsel %vm781_vm3, %v2585_v57, %v2587_v30  ;;  %v2779_v1 = vld [vmem:[#allocation7 + $0x250] sm:$0xff] }
 0x387   : > { %v2783_v30 = vld [vmem:[#allocation7 + $0x270] sm:$0xff] }
 0x388   : > { %3069 = vmatmul.mubr.f32.gmra.mrb[94].mxu1 %v7731_v18 }
 0x389   : > { %4290 = vmatprep.mubr.msk.f32.mxu1 %vm6050_vm2, %v7204_v8  ;;  %v2584_v8 = vrot.slane %v7214_v10, 2  ;;  %v2777_v10 = vld [vmem:[#allocation7 + $0x240] sm:$0xff] }
 0x38b   : > { %v7766_v7 = vsel %vm781_vm3, %v2584_v8, %v2585_v57  ;;  %v2780_v8 = vld [vmem:[#allocation7 + $0x258] sm:$0xff]  ;;  %v2781_v57 = vld [vmem:[#allocation7 + $0x260] sm:$0xff] }
 0x38c   : > { %3139 = vmatmul.mubr.f32.vlgmr.msra.gmra.mrb[32].mxu1 %v6573_v41  ;;  %v8729_v41 = vld [vmem:[#allocation36_spill] sm:$0xff] }
 0x38d   : > { %3143 = vmatprep.mubr.f32.mxu1 %v7218_v16  ;;  %4938 = vmatpush1.bf16.msra.mxu1 %v4937_v62  ;;  %v2776_v62 = vld [vmem:[#allocation7 + $0x238] sm:$0xff] }
 0x38e   : > { %4939 = vmatprep.subr.bf16.mxu1 %v8563_v52  ;;  %v4946_v16 = vpack.c.bf16 %v2776_v62, %v2775_v12  ;;  %v2782_v12 = vld [vmem:[#allocation7 + $0x268] sm:$0xff] }
 0x38f   : > { %v4955_v62 = vpack.c.bf16 %v2782_v12, %v2781_v57  ;;  %v2789_v12 = vld [vmem:[#allocation7 + $0x2a0] sm:$0xff] }
 0x390   : > { %3144 = vmatmul.mubr.f32.gmra.mrb[34].mxu1 %v6579_v2  ;;  %v8728_v2 = vld [vmem:[#allocation29_spill] sm:$0xff] }
 0x391   : > { %4292 = vmatprep.mubr.msk.f32.mxu1 %vm6050_vm2, %v7227_v23  ;;  %4941 = vmatpush1.bf16.msra.mxu1 %v4940_v21  ;;  %v2778_v21 = vld [vmem:[#allocation7 + $0x248] sm:$0xff] }
 0x392   : > { %4942 = vmatprep.subr.bf16.mxu1 %v8563_v52  ;;  %v4949_v44 = vpack.c.bf16 %v2778_v21, %v2777_v10  ;;  %v2785_v21 = vld [vmem:[#allocation7 + $0x280] sm:$0xff] }
 0x394   : > { %3149 = vmatmul.mubr.f32.gmra.mrb[36].mxu1 %v7766_v7 }
 0x395   : > { %3153 = vmatprep.mubr.f32.mxu1 %v7249_v3  ;;  %4944 = vmatpush1.bf16.msra.mxu1 %v4943_v56  ;;  %v4952_v56 = vpack.c.bf16 %v2780_v8, %v2779_v1  ;;  %v2787_v8 = vld [vmem:[#allocation7 + $0x290] sm:$0xff] }
 0x396   : > { %4945 = vmatprep.subr.bf16.mxu1 %v8563_v52 }
 0x398   : > { %3154 = vmatmul.mubr.f32.gmra.mrb[38].mxu1 %v7773_v36 }
 0x399   : > { %4294 = vmatprep.mubr.msk.f32.mxu1 %vm6050_vm2, %v7256_v49  ;;  %4947 = vmatpush1.bf16.msra.mxu1 %v4946_v16  ;;  %v2784_v16 = vld [vmem:[#allocation7 + $0x278] sm:$0xff] }
 0x39a   : > { %4948 = vmatprep.subr.bf16.mxu1 %v8563_v52  ;;  %v4958_v10 = vpack.c.bf16 %v2784_v16, %v2783_v30  ;;  %v2791_v16 = vld [vmem:[#allocation7 + $0x2b0] sm:$0xff] }
 0x39c   : > { %3159 = vmatmul.mubr.f32.gmra.mrb[40].mxu1 %v7264_v11 }
 0x39d   : > { %3163 = vmatprep.mubr.f32.mxu1 %v7286_v5  ;;  %4950 = vmatpush1.bf16.msra.mxu1 %v4949_v44  ;;  %v2786_v44 = vld [vmem:[#allocation7 + $0x288] sm:$0xff] }
 0x39e   : > { %4951 = vmatprep.subr.bf16.mxu1 %v8563_v52  ;;  %v4961_v1 = vpack.c.bf16 %v2786_v44, %v2785_v21  ;;  %v2793_v44 = vld [vmem:[#allocation7 + $0x2c0] sm:$0xff] }
 0x3a0   : > { %3164 = vmatmul.mubr.f32.gmra.mrb[42].mxu1 %v7267_v55 }
 0x3a1   : > { %4296 = vmatprep.mubr.msk.f32.mxu1 %vm6050_vm2, %v7293_v19  ;;  %4953 = vmatpush1.bf16.msra.mxu1 %v4952_v56  ;;  %v2788_v56 = vld [vmem:[#allocation7 + $0x298] sm:$0xff] }
 0x3a2   : > { %4954 = vmatprep.subr.bf16.mxu1 %v8563_v52  ;;  %v4964_v57 = vpack.c.bf16 %v2788_v56, %v2787_v8  ;;  %v8726_v8 = vld [vmem:[#allocation24_spill] sm:$0xff] }
 0x3a4   : > { %3169 = vmatmul.mubr.f32.gmra.mrb[44].mxu1 %v7301_v4 }
 0x3a5   : > { %3173 = vmatprep.mubr.f32.mxu1 %v7323_v17  ;;  %4956 = vmatpush1.bf16.msra.mxu1 %v4955_v62  ;;  %v2790_v62 = vld [vmem:[#allocation7 + $0x2a8] sm:$0xff] }
 0x3a6   : > { %4957 = vmatprep.subr.bf16.mxu1 %v8563_v52  ;;  %v4967_v30 = vpack.c.bf16 %v2790_v62, %v2789_v12  ;;  %v2796_v12 = vld [vmem:[#allocation7 + $0x2d8] sm:$0xff] }
 0x3a7   : > { %v8727_v62 = vld [vmem:[#allocation27_spill] sm:$0xff] }
 0x3a8   : > { %3174 = vmatmul.mubr.f32.gmra.mrb[46].mxu1 %v7304_v14 }
 0x3a9   : > { %4298 = vmatprep.mubr.msk.f32.mxu1 %vm6050_vm2, %v7330_v32  ;;  %4959 = vmatpush1.bf16.msra.mxu1 %v4958_v10  ;;  %v2792_v10 = vld [vmem:[#allocation7 + $0x2b8] sm:$0xff] }
 0x3aa   : > { %4960 = vmatprep.subr.bf16.mxu1 %v8563_v52  ;;  %v4970_v21 = vpack.c.bf16 %v2792_v10, %v2791_v16  ;;  %v2797_v16 = vld [vmem:[#allocation7 + $0x2e0] sm:$0xff]  ;;  %v2798_v10 = vld [vmem:[#allocation7 + $0x2e8] sm:$0xff] }
 0x3ac   : > { %3179 = vmatmul.mubr.f32.gmra.mrb[48].mxu1 %v7338_v13 }
 0x3ad   : > { %3183 = vmatprep.mubr.f32.mxu1 %v7360_v6  ;;  %4962 = vmatpush1.bf16.msra.mxu1 %v4961_v1  ;;  %v2794_v1 = vld [vmem:[#allocation7 + $0x2c8] sm:$0xff] }
 0x3ae   : > { %4963 = vmatprep.subr.bf16.mxu1 %v8563_v52  ;;  %v4973_v56 = vpack.c.bf16 %v2794_v1, %v2793_v44  ;;  %v2799_v44 = vld [vmem:[#allocation7 + $0x2f0] sm:$0xff]  ;;  %v2800_v1 = vld [vmem:[#allocation7 + $0x2f8] sm:$0xff] }
 0x3b0   : > { %3184 = vmatmul.mubr.f32.gmra.mrb[50].mxu1 %v7341_v42 }
 0x3b1   : > { %4300 = vmatprep.mubr.msk.f32.mxu1 %vm6050_vm2, %v7367_v33  ;;  %4965 = vmatpush1.bf16.msra.mxu1 %v4964_v57  ;;  %v2795_v57 = vld [vmem:[#allocation7 + $0x2d0] sm:$0xff] }
 0x3b2   : > { %4966 = vmatprep.subr.bf16.mxu1 %v8563_v52 }
 0x3b4   : > { %3189 = vmatmul.mubr.f32.gmra.mrb[52].mxu1 %v7375_v29 }
 0x3b5   : > { %3193 = vmatprep.mubr.f32.mxu1 %v7397_v27  ;;  %4968 = vmatpush1.bf16.msra.mxu1 %v4967_v30  ;;  %v4976_v30 = vpack.c.bf16 %v2796_v12, %v2795_v57  ;;  %v8730_v57 = vld [vmem:[#allocation39_spill] sm:$0xff]  ;;  %v8731_v12 = vld [vmem:[#allocation54_spill] sm:$0xff] }
 0x3b6   : > { %4969 = vmatprep.subr.bf16.mxu1 %v8563_v52 }
 0x3b8   : > { %3194 = vmatmul.mubr.f32.gmra.mrb[54].mxu1 %v8726_v8 }
 0x3b9   : > { %4302 = vmatprep.mubr.msk.f32.mxu1 %vm6050_vm2, %v7404_v24  ;;  %4971 = vmatpush1.bf16.msra.mxu1 %v4970_v21  ;;  %v4979_v21 = vpack.c.bf16 %v2798_v10, %v2797_v16  ;;  %v8733_v16 = vld [vmem:[#allocation64_spill] sm:$0xff]  ;;  %v8734_v10 = vld [vmem:[#allocation65_spill] sm:$0xff] }
 0x3ba   : > { %4972 = vmatprep.subr.bf16.mxu1 %v8563_v52 }
 0x3bc   : > { %3199 = vmatmul.mubr.f32.gmra.mrb[56].mxu1 %v8727_v62 }
 0x3bd   : > { %3203 = vmatprep.mubr.f32.mxu1 %v7434_v34  ;;  %4974 = vmatpush1.bf16.msra.mxu1 %v4973_v56  ;;  %v4982_v56 = vpack.c.bf16 %v2800_v1, %v2799_v44  ;;  %v8736_v44 = vld [vmem:[#allocation40_spill] sm:$0xff]  ;;  %v8737_v1 = vld [vmem:[#allocation55_spill] sm:$0xff] }
 0x3be   : > { %4975 = vmatprep.subr.bf16.mxu1 %v8563_v52 }
 0x3c0   : > { %3204 = vmatmul.mubr.f32.gmra.mrb[58].mxu1 %v8728_v2 }
 0x3c1   : > { %4304 = vmatprep.mubr.msk.f32.mxu1 %vm6050_vm2, %v7441_v59  ;;  %4977 = vmatpush1.bf16.msra.mxu1 %v4976_v30  ;;  %v8732_v30 = vld [vmem:[#allocation56_spill] sm:$0xff] }
 0x3c2   : > { %4978 = vmatprep.subr.bf16.mxu1 %v8563_v52 }
 0x3c4   : > { %3209 = vmatmul.mubr.f32.gmra.mrb[60].mxu1 %v8729_v41 }
 0x3c5   : > { %3213 = vmatprep.mubr.f32.mxu1 %v7471_v28  ;;  %4980 = vmatpush1.bf16.msra.mxu1 %v4979_v21  ;;  %v8735_v21 = vld [vmem:[#allocation38_spill] sm:$0xff]  ;;  %v8750_v28 = vld [vmem:[#allocation16_spill] sm:$0xff] }
 0x3c6   : > { %4981 = vmatprep.subr.bf16.mxu1 %v8563_v52 }
 0x3c8   : > { %3214 = vmatmul.mubr.f32.gmra.mrb[62].mxu1 %v8730_v57 }
 0x3c9   : > { %4306 = vmatprep.mubr.msk.f32.mxu1 %vm6050_vm2, %v7478_v40  ;;  %4983 = vmatpush1.bf16.msra.mxu1 %v4982_v56  ;;  %v8738_v56 = vld [vmem:[#allocation57_spill] sm:$0xff] }
 0x3ca   : > { %4984 = vmatprep.subr.bf16.mxu1 %v8563_v52 }
 0x3cc   : > { %3219 = vmatmul.mubr.f32.gmra.mrb[64].mxu1 %v8731_v12 }
 0x3cd   : > { %3223 = vmatprep.mubr.f32.mxu1 %v7508_v38 }
 0x3d0   : > { %3224 = vmatmul.mubr.f32.gmra.mrb[66].mxu1 %v8732_v30 }
 0x3d1   : > { %4308 = vmatprep.mubr.msk.f32.mxu1 %vm6050_vm2, %v7515_v9 }
 0x3d4   : > { %3229 = vmatmul.mubr.f32.gmra.mrb[68].mxu1 %v8733_v16 }
 0x3d5   : > { %3233 = vmatprep.mubr.f32.mxu1 %v7545_v20  ;;  %v8741_v20 = vld [vmem:[#allocation72_spill] sm:$0xff] }
 0x3d8   : > { %3234 = vmatmul.mubr.f32.gmra.mrb[70].mxu1 %v8734_v10 }
 0x3d9   : > { %4310 = vmatprep.mubr.msk.f32.mxu1 %vm6050_vm2, %v7552_v25  ;;  %v8739_v25 = vld [vmem:[#allocation71_spill] sm:$0xff] }
 0x3dc   : > { %3239 = vmatmul.mubr.f32.gmra.mrb[72].mxu1 %v8735_v21 }
 0x3dd   : > { %3243 = vmatprep.mubr.f32.mxu1 %v7582_v37 }
 0x3e0   : > { %3244 = vmatmul.mubr.f32.gmra.mrb[74].mxu1 %v8736_v44 }
 0x3e1   : > { %4312 = vmatprep.mubr.msk.f32.mxu1 %vm6050_vm2, %v7589_v53 }
 0x3e4   : > { %3249 = vmatmul.mubr.f32.gmra.mrb[76].mxu1 %v8737_v1 }
 0x3e5   : > { %3253 = vmatprep.mubr.f32.mxu1 %v7619_v45  ;;  %v5539_v45 = vld [vmem:[%s8320_s4] ss:$0 sm:$0xff] }
 0x3e6   : > { %v2217_v53 = vmul.f32 %v5539_v45, %v7722_v39 }
 0x3e8   : > { %3254 = vmatmul.mubr.f32.gmra.mrb[78].mxu1 %v8738_v56 }
 0x3e9   : > { %4314 = vmatprep.mubr.msk.f32.mxu1 %vm6050_vm2, %v7626_v63  ;;  %v2216_v63 = vmul.f32 %v5539_v45, %v7709_v47  ;;  %v2649_v45 = vrot.slane %v7691_v60, 2  ;;  %v2655_v60 = vrot.slane %v7731_v18, 2 }
 0x3ec   : > { %3259 = vmatmul.mubr.f32.gmra.mrb[80].mxu1 %v8739_v25 }
 0x3ed   : > { %3263 = vmatprep.mubr.f32.mxu1 %v7656_v54 }
 0x3ef   : > { %v7854_v37 = vpop.f32.mrb[64].mxu0 }
 0x3f0   : > { %8740 = vst [vmem:[#allocation24_spill] sm:$0xff] %v7854_v37  ;;  %3264 = vmatmul.mubr.f32.gmra.mrb[82].mxu1 %v8741_v20  ;;  %v7857_v9 = vpop.f32.mrb[65].mxu0  ;;  %v5540_v37 = vld [vmem:[%s8321_s5] ss:$0 sm:$0xff] }
 0x3f1   : > { %8742 = vst [vmem:[#allocation27_spill] sm:$0xff] %v7857_v9  ;;  %4316 = vmatprep.mubr.msk.f32.mxu1 %vm6050_vm2, %v7663_v48  ;;  %v2255_v9 = vadd.f32 %v5540_v37, %v2216_v63  ;;  %v2650_v48 = vrot.slane %v7695_v61, 2  ;;  %v2256_v38 = vadd.f32 %v5540_v37, %v2217_v53  ;;  %v2652_v63 = vrot.slane %v7699_v58, 2 }
 0x3f3   : > { %v2287_v47 = vmax.f32 %v2255_v9, 0.0  ;;  %v7883_v39 = vsel %vm781_vm3, %v2649_v45, %v2650_v48 }
 0x3f4   : > { %3269 = vmatmul.mubr.f32.gmra.mrb[84].mxu1 %v7671_v22 }
 0x3f5   : > { %3273 = vmatprep.mubr.f32.mxu1 %v7695_v61  ;;  %v7888_v37 = vrot.slane %v2287_v47, 7  ;;  %v2801_v47 = vld [vmem:[#allocation7 + $0x300] sm:$0xff] }
 0x3f7   : > { %v7872_v54 = vpop.f32.mrb[66].mxu0 }
 0x3f8   : > { %8743 = vst [vmem:[#allocation29_spill] sm:$0xff] %v7872_v54  ;;  %3274 = vmatmul.mubr.f32.gmra.mrb[86].mxu1 %v7674_v51  ;;  %v7876_v40 = vpop.f32.mrb[67].mxu0  ;;  %v2288_v54 = vmax.f32 %v2256_v38, 0.0  ;;  %v2654_v38 = vrot.slane %v7727_v35, 2 }
 0x3f9   : > { %8744 = vst [vmem:[#allocation36_spill] sm:$0xff] %v7876_v40  ;;  %4318 = vmatprep.mubr.msk.f32.mxu1 %vm6050_vm2, %v7705_v0  ;;  %v7893_v40 = vsel %vm781_vm3, %v2650_v48, %v2652_v63  ;;  %v2657_v48 = vrot.slane %v7734_v46, 2  ;;  %v2802_v63 = vld [vmem:[#allocation7 + $0x308] sm:$0xff]  ;;  %v8749_v0 = vld [vmem:[#allocation15_spill] sm:$0xff] }
 0x3fa   : > { %v7896_v9 = vrot.slane %v2288_v54, 7  ;;  %v7906_v58 = vsel %vm781_vm3, %v2654_v38, %v2655_v60  ;;  %v4985_v46 = vpack.c.bf16 %v2802_v63, %v2801_v47  ;;  %v8751_v47 = vld [vmem:[#allocation17_spill] sm:$0xff] }
 0x3fb   : > { %v7919_v35 = vsel %vm781_vm3, %v2655_v60, %v2657_v48  ;;  %v2806_v60 = vld [vmem:[#allocation7 + $0x328] sm:$0xff] }
 0x3fc   : > { %3279 = vmatmul.mubr.f32.gmra.mrb[88].mxu1 %v7883_v39  ;;  %v7913_v54 = vsel %vm501_vm0, %v7888_v37, %v7896_v9 }
 0x3fd   : > { %3283 = vmatprep.mubr.f32.mxu1 %v7731_v18  ;;  %v2804_v18 = vld [vmem:[#allocation7 + $0x318] sm:$0xff] }
 0x3ff   : > { %v7890_v53 = vpop.f32.mrb[68].mxu0 }
 0x400   : > { %8745 = vst [vmem:[#allocation39_spill] sm:$0xff] %v7890_v53  ;;  %3284 = vmatmul.mubr.f32.gmra.mrb[90].mxu1 %v7893_v40  ;;  %v7899_v45 = vpop.f32.mrb[69].mxu0 }
 0x401   : > { %8746 = vst [vmem:[#allocation54_spill] sm:$0xff] %v7899_v45  ;;  %4320 = vmatprep.mubr.msk.f32.mxu1 %vm6050_vm2, %v7888_v37  ;;  %v2803_v45 = vld [vmem:[#allocation7 + $0x310] sm:$0xff] }
 0x402   : > { %v4988_v61 = vpack.c.bf16 %v2804_v18, %v2803_v45  ;;  %v2809_v45 = vld [vmem:[#allocation7 + $0x340] sm:$0xff] }
 0x404   : > { %3289 = vmatmul.mubr.f32.gmra.mrb[92].mxu1 %v7906_v58 }
 0x405   : > { %3293 = vmatprep.mubr.f32.mxu1 %v7913_v54 }
 0x407   : > { %v7916_v53 = vpop.f32.mrb[70].mxu0 }
 0x408   : > { %8747 = vst [vmem:[#allocation56_spill] sm:$0xff] %v7916_v53  ;;  %3294 = vmatmul.mubr.f32.gmra.mrb[94].mxu1 %v7919_v35  ;;  %v7922_v38 = vpop.f32.mrb[71].mxu0  ;;  %v2805_v53 = vld [vmem:[#allocation7 + $0x320] sm:$0xff] }
 0x409   : > { %8748 = vst [vmem:[#allocation64_spill] sm:$0xff] %v7922_v38  ;;  %3363 = vmatprep.mubr.f32.mxu1 %v7766_v7  ;;  %v4991_v7 = vpack.c.bf16 %v2806_v60, %v2805_v53  ;;  %v2811_v53 = vld [vmem:[#allocation7 + $0x350] sm:$0xff]  ;;  %v8755_v60 = vld [vmem:[#allocation19_spill] sm:$0xff] }
 0x40c   : > { %3364 = vmatmul.mubr.f32.vlgmr.msra.gmra.mrb[32].mxu1 %v8749_v0  ;;  %v2807_v0 = vld [vmem:[#allocation7 + $0x330] sm:$0xff] }
 0x40d   : > { %3368 = vmatprep.mubr.f32.mxu1 %v7773_v36  ;;  %4986 = vmatpush1.bf16.msra.mxu1 %v4985_v46  ;;  %v2808_v36 = vld [vmem:[#allocation7 + $0x338] sm:$0xff]  ;;  %v8753_v46 = vld [vmem:[#allocation18_spill] sm:$0xff] }
 0x40e   : > { %4987 = vmatprep.subr.bf16.mxu1 %v8563_v52  ;;  %v4994_v18 = vpack.c.bf16 %v2808_v36, %v2807_v0  ;;  %v2813_v0 = vld [vmem:[#allocation7 + $0x360] sm:$0xff]  ;;  %v2814_v36 = vld [vmem:[#allocation7 + $0x368] sm:$0xff] }
 0x40f   : > { %v7928_v48 = vpop.f32.mrb[72].mxu0 }
 0x410   : > { %3369 = vmatmul.mubr.f32.gmra.mrb[34].mxu1 %v8750_v28  ;;  %v7931_v38 = vpop.f32.mrb[73].mxu0  ;;  %v2810_v28 = vld [vmem:[#allocation7 + $0x348] sm:$0xff] }
 0x411   : > { %3373 = vmatprep.mubr.f32.mxu1 %v7264_v11  ;;  %4989 = vmatpush1.bf16.msra.mxu1 %v4988_v61  ;;  %v4997_v61 = vpack.c.bf16 %v2810_v28, %v2809_v45  ;;  %v2815_v45 = vld [vmem:[#allocation7 + $0x370] sm:$0xff]  ;;  %v8759_v28 = vld [vmem:[#allocation21_spill] sm:$0xff] }
 0x412   : > { %4990 = vmatprep.subr.bf16.mxu1 %v8563_v52 }
 0x414   : > { %3374 = vmatmul.mubr.f32.gmra.mrb[36].mxu1 %v8751_v47 }
 0x415   : > { %3378 = vmatprep.mubr.f32.mxu1 %v7267_v55  ;;  %4992 = vmatpush1.bf16.msra.mxu1 %v4991_v7  ;;  %v2812_v55 = vld [vmem:[#allocation7 + $0x358] sm:$0xff] }
 0x416   : > { %4993 = vmatprep.subr.bf16.mxu1 %v8563_v52  ;;  %v5000_v7 = vpack.c.bf16 %v2812_v55, %v2811_v53  ;;  %v2817_v53 = vld [vmem:[#allocation7 + $0x380] sm:$0xff]  ;;  %v2818_v55 = vld [vmem:[#allocation7 + $0x388] sm:$0xff] }
 0x417   : > { %v7938_v63 = vpop.f32.mrb[74].mxu0 }
 0x418   : > { %8752 = vst [vmem:[#allocation65_spill] sm:$0xff] %v7938_v63  ;;  %3379 = vmatmul.mubr.f32.gmra.mrb[38].mxu1 %v8753_v46  ;;  %v7941_v11 = vpop.f32.mrb[75].mxu0 }
 0x419   : > { %8754 = vst [vmem:[#allocation38_spill] sm:$0xff] %v7941_v11  ;;  %3383 = vmatprep.mubr.f32.mxu1 %v7301_v4  ;;  %4995 = vmatpush1.bf16.msra.mxu1 %v4994_v18  ;;  %v8757_v11 = vld [vmem:[#allocation20_spill] sm:$0xff]  ;;  %v5003_v18 = vpack.c.bf16 %v2814_v36, %v2813_v0  ;;  %v2819_v0 = vld [vmem:[#allocation7 + $0x390] sm:$0xff]  ;;  %v8763_v36 = vld [vmem:[#allocation23_spill] sm:$0xff] }
 0x41a   : > { %4996 = vmatprep.subr.bf16.mxu1 %v8563_v52 }
 0x41c   : > { %3384 = vmatmul.mubr.f32.gmra.mrb[40].mxu1 %v8755_v60 }
 0x41d   : > { %3388 = vmatprep.mubr.f32.mxu1 %v7304_v14  ;;  %4998 = vmatpush1.bf16.msra.mxu1 %v4997_v61  ;;  %v2816_v14 = vld [vmem:[#allocation7 + $0x378] sm:$0xff] }
 0x41e   : > { %4999 = vmatprep.subr.bf16.mxu1 %v8563_v52  ;;  %v5006_v61 = vpack.c.bf16 %v2816_v14, %v2815_v45  ;;  %v2821_v45 = vld [vmem:[#allocation7 + $0x3a0] sm:$0xff]  ;;  %v2822_v14 = vld [vmem:[#allocation7 + $0x3a8] sm:$0xff] }
 0x41f   : > { %v7948_v63 = vpop.f32.mrb[76].mxu0 }
 0x420   : > { %8756 = vst [vmem:[#allocation40_spill] sm:$0xff] %v7948_v63  ;;  %3389 = vmatmul.mubr.f32.gmra.mrb[42].mxu1 %v8757_v11  ;;  %v7951_v4 = vpop.f32.mrb[77].mxu0 }
 0x421   : > { %8758 = vst [vmem:[#allocation55_spill] sm:$0xff] %v7951_v4  ;;  %3393 = vmatprep.mubr.f32.mxu1 %v7338_v13  ;;  %5001 = vmatpush1.bf16.msra.mxu1 %v5000_v7  ;;  %v8761_v4 = vld [vmem:[#allocation22_spill] sm:$0xff]  ;;  %v5009_v7 = vpack.c.bf16 %v2818_v55, %v2817_v53 }
 0x422   : > { %5002 = vmatprep.subr.bf16.mxu1 %v8563_v52  ;;  %v2823_v53 = vld [vmem:[#allocation7 + $0x3b0] sm:$0xff] }
 0x423   : > { %v8767_v55 = vld [vmem:[#allocation26_spill] sm:$0xff] }
 0x424   : > { %3394 = vmatmul.mubr.f32.gmra.mrb[44].mxu1 %v8759_v28 }
 0x425   : > { %3398 = vmatprep.mubr.f32.mxu1 %v7341_v42  ;;  %5004 = vmatpush1.bf16.msra.mxu1 %v5003_v18  ;;  %v2820_v42 = vld [vmem:[#allocation7 + $0x398] sm:$0xff] }
 0x426   : > { %5005 = vmatprep.subr.bf16.mxu1 %v8563_v52  ;;  %v5012_v18 = vpack.c.bf16 %v2820_v42, %v2819_v0  ;;  %v2825_v0 = vld [vmem:[#allocation7 + $0x3c0] sm:$0xff]  ;;  %v2826_v42 = vld [vmem:[#allocation7 + $0x3c8] sm:$0xff] }
 0x427   : > { %v7958_v63 = vpop.f32.mrb[78].mxu0 }
 0x428   : > { %8760 = vst [vmem:[#allocation57_spill] sm:$0xff] %v7958_v63  ;;  %3399 = vmatmul.mubr.f32.gmra.mrb[46].mxu1 %v8761_v4  ;;  %v7961_v13 = vpop.f32.mrb[79].mxu0 }
 0x429   : > { %8762 = vst [vmem:[#allocation71_spill] sm:$0xff] %v7961_v13  ;;  %3403 = vmatprep.mubr.f32.mxu1 %v7375_v29  ;;  %5007 = vmatpush1.bf16.msra.mxu1 %v5006_v61  ;;  %v8765_v13 = vld [vmem:[#allocation25_spill] sm:$0xff]  ;;  %v5015_v61 = vpack.c.bf16 %v2822_v14, %v2821_v45  ;;  %v2827_v45 = vld [vmem:[#allocation7 + $0x3d0] sm:$0xff] }
 0x42a   : > { %5008 = vmatprep.subr.bf16.mxu1 %v8563_v52  ;;  %v8771_v14 = vld [vmem:[#allocation34_spill] sm:$0xff] }
 0x42c   : > { %3404 = vmatmul.mubr.f32.gmra.mrb[48].mxu1 %v8763_v36 }
 0x42d   : > { %3408 = vmatprep.mubr.f32.mxu1 %v8726_v8  ;;  %5010 = vmatpush1.bf16.msra.mxu1 %v5009_v7  ;;  %v2824_v8 = vld [vmem:[#allocation7 + $0x3b8] sm:$0xff] }
 0x42e   : > { %5011 = vmatprep.subr.bf16.mxu1 %v8563_v52  ;;  %v5018_v7 = vpack.c.bf16 %v2824_v8, %v2823_v53  ;;  %v2829_v53 = vld [vmem:[#allocation7 + $0x3e0] sm:$0xff]  ;;  %v2830_v8 = vld [vmem:[#allocation7 + $0x3e8] sm:$0xff] }
 0x42f   : > { %v7968_v63 = vpop.f32.mrb[80].mxu0 }
 0x430   : > { %8764 = vst [vmem:[#allocation72_spill] sm:$0xff] %v7968_v63  ;;  %3409 = vmatmul.mubr.f32.gmra.mrb[50].mxu1 %v8765_v13  ;;  %v7971_v29 = vpop.f32.mrb[81].mxu0 }
 0x431   : > { %8766 = vst [vmem:[#allocation15_spill] sm:$0xff] %v7971_v29  ;;  %3413 = vmatprep.mubr.f32.mxu1 %v8727_v62  ;;  %5013 = vmatpush1.bf16.msra.mxu1 %v5012_v18  ;;  %v8769_v29 = vld [vmem:[#allocation31_spill] sm:$0xff]  ;;  %v5021_v18 = vpack.c.bf16 %v2826_v42, %v2825_v0  ;;  %v2831_v0 = vld [vmem:[#allocation7 + $0x3f0] sm:$0xff] }
 0x432   : > { %5014 = vmatprep.subr.bf16.mxu1 %v8563_v52  ;;  %v8774_v42 = vld [vmem:[#allocation51_spill] sm:$0xff] }
 0x434   : > { %3414 = vmatmul.mubr.f32.gmra.mrb[52].mxu1 %v8767_v55 }
 0x435   : > { %3418 = vmatprep.mubr.f32.mxu1 %v8728_v2  ;;  %5016 = vmatpush1.bf16.msra.mxu1 %v5015_v61  ;;  %v2828_v2 = vld [vmem:[#allocation7 + $0x3d8] sm:$0xff] }
 0x436   : > { %5017 = vmatprep.subr.bf16.mxu1 %v8563_v52  ;;  %v5024_v61 = vpack.c.bf16 %v2828_v2, %v2827_v45  ;;  %v8776_v2 = vld [vmem:[#allocation58_spill] sm:$0xff] }
 0x437   : > { %v7978_v63 = vpop.f32.mrb[82].mxu0 }
 0x438   : > { %8768 = vst [vmem:[#allocation16_spill] sm:$0xff] %v7978_v63  ;;  %3419 = vmatmul.mubr.f32.gmra.mrb[54].mxu1 %v8769_v29  ;;  %v7981_v62 = vpop.f32.mrb[83].mxu0 }
 0x439   : > { %8770 = vst [vmem:[#allocation17_spill] sm:$0xff] %v7981_v62  ;;  %3423 = vmatprep.mubr.f32.mxu1 %v8729_v41  ;;  %5019 = vmatpush1.bf16.msra.mxu1 %v5018_v7  ;;  %v8773_v62 = vld [vmem:[#allocation42_spill] sm:$0xff]  ;;  %v5027_v7 = vpack.c.bf16 %v2830_v8, %v2829_v53  ;;  %v8782_v53 = vld [vmem:[#allocation44_spill] sm:$0xff]  ;;  %v8784_v8 = vld [vmem:[#allocation61_spill] sm:$0xff] }
 0x43a   : > { %5020 = vmatprep.subr.bf16.mxu1 %v8563_v52 }
 0x43c   : > { %3424 = vmatmul.mubr.f32.gmra.mrb[56].mxu1 %v8771_v14 }
 0x43d   : > { %3428 = vmatprep.mubr.f32.mxu1 %v8730_v57  ;;  %5022 = vmatpush1.bf16.msra.mxu1 %v5021_v18  ;;  %v2832_v57 = vld [vmem:[#allocation7 + $0x3f8] sm:$0xff] }
 0x43e   : > { %5023 = vmatprep.subr.bf16.mxu1 %v8563_v52  ;;  %v5030_v18 = vpack.c.bf16 %v2832_v57, %v2831_v0 }
 0x43f   : > { %v7988_v63 = vpop.f32.mrb[84].mxu0 }
 0x440   : > { %8772 = vst [vmem:[#allocation18_spill] sm:$0xff] %v7988_v63  ;;  %3429 = vmatmul.mubr.f32.gmra.mrb[58].mxu1 %v8773_v62  ;;  %v7991_v41 = vpop.f32.mrb[85].mxu0 }
 0x441   : > { %3433 = vmatprep.mubr.f32.mxu1 %v8731_v12  ;;  %5025 = vmatpush1.bf16.msra.mxu1 %v5024_v61  ;;  %v8778_v12 = vld [vmem:[#allocation35_spill] sm:$0xff]  ;;  %v8779_v61 = vld [vmem:[#allocation62_spill] sm:$0xff] }
 0x442   : > { %5026 = vmatprep.subr.bf16.mxu1 %v8563_v52 }
 0x444   : > { %3434 = vmatmul.mubr.f32.gmra.mrb[60].mxu1 %v8774_v42 }
 0x445   : > { %3438 = vmatprep.mubr.f32.mxu1 %v8732_v30  ;;  %5028 = vmatpush1.bf16.msra.mxu1 %v5027_v7  ;;  %v8780_v30 = vld [vmem:[#allocation28_spill] sm:$0xff] }
 0x446   : > { %5029 = vmatprep.subr.bf16.mxu1 %v8563_v52  ;;  %v8781_v52 = vld [vmem:[#allocation33_spill] sm:$0xff] }
 0x447   : > { %v7998_v45 = vpop.f32.mrb[86].mxu0 }
 0x448   : > { %8775 = vst [vmem:[#allocation19_spill] sm:$0xff] %v7998_v45  ;;  %3439 = vmatmul.mubr.f32.gmra.mrb[62].mxu1 %v8776_v2  ;;  %v8001_v63 = vpop.f32.mrb[87].mxu0 }
 0x449   : > { %8777 = vst [vmem:[#allocation20_spill] sm:$0xff] %v8001_v63  ;;  %3443 = vmatprep.mubr.f32.mxu1 %v8733_v16  ;;  %5031 = vmatpush1.bf16.msra.mxu1 %v5030_v18  ;;  %v8783_v16 = vld [vmem:[#allocation52_spill] sm:$0xff] }
 0x44a   : > { %5064 = vmatprep.subr.bf16.mxu1 %v8778_v12 }
 0x44c   : > { %3444 = vmatmul.mubr.f32.gmra.mrb[64].mxu1 %v8779_v61 }
 0x44d   : > { %3448 = vmatprep.mubr.f32.mxu1 %v8734_v10  ;;  %v8785_v10 = vld [vmem:[#allocation70_spill] sm:$0xff] }
 0x450   : > { %3449 = vmatmul.mubr.f32.gmra.mrb[66].mxu1 %v8780_v30 }
 0x451   : > { %3453 = vmatprep.mubr.f32.mxu1 %v8735_v21  ;;  %v8786_v21 = vld [vmem:[#allocation73_spill] sm:$0xff] }
 0x454   : > { %3454 = vmatmul.mubr.f32.gmra.mrb[68].mxu1 %v8781_v52 }
 0x455   : > { %3458 = vmatprep.mubr.f32.mxu1 %v8736_v44 }
 0x458   : > { %3459 = vmatmul.mubr.f32.gmra.mrb[70].mxu1 %v8782_v53 }
 0x459   : > { %3463 = vmatprep.mubr.f32.mxu1 %v8737_v1  ;;  %v2692_v1 = vrot.slane %v7913_v54, 1 }
 0x45c   : > { %3464 = vmatmul.mubr.f32.gmra.mrb[72].mxu1 %v8783_v16 }
 0x45d   : > { %3468 = vmatprep.mubr.f32.mxu1 %v8738_v56  ;;  %v8788_v56 = vld [vmem:[#allocation80_spill] sm:$0xff] }
 0x460   : > { %3469 = vmatmul.mubr.f32.gmra.mrb[74].mxu1 %v8784_v8 }
 0x461   : > { %3473 = vmatprep.mubr.f32.mxu1 %v8739_v25  ;;  %v8787_v25 = vld [vmem:[#allocation79_spill] sm:$0xff] }
 0x464   : > { %3474 = vmatmul.mubr.f32.gmra.mrb[76].mxu1 %v8785_v10 }
 0x465   : > { %3478 = vmatprep.mubr.f32.mxu1 %v8741_v20  ;;  %v2432_v20 = vsel %vm501_vm0, 0.0, %v7888_v37 }
 0x466   : > { %v2698_v44 = vrot.slane %v2432_v20, 2  ;;  %v2691_v57 = vrot.slane %v2432_v20, 1  ;;  %v8789_v20 = vld [vmem:[#allocation37_spill] sm:$0xff] }
 0x468   : > { %3479 = vmatmul.mubr.f32.gmra.mrb[78].mxu1 %v8786_v21  ;;  %v8043_v18 = vsel %vm668_vm1, %v2691_v57, %v2692_v1  ;;  %v8821_v57 = vld [vmem:[#allocation39_spill] sm:$0xff] }
 0x469   : > { %3483 = vmatprep.mubr.f32.mxu1 %v7671_v22  ;;  %v2699_v22 = vrot.slane %v7913_v54, 2 }
 0x46b   : > { %v8039_v7 = vsel %vm781_vm3, %v2698_v44, %v2699_v22 }
 0x46c   : > { %3484 = vmatmul.mubr.f32.gmra.mrb[80].mxu1 %v7668_v43 }
 0x46d   : > { %3488 = vmatprep.mubr.f32.mxu1 %v7674_v51  ;;  %v2448_v51 = vsel %vm501_vm0, %v7896_v9, 0.0 }
 0x46e   : > { %v2701_v0 = vrot.slane %v2448_v51, 2  ;;  %v2694_v45 = vrot.slane %v2448_v51, 1  ;;  %v8820_v51 = vld [vmem:[#allocation54_spill] sm:$0xff] }
 0x470   : > { %3489 = vmatmul.mubr.f32.gmra.mrb[82].mxu1 %v7684_v50  ;;  %v8047_v9 = vsel %vm781_vm3, %v2699_v22, %v2701_v0  ;;  %v8051_v63 = vsel %vm668_vm1, %v2692_v1, %v2694_v45  ;;  %v8790_v45 = vld [vmem:[#allocation41_spill] sm:$0xff] }
 0x471   : > { %3493 = vmatprep.mubr.f32.mxu1 %v7883_v39 }
 0x474   : > { %3494 = vmatmul.mubr.f32.gmra.mrb[84].mxu1 %v7712_v15 }
 0x475   : > { %3498 = vmatprep.mubr.f32.mxu1 %v7893_v40 }
 0x478   : > { %3499 = vmatmul.mubr.f32.gmra.mrb[86].mxu1 %v7719_v31 }
 0x479   : > { %3503 = vmatprep.mubr.f32.mxu1 %v7906_v58 }
 0x47c   : > { %3504 = vmatmul.mubr.f32.gmra.mrb[88].mxu1 %v8787_v25 }
 0x47d   : > { %3508 = vmatprep.mubr.f32.mxu1 %v7919_v35 }
 0x480   : > { %3509 = vmatmul.mubr.f32.gmra.mrb[90].mxu1 %v8788_v56 }
 0x481   : > { %3513 = vmatprep.mubr.f32.mxu1 %v8039_v7 }
 0x484   : > { %3514 = vmatmul.mubr.f32.gmra.mrb[92].mxu1 %v8043_v18 }
 0x485   : > { %3518 = vmatprep.mubr.f32.mxu1 %v8047_v9 }
 0x488   : > { %3519 = vmatmul.mubr.f32.gmra.mrb[94].mxu1 %v8051_v63 }
 0x489   : > { %3588 = vmatprep.mubr.f32.mxu1 %v8751_v47  ;;  %v8804_v47 = vld [vmem:[#allocation68_spill] sm:$0xff] }
 0x48c   : > { %4322 = vmatmul.mubr.msk.f32.vlgmr.msra.gmra.mrb[32].mxu1 %vm6050_vm2, %v7227_v23  ;;  %v8791_v23 = vld [vmem:[#allocation43_spill] sm:$0xff] }
 0x48d   : > { %3593 = vmatprep.mubr.f32.mxu1 %v8753_v46  ;;  %5072 = vmatpush3.bf16.msra.mxu1 %v8778_v12  ;;  %v8805_v46 = vld [vmem:[#allocation69_spill] sm:$0xff] }
 0x48e   : > { %5065 = vmatprep.subr.bf16.mxu1 %v8789_v20 }
 0x490   : > { %3594 = vmatmul.mubr.f32.gmra.mrb[34].mxu1 %v7249_v3  ;;  %v8792_v3 = vld [vmem:[#allocation46_spill] sm:$0xff] }
 0x491   : > { %3598 = vmatprep.mubr.f32.mxu1 %v8755_v60  ;;  %5073 = vmatpush3.bf16.msra.mxu1 %v8789_v20  ;;  %v8807_v60 = vld [vmem:[#allocation75_spill] sm:$0xff]  ;;  %v5546_v20 = vld [vmem:[%s5968_s13 + $0x28] sm:$0xff] }
 0x492   : > { %5066 = vmatprep.subr.bf16.mxu1 %v8790_v45 }
 0x494   : > { %4324 = vmatmul.mubr.msk.f32.gmra.mrb[36].mxu1 %vm6050_vm2, %v7256_v49  ;;  %v8793_v49 = vld [vmem:[#allocation50_spill] sm:$0xff] }
 0x495   : > { %3603 = vmatprep.mubr.f32.mxu1 %v8757_v11  ;;  %5074 = vmatpush3.bf16.msra.mxu1 %v8790_v45  ;;  %v8806_v11 = vld [vmem:[#allocation74_spill] sm:$0xff] }
 0x496   : > { %5067 = vmatprep.subr.bf16.mxu1 %v8791_v23 }
 0x498   : > { %3604 = vmatmul.mubr.f32.gmra.mrb[38].mxu1 %v7286_v5  ;;  %v8794_v5 = vld [vmem:[#allocation53_spill] sm:$0xff] }
 0x499   : > { %3608 = vmatprep.mubr.f32.mxu1 %v8759_v28  ;;  %5075 = vmatpush3.bf16.msra.mxu1 %v8791_v23  ;;  %v8813_v28 = vld [vmem:[#allocation14_spill] sm:$0xff] }
 0x49a   : > { %5068 = vmatprep.subr.bf16.mxu1 %v8792_v3 }
 0x49c   : > { %4326 = vmatmul.mubr.msk.f32.gmra.mrb[40].mxu1 %vm6050_vm2, %v7293_v19  ;;  %v8795_v19 = vld [vmem:[#allocation63_spill] sm:$0xff] }
 0x49d   : > { %3613 = vmatprep.mubr.f32.mxu1 %v8761_v4  ;;  %5076 = vmatpush3.bf16.msra.mxu1 %v8792_v3  ;;  %v8808_v4 = vld [vmem:[#allocation76_spill] sm:$0xff] }
 0x49e   : > { %5069 = vmatprep.subr.bf16.mxu1 %v8793_v49  ;;  %v8822_v3 = vld [vmem:[#allocation64_spill] sm:$0xff] }
 0x4a0   : > { %3614 = vmatmul.mubr.f32.gmra.mrb[42].mxu1 %v7323_v17  ;;  %v8796_v17 = vld [vmem:[#allocation45_spill] sm:$0xff] }
 0x4a1   : > { %3618 = vmatprep.mubr.f32.mxu1 %v8763_v36  ;;  %5077 = vmatpush3.bf16.msra.mxu1 %v8793_v49  ;;  %v5541_v36 = vld [vmem:[%s5968_s13] sm:$0xff] }
 0x4a2   : > { %5070 = vmatprep.subr.bf16.mxu1 %v8794_v5 }
 0x4a4   : > { %4328 = vmatmul.mubr.msk.f32.gmra.mrb[44].mxu1 %vm6050_vm2, %v7330_v32  ;;  %v8797_v32 = vld [vmem:[#allocation48_spill] sm:$0xff] }
 0x4a5   : > { %3623 = vmatprep.mubr.f32.mxu1 %v8765_v13  ;;  %5078 = vmatpush3.bf16.msra.mxu1 %v8794_v5 }
 0x4a6   : > { %5071 = vmatprep.subr.bf16.mxu1 %v8795_v19 }
 0x4a8   : > { %3624 = vmatmul.mubr.f32.gmra.mrb[46].mxu1 %v7360_v6  ;;  %v8798_v6 = vld [vmem:[#allocation59_spill] sm:$0xff] }
 0x4a9   : > { %3628 = vmatprep.mubr.f32.mxu1 %v8767_v55  ;;  %5079 = vmatpush3.bf16.msra.mxu1 %v8795_v19  ;;  %v5547_v19 = vld [vmem:[%s5968_s13 + $0x30] sm:$0xff] }
 0x4ac   : > { %4330 = vmatmul.mubr.msk.f32.gmra.mrb[48].mxu1 %vm6050_vm2, %v7367_v33  ;;  %v8799_v33 = vld [vmem:[#allocation60_spill] sm:$0xff] }
 0x4ad   : > { %3633 = vmatprep.mubr.f32.mxu1 %v8769_v29 }
 0x4b0   : > { %3634 = vmatmul.mubr.f32.gmra.mrb[50].mxu1 %v7397_v27  ;;  %v8800_v27 = vld [vmem:[#allocation30_spill] sm:$0xff] }
 0x4b1   : > { %3638 = vmatprep.mubr.f32.mxu1 %v8771_v14 }
 0x4b4   : > { %4332 = vmatmul.mubr.msk.f32.gmra.mrb[52].mxu1 %vm6050_vm2, %v7404_v24  ;;  %v8801_v24 = vld [vmem:[#allocation32_spill] sm:$0xff] }
 0x4b5   : > { %3643 = vmatprep.mubr.f32.mxu1 %v8773_v62  ;;  %v5542_v62 = vld [vmem:[%s5968_s13 + $0x8] sm:$0xff] }
 0x4b8   : > { %3644 = vmatmul.mubr.f32.gmra.mrb[54].mxu1 %v7434_v34  ;;  %v8802_v34 = vld [vmem:[#allocation47_spill] sm:$0xff] }
 0x4b9   : > { %3648 = vmatprep.mubr.f32.mxu1 %v8774_v42 }
 0x4bc   : > { %4334 = vmatmul.mubr.msk.f32.gmra.mrb[56].mxu1 %vm6050_vm2, %v7441_v59  ;;  %v8803_v59 = vld [vmem:[#allocation49_spill] sm:$0xff] }
 0x4bd   : > { %3653 = vmatprep.mubr.f32.mxu1 %v8776_v2  ;;  %v8818_v2 = vld [vmem:[#allocation36_spill] sm:$0xff] }
 0x4c0   : > { %3654 = vmatmul.mubr.f32.gmra.mrb[58].mxu1 %v8796_v17 }
 0x4c1   : > { %3658 = vmatprep.mubr.f32.mxu1 %v8779_v61 }
 0x4c4   : > { %4336 = vmatmul.mubr.msk.f32.gmra.mrb[60].mxu1 %vm6050_vm2, %v8797_v32 }
 0x4c5   : > { %3663 = vmatprep.mubr.f32.mxu1 %v8780_v30  ;;  %v5543_v30 = vld [vmem:[%s5968_s13 + $0x10] sm:$0xff] }
 0x4c8   : > { %3664 = vmatmul.mubr.f32.gmra.mrb[62].mxu1 %v8798_v6  ;;  %v8823_v6 = vld [vmem:[#allocation56_spill] sm:$0xff] }
 0x4c9   : > { %3668 = vmatprep.mubr.f32.mxu1 %v8781_v52 }
 0x4cc   : > { %4338 = vmatmul.mubr.msk.f32.gmra.mrb[64].mxu1 %vm6050_vm2, %v8799_v33 }
 0x4cd   : > { %3673 = vmatprep.mubr.f32.mxu1 %v8782_v53 }
 0x4d0   : > { %3674 = vmatmul.mubr.f32.gmra.mrb[66].mxu1 %v8800_v27 }
 0x4d1   : > { %3678 = vmatprep.mubr.f32.mxu1 %v8783_v16  ;;  %v8819_v16 = vld [vmem:[#allocation29_spill] sm:$0xff] }
 0x4d4   : > { %4340 = vmatmul.mubr.msk.f32.gmra.mrb[68].mxu1 %vm6050_vm2, %v8801_v24  ;;  %v5548_v24 = vld [vmem:[%s5968_s13 + $0x38] sm:$0xff] }
 0x4d5   : > { %3683 = vmatprep.mubr.f32.mxu1 %v8784_v8 }
 0x4d8   : > { %3684 = vmatmul.mubr.f32.gmra.mrb[70].mxu1 %v8802_v34 }
 0x4d9   : > { %3688 = vmatprep.mubr.f32.mxu1 %v8785_v10 }
 0x4dc   : > { %4342 = vmatmul.mubr.msk.f32.gmra.mrb[72].mxu1 %vm6050_vm2, %v8803_v59 }
 0x4dd   : > { %3693 = vmatprep.mubr.f32.mxu1 %v8786_v21  ;;  %v5544_v21 = vld [vmem:[%s5968_s13 + $0x18] sm:$0xff] }
 0x4e0   : > { %3694 = vmatmul.mubr.f32.gmra.mrb[74].mxu1 %v8804_v47 }
 0x4e1   : > { %3698 = vmatprep.mubr.f32.mxu1 %v7668_v43  ;;  %v8809_v43 = vld [vmem:[#allocation77_spill] sm:$0xff] }
 0x4e4   : > { %4344 = vmatmul.mubr.msk.f32.gmra.mrb[76].mxu1 %vm6050_vm2, %v8805_v46 }
 0x4e5   : > { %3703 = vmatprep.mubr.f32.mxu1 %v7684_v50  ;;  %v8810_v50 = vld [vmem:[#allocation78_spill] sm:$0xff] }
 0x4e8   : > { %3704 = vmatmul.mubr.f32.gmra.mrb[78].mxu1 %v8806_v11  ;;  %v5549_v11 = vld [vmem:[%s5968_s13 + $0x40] sm:$0xff] }
 0x4e9   : > { %3708 = vmatprep.mubr.f32.mxu1 %v7712_v15  ;;  %v8811_v15 = vld [vmem:[#allocation13_spill] sm:$0xff] }
 0x4ec   : > { %4346 = vmatmul.mubr.msk.f32.gmra.mrb[80].mxu1 %vm6050_vm2, %v8807_v60 }
 0x4ed   : > { %3713 = vmatprep.mubr.f32.mxu1 %v7719_v31  ;;  %v8812_v31 = vld [vmem:[#allocation12_spill] sm:$0xff] }
 0x4f0   : > { %3714 = vmatmul.mubr.f32.gmra.mrb[82].mxu1 %v8808_v4 }
 0x4f1   : > { %3718 = vmatprep.mubr.f32.mxu1 %v8787_v25 }
 0x4f4   : > { %4348 = vmatmul.mubr.msk.f32.gmra.mrb[84].mxu1 %vm6050_vm2, %v8809_v43 }
 0x4f5   : > { %3723 = vmatprep.mubr.f32.mxu1 %v8788_v56  ;;  %v5545_v56 = vld [vmem:[%s5968_s13 + $0x20] sm:$0xff] }
 0x4f8   : > { %3724 = vmatmul.mubr.f32.gmra.mrb[86].mxu1 %v8810_v50 }
 0x4f9   : > { %3728 = vmatprep.mubr.f32.mxu1 %v8043_v18 }
 0x4fc   : > { %4350 = vmatmul.mubr.msk.f32.gmra.mrb[88].mxu1 %vm6050_vm2, %v7888_v37  ;;  %v8815_v37 = vld [vmem:[#allocation67_spill] sm:$0xff] }
 0x4fd   : > { %3733 = vmatprep.mubr.f32.mxu1 %v8051_v63  ;;  %v8816_v63 = vld [vmem:[#allocation27_spill] sm:$0xff] }
 0x500   : > { %3734 = vmatmul.mubr.f32.gmra.mrb[90].mxu1 %v7913_v54 }
 0x501   : > { %3738 = vmatprep.mubr.f32.mxu1 %v8811_v15  ;;  %v5550_v15 = vld [vmem:[%s5968_s13 + $0x48] sm:$0xff] }
 0x504   : > { %4352 = vmatmul.mubr.msk.f32.gmra.mrb[92].mxu1 %vm6050_vm2, %v8812_v31 }
 0x505   : > { %3743 = vmatprep.mubr.f32.mxu1 %v8813_v28 }
 0x508   : > { %3744 = vmatmul.mubr.f32.gmra.mrb[94].mxu1 %v8812_v31 }
 0x509   : > { %4604 = vmatprep.mubr.f32.mxu1 %v7883_v39 }
 0x50c   : > { %4605 = vmatmul.mubr.f32.vlgmr.msra.gmra.mrb[96].mxu1 %v7893_v40 }
 0x50d   : > { %4607 = vmatprep.mubr.f32.mxu1 %v7906_v58  ;;  %v8817_v58 = vld [vmem:[#allocation24_spill] sm:$0xff] }
 0x510   : > { %4608 = vmatmul.mubr.f32.gmra.mrb[98].mxu1 %v7919_v35 }
 0x511   : > { %4610 = vmatprep.mubr.f32.mxu1 %v8039_v7 }
 0x514   : > { %4611 = vmatmul.mubr.f32.gmra.mrb[100].mxu1 %v8047_v9 }
 0x515   : > { %4613 = vmatprep.mubr.f32.mxu1 %v8814_v26  ;;  %v8824_v26 = vld [vmem:[#allocation38_spill] sm:$0xff] }
 0x518   : > { %4614 = vmatmul.mubr.f32.gmra.mrb[102].mxu1 %v8815_v37 }
 0x55f   : > { %v3590_v54 = vpop.f32.mrb[32].mxu1 }
 0x560   : > { %v3816_v13 = vadd.f32 %v8816_v63, %v3590_v54  ;;  %v3592_v39 = vpop.f32.mrb[33].mxu1 }
 0x561   : > { %v8825_v39 = vld [vmem:[#allocation65_spill] sm:$0xff] }
 0x562   : > { %v3974_v40 = vadd.f32 %v5541_v36, %v3816_v13 }
 0x563   : > { %v3595_v29 = vpop.f32.mrb[34].mxu1 }
 0x564   : > { %4006 = vst [vmem:[%s8177_s15] sm:$0xff] %v3974_v40  ;;  %v3821_v35 = vadd.f32 %v8817_v58, %v3595_v29  ;;  %v3597_v55 = vpop.f32.mrb[35].mxu1 }
 0x566   : > { %v3975_v14 = vadd.f32 %v5542_v62, %v3821_v35  ;;  %v8826_v35 = vld [vmem:[#allocation55_spill] sm:$0xff] }
 0x567   : > { %v3600_v42 = vpop.f32.mrb[36].mxu1 }
 0x568   : > { %4007 = vst [vmem:[%s8177_s15 + $0x8] sm:$0xff] %v3975_v14  ;;  %v3826_v12 = vadd.f32 %v8818_v2, %v3600_v42  ;;  %v3602_v61 = vpop.f32.mrb[37].mxu1  ;;  %v5553_v14 = vld [vmem:[%s5968_s13 + $0x60] sm:$0xff] }
 0x56a   : > { %v3976_v52 = vadd.f32 %v5543_v30, %v3826_v12  ;;  %v8827_v12 = vld [vmem:[#allocation40_spill] sm:$0xff] }
 0x56b   : > { %v3605_v53 = vpop.f32.mrb[38].mxu1 }
 0x56c   : > { %4008 = vst [vmem:[%s8177_s15 + $0x10] sm:$0xff] %v3976_v52  ;;  %v3831_v8 = vadd.f32 %v8819_v16, %v3605_v53  ;;  %v3607_v10 = vpop.f32.mrb[39].mxu1  ;;  %v5554_v52 = vld [vmem:[%s5968_s13 + $0x68] sm:$0xff] }
 0x56e   : > { %v3977_v25 = vadd.f32 %v5544_v21, %v3831_v8  ;;  %v8828_v8 = vld [vmem:[#allocation71_spill] sm:$0xff] }
 0x56f   : > { %v3610_v22 = vpop.f32.mrb[40].mxu1 }
 0x570   : > { %4009 = vst [vmem:[%s8177_s15 + $0x18] sm:$0xff] %v3977_v25  ;;  %v3836_v44 = vadd.f32 %v8820_v51, %v3610_v22  ;;  %v3612_v1 = vpop.f32.mrb[41].mxu1  ;;  %v5555_v25 = vld [vmem:[%s5968_s13 + $0x70] sm:$0xff] }
 0x572   : > { %v3978_v7 = vadd.f32 %v5545_v56, %v3836_v44  ;;  %v8829_v44 = vld [vmem:[#allocation57_spill] sm:$0xff] }
 0x573   : > { %v3615_v0 = vpop.f32.mrb[42].mxu1 }
 0x574   : > { %4010 = vst [vmem:[%s8177_s15 + $0x20] sm:$0xff] %v3978_v7  ;;  %v3841_v18 = vadd.f32 %v8821_v57, %v3615_v0  ;;  %v3617_v9 = vpop.f32.mrb[43].mxu1  ;;  %v5556_v7 = vld [vmem:[%s5968_s13 + $0x78] sm:$0xff] }
 0x576   : > { %v3979_v45 = vadd.f32 %v5546_v20, %v3841_v18  ;;  %v8830_v18 = vld [vmem:[#allocation15_spill] sm:$0xff] }
 0x577   : > { %v3620_v23 = vpop.f32.mrb[44].mxu1 }
 0x578   : > { %4011 = vst [vmem:[%s8177_s15 + $0x28] sm:$0xff] %v3979_v45  ;;  %v3846_v49 = vadd.f32 %v8822_v3, %v3620_v23  ;;  %v3622_v5 = vpop.f32.mrb[45].mxu1  ;;  %v5557_v45 = vld [vmem:[%s5968_s13 + $0x80] sm:$0xff] }
 0x57a   : > { %v3980_v17 = vadd.f32 %v5547_v19, %v3846_v49  ;;  %v8831_v49 = vld [vmem:[#allocation72_spill] sm:$0xff] }
 0x57b   : > { %v3625_v32 = vpop.f32.mrb[46].mxu1 }
 0x57c   : > { %4012 = vst [vmem:[%s8177_s15 + $0x30] sm:$0xff] %v3980_v17  ;;  %v3851_v33 = vadd.f32 %v8823_v6, %v3625_v32  ;;  %v3627_v27 = vpop.f32.mrb[47].mxu1  ;;  %v5558_v17 = vld [vmem:[%s5968_s13 + $0x88] sm:$0xff] }
 0x57e   : > { %v3981_v34 = vadd.f32 %v5548_v24, %v3851_v33  ;;  %v8832_v33 = vld [vmem:[#allocation17_spill] sm:$0xff] }
 0x57f   : > { %v3630_v59 = vpop.f32.mrb[48].mxu1 }
 0x580   : > { %4013 = vst [vmem:[%s8177_s15 + $0x38] sm:$0xff] %v3981_v34  ;;  %v3856_v47 = vadd.f32 %v7931_v38, %v3630_v59  ;;  %v3632_v46 = vpop.f32.mrb[49].mxu1  ;;  %v5551_v38 = vld [vmem:[%s5968_s13 + $0x50] sm:$0xff] }
 0x581   : > { %v5559_v34 = vld [vmem:[%s5968_s13 + $0x90] sm:$0xff]  ;;  %v8833_v46 = vld [vmem:[#allocation16_spill] sm:$0xff] }
 0x582   : > { %v3982_v60 = vadd.f32 %v5549_v11, %v3856_v47 }
 0x583   : > { %v3635_v4 = vpop.f32.mrb[50].mxu1 }
 0x584   : > { %4014 = vst [vmem:[%s8177_s15 + $0x40] sm:$0xff] %v3982_v60  ;;  %v3861_v43 = vadd.f32 %v7928_v48, %v3635_v4  ;;  %v3637_v50 = vpop.f32.mrb[51].mxu1  ;;  %v5552_v48 = vld [vmem:[%s5968_s13 + $0x58] sm:$0xff] }
 0x585   : > { %v5560_v4 = vld [vmem:[%s5968_s13 + $0x98] sm:$0xff] }
 0x586   : > { %v3983_v31 = vadd.f32 %v5550_v15, %v3861_v43 }
 0x587   : > { %v3640_v28 = vpop.f32.mrb[52].mxu1 }
 0x588   : > { %4015 = vst [vmem:[%s8177_s15 + $0x48] sm:$0xff] %v3983_v31  ;;  %v3866_v37 = vadd.f32 %v8824_v26, %v3640_v28  ;;  %v3642_v54 = vpop.f32.mrb[53].mxu1  ;;  %v5561_v28 = vld [vmem:[%s5968_s13 + $0xa0] sm:$0xff] }
 0x589   : > { %v8834_v54 = vld [vmem:[#allocation18_spill] sm:$0xff] }
 0x58a   : > { %v3984_v63 = vadd.f32 %v5551_v38, %v3866_v37 }
 0x58b   : > { %v3645_v13 = vpop.f32.mrb[54].mxu1 }
 0x58c   : > { %4016 = vst [vmem:[%s8177_s15 + $0x50] sm:$0xff] %v3984_v63  ;;  %v3871_v36 = vadd.f32 %v8825_v39, %v3645_v13  ;;  %v3647_v40 = vpop.f32.mrb[55].mxu1  ;;  %v5562_v13 = vld [vmem:[%s5968_s13 + $0xa8] sm:$0xff] }
 0x58d   : > { %v8835_v40 = vld [vmem:[#allocation20_spill] sm:$0xff] }
 0x58e   : > { %v3985_v29 = vadd.f32 %v5552_v48, %v3871_v36 }
 0x58f   : > { %v3650_v58 = vpop.f32.mrb[56].mxu1 }
 0x590   : > { %4017 = vst [vmem:[%s8177_s15 + $0x58] sm:$0xff] %v3985_v29  ;;  %v3876_v55 = vadd.f32 %v8826_v35, %v3650_v58  ;;  %v3652_v62 = vpop.f32.mrb[57].mxu1  ;;  %v5563_v58 = vld [vmem:[%s5968_s13 + $0xb0] sm:$0xff] }
 0x592   : > { %v3986_v42 = vadd.f32 %v5553_v14, %v3876_v55  ;;  %v8836_v55 = vld [vmem:[#allocation19_spill] sm:$0xff] }
 0x593   : > { %v3655_v2 = vpop.f32.mrb[58].mxu1 }
 0x594   : > { %4018 = vst [vmem:[%s8177_s15 + $0x60] sm:$0xff] %v3986_v42  ;;  %v3881_v61 = vadd.f32 %v8827_v12, %v3655_v2  ;;  %v3657_v30 = vpop.f32.mrb[59].mxu1  ;;  %v5564_v42 = vld [vmem:[%s5968_s13 + $0xb8] sm:$0xff] }
 0x596   : > { %v3987_v53 = vadd.f32 %v5554_v52, %v3881_v61 }
 0x597   : > { %v3660_v16 = vpop.f32.mrb[60].mxu1 }
 0x598   : > { %4019 = vst [vmem:[%s8177_s15 + $0x68] sm:$0xff] %v3987_v53  ;;  %v3886_v10 = vadd.f32 %v8828_v8, %v3660_v16  ;;  %v3662_v21 = vpop.f32.mrb[61].mxu1 }
 0x59a   : > { %v3988_v22 = vadd.f32 %v5555_v25, %v3886_v10 }
 0x59b   : > { %v3665_v51 = vpop.f32.mrb[62].mxu1 }
 0x59c   : > { %4020 = vst [vmem:[%s8177_s15 + $0x70] sm:$0xff] %v3988_v22  ;;  %v3891_v1 = vadd.f32 %v8829_v44, %v3665_v51  ;;  %v3667_v56 = vpop.f32.mrb[63].mxu1 }
 0x59e   : > { %v3989_v0 = vadd.f32 %v5556_v7, %v3891_v1 }
 0x59f   : > { %v3670_v57 = vpop.f32.mrb[64].mxu1 }
 0x5a0   : > { %4021 = vst [vmem:[%s8177_s15 + $0x78] sm:$0xff] %v3989_v0  ;;  %v3896_v9 = vadd.f32 %v8830_v18, %v3670_v57  ;;  %v3672_v20 = vpop.f32.mrb[65].mxu1 }
 0x5a1   : > { %v5565_v20 = vld [vmem:[%s5968_s13 + $0xc8] sm:$0xff] }
 0x5a2   : > { %v3990_v23 = vadd.f32 %v5557_v45, %v3896_v9 }
 0x5a3   : > { %v3675_v3 = vpop.f32.mrb[66].mxu1 }
 0x5a4   : > { %4022 = vst [vmem:[%s8177_s15 + $0x80] sm:$0xff] %v3990_v23  ;;  %v3901_v5 = vadd.f32 %v8831_v49, %v3675_v3  ;;  %v3677_v19 = vpop.f32.mrb[67].mxu1  ;;  %v5566_v23 = vld [vmem:[%s5968_s13 + $0xc0] sm:$0xff] }
 0x5a6   : > { %v3991_v32 = vadd.f32 %v5558_v17, %v3901_v5 }
 0x5a7   : > { %v3680_v6 = vpop.f32.mrb[68].mxu1 }
 0x5a8   : > { %4023 = vst [vmem:[%s8177_s15 + $0x88] sm:$0xff] %v3991_v32  ;;  %v3906_v27 = vadd.f32 %v8832_v33, %v3680_v6  ;;  %v3682_v24 = vpop.f32.mrb[69].mxu1  ;;  %v5567_v32 = vld [vmem:[%s5968_s13 + $0xd8] sm:$0xff]  ;;  %v5568_v33 = vld [vmem:[%s5968_s13 + $0xd0] sm:$0xff] }
 0x5aa   : > { %v3992_v59 = vadd.f32 %v5559_v34, %v3906_v27 }
 0x5ab   : > { %v3685_v47 = vpop.f32.mrb[70].mxu1 }
 0x5ac   : > { %4024 = vst [vmem:[%s8177_s15 + $0x90] sm:$0xff] %v3992_v59  ;;  %v3911_v11 = vadd.f32 %v8833_v46, %v3685_v47  ;;  %v3687_v60 = vpop.f32.mrb[71].mxu1  ;;  %v5569_v46 = vld [vmem:[%s5968_s13 + $0xe8] sm:$0xff] }
 0x5ad   : > { %v5570_v60 = vld [vmem:[%s5968_s13 + $0xe0] sm:$0xff] }
 0x5ae   : > { %v3993_v43 = vadd.f32 %v5560_v4, %v3911_v11 }
 0x5af   : > { %v3690_v50 = vpop.f32.mrb[72].mxu1 }
 0x5b0   : > { %4025 = vst [vmem:[%s8177_s15 + $0x98] sm:$0xff] %v3993_v43  ;;  %v3916_v15 = vadd.f32 %v7991_v41, %v3690_v50  ;;  %v3692_v31 = vpop.f32.mrb[73].mxu1 }
 0x5b2   : > { %v3994_v26 = vadd.f32 %v5561_v28, %v3916_v15  ;;  %v5571_v28 = vld [vmem:[%s5968_s13 + $0xf8] sm:$0xff] }
 0x5b3   : > { %v3695_v37 = vpop.f32.mrb[74].mxu1 }
 0x5b4   : > { %4026 = vst [vmem:[%s8177_s15 + $0xa0] sm:$0xff] %v3994_v26  ;;  %v3921_v38 = vadd.f32 %v8834_v54, %v3695_v37  ;;  %v3697_v63 = vpop.f32.mrb[75].mxu1  ;;  %v5572_v37 = vld [vmem:[%s5968_s13 + $0xf0] sm:$0xff] }
 0x5b6   : > { %v3995_v39 = vadd.f32 %v5562_v13, %v3921_v38 }
 0x5b7   : > { %v3700_v36 = vpop.f32.mrb[76].mxu1 }
 0x5b8   : > { %4027 = vst [vmem:[%s8177_s15 + $0xa8] sm:$0xff] %v3995_v39  ;;  %v3926_v48 = vadd.f32 %v8835_v40, %v3700_v36  ;;  %v3702_v29 = vpop.f32.mrb[77].mxu1 }
 0x5ba   : > { %v3996_v41 = vadd.f32 %v5563_v58, %v3926_v48 }
 0x5bb   : > { %v3705_v35 = vpop.f32.mrb[78].mxu1 }
 0x5bc   : > { %4028 = vst [vmem:[%s8177_s15 + $0xb0] sm:$0xff] %v3996_v41  ;;  %v3931_v62 = vadd.f32 %v8836_v55, %v3705_v35  ;;  %v3707_v14 = vpop.f32.mrb[79].mxu1 }
 0x5be   : > { %v3997_v2 = vadd.f32 %v5564_v42, %v3931_v62 }
 0x5bf   : > { %v3710_v12 = vpop.f32.mrb[80].mxu1 }
 0x5c0   : > { %4029 = vst [vmem:[%s8177_s15 + $0xb8] sm:$0xff] %v3997_v2  ;;  %v3712_v61 = vpop.f32.mrb[81].mxu1 }
 0x5c3   : > { %v3715_v30 = vpop.f32.mrb[82].mxu1 }
 0x5c4   : > { %v3717_v52 = vpop.f32.mrb[83].mxu1 }
 0x5c7   : > { %v3720_v53 = vpop.f32.mrb[84].mxu1 }
 0x5c8   : > { %v3722_v16 = vpop.f32.mrb[85].mxu1 }
 0x5cb   : > { %v3725_v8 = vpop.f32.mrb[86].mxu1 }
 0x5cc   : > { %v3727_v10 = vpop.f32.mrb[87].mxu1 }
 0x5cf   : > { %v3730_v21 = vpop.f32.mrb[88].mxu1 }
 0x5d0   : > { %v3732_v25 = vpop.f32.mrb[89].mxu1 }
 0x5d3   : > { %v3735_v22 = vpop.f32.mrb[90].mxu1 }
 0x5d4   : > { %v3737_v51 = vpop.f32.mrb[91].mxu1 }
 0x5d7   : > { %v3740_v44 = vpop.f32.mrb[92].mxu1 }
 0x5d8   : > { %v3742_v1 = vpop.f32.mrb[93].mxu1 }
 0x5db   : > { %v3745_v56 = vpop.f32.mrb[94].mxu1 }
 0x5dc   : > { %v3747_v7 = vpop.f32.mrb[95].mxu1 }
 0x5df   : > { %v4606_v0 = vpop.f32.mrb[96].mxu1 }
 0x5e0   : > { %v3941_v57 = vadd.f32 %v4606_v0, %v3715_v30  ;;  %v3935_v18 = vpop.f32.mrb[97].mxu1 }
 0x5e1   : > { %v3936_v9 = vadd.f32 %v3935_v18, %v3710_v12 }
 0x5e2   : > { %v3999_v45 = vadd.f32 %v5565_v20, %v3941_v57 }
 0x5e3   : > { %v3998_v3 = vadd.f32 %v5566_v23, %v3936_v9  ;;  %v4609_v49 = vpop.f32.mrb[98].mxu1 }
 0x5e4   : > { %4031 = vst [vmem:[%s8177_s15 + $0xc8] sm:$0xff] %v3999_v45  ;;  %v3951_v5 = vadd.f32 %v4609_v49, %v3725_v8  ;;  %v3945_v19 = vpop.f32.mrb[99].mxu1 }
 0x5e5   : > { %4030 = vst [vmem:[%s8177_s15 + $0xc0] sm:$0xff] %v3998_v3  ;;  %v3946_v17 = vadd.f32 %v3945_v19, %v3720_v53 }
 0x5e6   : > { %v4001_v6 = vadd.f32 %v5567_v32, %v3951_v5 }
 0x5e7   : > { %v4000_v27 = vadd.f32 %v5568_v33, %v3946_v17  ;;  %v4612_v24 = vpop.f32.mrb[100].mxu1 }
 0x5e8   : > { %4033 = vst [vmem:[%s8177_s15 + $0xd8] sm:$0xff] %v4001_v6  ;;  %v3961_v34 = vadd.f32 %v4612_v24, %v3735_v22  ;;  %v3955_v59 = vpop.f32.mrb[101].mxu1 }
 0x5e9   : > { %4032 = vst [vmem:[%s8177_s15 + $0xd0] sm:$0xff] %v4000_v27  ;;  %v3956_v47 = vadd.f32 %v3955_v59, %v3730_v21 }
 0x5ea   : > { %v4003_v11 = vadd.f32 %v5569_v46, %v3961_v34 }
 0x5eb   : > { %v4002_v4 = vadd.f32 %v5570_v60, %v3956_v47  ;;  %v4615_v43 = vpop.f32.mrb[102].mxu1 }
 0x5ec   : > { %4035 = vst [vmem:[%s8177_s15 + $0xe8] sm:$0xff] %v4003_v11  ;;  %v3971_v50 = vadd.f32 %v4615_v43, %v3745_v56  ;;  %v3965_v15 = vpop.f32.mrb[103].mxu1 }
 0x5ed   : > { %4034 = vst [vmem:[%s8177_s15 + $0xe0] sm:$0xff] %v4002_v4  ;;  %v3966_v31 = vadd.f32 %v3965_v15, %v3740_v44 }
 0x5ee   : > { %v4005_v26 = vadd.f32 %v5571_v28, %v3971_v50 }
 0x5ef   : > { %v4004_v54 = vadd.f32 %v5572_v37, %v3966_v31 }
 0x5f0   : > { %4037 = vst [vmem:[%s8177_s15 + $0xf8] sm:$0xff] %v4005_v26 }
 0x5f1   : > { %4036 = vst [vmem:[%s8177_s15 + $0xf0] sm:$0xff] %v4004_v54 }
 0x5f2   : > { %5672 = shalt.err (!%p5669_p1)
}
 0x5f3   : > { %s5673_s13 = scalar_lea.hbm %s8267_s23, 4096  ;;  %s5677_s15 = scalar_lea.hbm %s8323_s7, 8192 }
 0x5f4   : > { %p5674_p13 = scmp.ne.s32.totalorder %s8267_s23, %s5673_s13  ;;  %p5678_p4 = scmp.lt.u32.totalorder %s8267_s23, %s8323_s7 }
 0x5f5   : > { %p5679_p5 = scmp.lt.u32.totalorder %s5677_s15, %s5673_s13  ;;  %p5681_p11 = scmp.lt.u32.totalorder %s5673_s13, %s8267_s23 }
 0x5f6   : > { %p5675_p6 = pnand %p5674_p13, %p8837_p0 }
 0x5f7   : > { %p5680_p8 = por %p5679_p5, %p5678_p4 }
 0x5f8   : > { %p5676_p10 = pneg %p5675_p6 }
 0x5f9   : > { %p5682_p2 = por %p5681_p11, %p5680_p8 }
 0x5fb   : > { %p5683_p3 = pnand %p5682_p2, %p5676_p10 }
 0x5fd   : > { %5686 = shalt.err (!%p5683_p3)
}
 0x5fe   : > { %s5739_s21 = smov 128   ;;  %s5740_s18 = smov 8  }
 0x5ff   : > { %5474 = dma.vmem_to_hbm [thread:$0]  (%p8837_p0), %s8269_s19, 4096, %s8267_s23, %s4039_s28, %s5739_s21, %s5739_s21, %s5740_s18  }
 0x600 PF: > { %s4067_s30 = sand.u32 1, %s5717_s24   ;;  %p8838_p7 = scmp.ne.s32.totalorder %s8536_s8, 0 }
 0x601   : > { %p8839_p9 = scmp.ge.s32.totalorder %s5729_s27, 2  ;;  %s4068_s9 = scalar_lea.sflag [#allocation4], %s4067_s30 }
 0x603   : > { %p5488_p12 = pnand %p8839_p9, %p8838_p7 }
 0x605   : > { %5712 = dma.done.wait (!%p5488_p12), %s4068_s9, 4096  }
 0x606   : > { %5714 = vsyncadd (!%p5488_p12), %s4068_s9, 4294963200  ;;  %p21_p1 = scmp.ge.s32.totalorder %s5897_s12, 4   ;;  %s8840_s24 = smov %s5721_s25 }
 0x607   : > { %s8841_s25 = smov %s5725_s26  ;;  %s8842_s26 = smov %s5913_s17 }
 0x608   : > { %s8843_s27 = smov %s5897_s12  ;;  %23 = sbr.rel (!%p21_p1) target bundleno = 6 (0x6), region = 101 }
 0x60f   :  { %4073 = vsyncpa [#allocation3], 1 }
 0x610   :  { %4075 = vsyncpa [#allocation3 + $0x1], 1 }
 0x611   :  { %4076 = vsyncpa [#allocation6], 1 }
 0x612   :  { %4077 = vsyncpa [#allocation4], 1 }
 0x613   :  { %4079 = vsyncpa [#allocation4 + $0x1], 1 }

</bundles_post_ra>
